<compile_context>
chip_gen: v7x
topology: tpu7x:2x2x1
jax: 0.10.0
libtpu: 0.0.40
codegen_flags: <defaults>
</compile_context>

<pallas_src>
import math
from functools import partial

import jax
import jax.numpy as jnp
from jax.experimental import pallas as pl
from jax.experimental.pallas import tpu as pltpu


# --------------------------------------------------------------------------- #
# Kernel
# --------------------------------------------------------------------------- #
def attention_kernel(enc_ref, dec_ref, weT_ref, wdT_ref, be_ref, bd_ref, wf_ref,
                     awe_ref, alpha_ref, *, n_regions):
    rows, _ = enc_ref.shape                 # rows = tb * n_regions
    a = weT_ref.shape[1]                    # attention_dim
    tb = rows // n_regions                  # batch rows in this tile

    # --- projections (MXU, f32 accumulate) --------------------------------- #
    # att1 for every (batch, region) row of this tile in ONE matmul.  The
    # encoder bias is kept here because the reference sums att1 * alpha.
    att1 = jnp.dot(enc_ref[...], weT_ref[...],
                   preferred_element_type=jnp.float32) + be_ref[...]       # (rows, A)

    # Decoder projection fused into the kernel: kills the separate XLA matmul
    # dispatch and the (B, A) HBM round-trip of the previous version.
    att2 = jnp.dot(dec_ref[...], wdT_ref[...],
                   preferred_element_type=jnp.float32) + bd_ref[...]       # (tb, A)

    # (rows, A) -> (tb, N, A): layout-preserving sublane regrouping when
    # N % 8 == 0, so only the small att2 broadcast is replicated on-chip.
    att1_3d = att1.reshape(tb, n_regions, a)                               # (tb, N, A)
    h = jnp.tanh(att1_3d + att2[:, None, :])                               # (tb, N, A)

    # full_att as a VPU multiply + lane reduce (no (A, 1) MXU matvec).  The
    # scalar full_att bias is dropped: softmax(x + c) == softmax(x).
    scores = jnp.sum(h * wf_ref[...], axis=-1)                             # (tb, N)

    # Numerically-stable softmax over regions.  Exact divide so every alpha
    # row sums to 1 at f32 accuracy (review correctness note).
    m = jnp.max(scores, axis=-1, keepdims=True)
    e = jnp.exp(scores - m)
    alpha = e / jnp.sum(e, axis=-1, keepdims=True)                         # (tb, N)

    # attention_weighted_encoding = sum_n alpha[b, n] * att1[b, n, :]
    # (projected features, matching the PyTorch reference).
    awe = jnp.sum(att1_3d * alpha[:, :, None], axis=1)                     # (tb, A)

    # Lane-dense packed stores when the wrapper requested them (output last
    # dim 128 -> unmasked vst); otherwise plain (tb, A) / (tb, N) slabs.
    awe_ref[...] = awe.reshape(awe_ref.shape)
    alpha_ref[...] = alpha.reshape(alpha_ref.shape)


# --------------------------------------------------------------------------- #
# Wrapper
# --------------------------------------------------------------------------- #
def _num_tensorcores():
    """2 for megacore/multi-TC parts (v4 / v5p / v7x), else 1.  Tiling hint only."""
    try:
        kind = jax.devices()[0].device_kind.lower()
    except Exception:
        return 1
    if any(tag in kind for tag in ("v4", "v5p", "v7", "tpu7")):
        return 2
    return 1


def _pick_tb(B, N, E, D, n_cores):
    """Batch-tile size: big tiles, no padding when possible, VMEM-bounded."""
    # Keep the double-buffered enc/dec input tiles well under the scoped VMEM
    # limit on every generation (v7x: 64 MiB physical / 32 MiB default scoped).
    vmem_budget = 8 * 1024 * 1024
    rows_cap = max(8, vmem_budget // (8 * max(E + D, 1)))      # f32, 2 buffers
    rows_target = min(2048, rows_cap)                          # review #4
    tb_max = max(8, (rows_target // max(N, 1)) // 8 * 8)

    if n_cores > 1:
        # Multi-TensorCore parts: keep >= n_cores "parallel" grid steps.
        per_core = max(8, math.ceil(math.ceil(B / n_cores) / 8) * 8)
        tb_max = min(tb_max, per_core)
    elif B % 8 == 0 and B <= tb_max:
        # Single TC: the grid is a serial loop -> collapse to one step.
        return B

    if B % 8 == 0 and B <= tb_max:
        return B
    # Prefer the largest tb <= tb_max that divides B exactly (no padding copy).
    start = min(tb_max, (B // 8) * 8)
    for cand in range(start, 7, -8):
        if B % cand == 0:
            return cand
    # Fallback: smallest padded tile (only hit for awkward batch sizes).
    return min(tb_max, max(8, math.ceil(B / 8) * 8))


@partial(jax.jit, static_argnames=("tb", "pack"))
def _attention_impl(encoder_out, decoder_hidden, params, tb, pack):
    B, N, E = encoder_out.shape
    D = decoder_hidden.shape[-1]
    A = params["We"].shape[0]

    n_steps = -(-B // tb)
    Bp = n_steps * tb

    # --- wrapper glue: layout-only / tiny ----------------------------------- #
    enc2 = encoder_out.reshape(B * N, E)           # free (metadata only)
    dec = decoder_hidden.reshape(B, D)             # == .squeeze(0)

    if Bp != B:
        # Fallback only: _pick_tb prefers tile sizes that divide B, so this
        # zero-pad (an extra HBM copy) is normally never executed.
        enc2 = jnp.pad(enc2, ((0, (Bp - B) * N), (0, 0)))
        dec = jnp.pad(dec, ((0, Bp - B), (0, 0)))

    weT = params["We"].T                           # (E, A)
    wdT = params["Wd"].T                           # (D, A)
    be = params["be"].reshape(1, A)
    bd = params["bd"].reshape(1, A)
    wf = params["wf"].reshape(1, A)
    # params["bf"] intentionally unused: softmax is shift-invariant.

    # --- lane-dense packed output layouts (review #1) ------------------------ #
    pack_awe = (pack and A < 128 and (tb * A) % 128 == 0
                and ((tb * A // 128) % 8 == 0 or n_steps == 1))
    pack_alpha = (pack and N < 128 and (tb * N) % 128 == 0
                  and ((tb * N // 128) % 8 == 0 or n_steps == 1))

    if pack_awe:
        awe_shape = ((Bp * A) // 128, 128)
        awe_spec = pl.BlockSpec(((tb * A) // 128, 128), lambda i: (i, 0))
    else:
        awe_shape = (Bp, A)
        awe_spec = pl.BlockSpec((tb, A), lambda i: (i, 0))
    if pack_alpha:
        alpha_shape = ((Bp * N) // 128, 128)
        alpha_spec = pl.BlockSpec(((tb * N) // 128, 128), lambda i: (i, 0))
    else:
        alpha_shape = (Bp, N)
        alpha_spec = pl.BlockSpec((tb, N), lambda i: (i, 0))

    awe_out, alpha_out = pl.pallas_call(
        partial(attention_kernel, n_regions=N),
        out_shape=(
            jax.ShapeDtypeStruct(awe_shape, jnp.float32),
            jax.ShapeDtypeStruct(alpha_shape, jnp.float32),
        ),
        grid_spec=pltpu.PrefetchScalarGridSpec(
            num_scalar_prefetch=0,
            grid=(n_steps,),
            in_specs=[
                pl.BlockSpec((tb * N, E), lambda i: (i, 0)),   # encoder rows
                pl.BlockSpec((tb, D), lambda i: (i, 0)),       # decoder hidden rows
                pl.BlockSpec((E, A), lambda i: (0, 0)),        # We^T (resident)
                pl.BlockSpec((D, A), lambda i: (0, 0)),        # Wd^T (resident)
                pl.BlockSpec((1, A), lambda i: (0, 0)),        # be
                pl.BlockSpec((1, A), lambda i: (0, 0)),        # bd
                pl.BlockSpec((1, A), lambda i: (0, 0)),        # wf
            ],
            out_specs=(awe_spec, alpha_spec),
        ),
        compiler_params=pltpu.CompilerParams(
            dimension_semantics=("parallel",),
            vmem_limit_bytes=32 * 1024 * 1024,   # tiles sized to fit every gen (incl. v7x)
        ),
    )(enc2, dec, weT, wdT, be, bd, wf)

    awe = awe_out.reshape(Bp, A)[:B]      # free reshape; slice is a no-op when Bp == B
    alpha = alpha_out.reshape(Bp, N)[:B]
    return awe, alpha


def attention_pallas(encoder_out, decoder_hidden, params, *, tb=None):
    """encoder_out: (B, N, E); decoder_hidden: (1, B, D)."""
    B, N, E = encoder_out.shape
    D = decoder_hidden.shape[-1]
    if tb is None:
        tb = _pick_tb(B, N, E, D, _num_tensorcores())
    else:
        # Guard user-supplied tb: BlockSpec needs a multiple-of-8 sublane block.
        tb = max(8, (int(tb) // 8) * 8)
    try:
        # Preferred path: lane-dense packed output slabs.
        return _attention_impl(encoder_out, decoder_hidden, params, tb, True)
    except Exception:
        # Capability fallback: identical results with plain (tb, A)/(tb, N)
        # output blocks if this Mosaic build rejects the packing reshape.
        return _attention_impl(encoder_out, decoder_hidden, params, tb, False)


# --------------------------------------------------------------------------- #
# Pure-JAX reference (mirrors the PyTorch forward, including bf)
# --------------------------------------------------------------------------- #
def attention_ref(encoder_out, decoder_hidden, params):
    att1 = encoder_out @ params["We"].T + params["be"]                     # (B, N, A)
    att2 = (decoder_hidden @ params["Wd"].T + params["bd"])[0]             # (B, A)
    att = (jnp.tanh(att1 + att2[:, None, :]) @ params["wf"].reshape(-1, 1)
           + params["bf"]).squeeze(2)                                      # (B, N)
    alpha = jax.nn.softmax(att, axis=1)
    awe = (att1 * alpha[:, :, None]).sum(axis=1)                           # (B, A)
    return awe, alpha


if __name__ == "__main__":
    B, N = 64, 8
    encoder_dim, decoder_dim, attention_dim = 32, 16, 32

    key = jax.random.PRNGKey(0)
    k = jax.random.split(key, 8)
    params = {
        "We": jax.random.normal(k[0], (attention_dim, encoder_dim), jnp.float32) * 0.1,
        "be": jax.random.normal(k[1], (attention_dim,), jnp.float32) * 0.1,
        "Wd": jax.random.normal(k[2], (attention_dim, decoder_dim), jnp.float32) * 0.1,
        "bd": jax.random.normal(k[3], (attention_dim,), jnp.float32) * 0.1,
        "wf": jax.random.normal(k[4], (attention_dim,), jnp.float32) * 0.1,
        "bf": jax.random.normal(k[5], (1,), jnp.float32) * 0.1,
    }
    encoder_out = jax.random.normal(k[6], (B, N, encoder_dim), jnp.float32)
    decoder_hidden = jax.random.normal(k[7], (1, B, decoder_dim), jnp.float32)

    awe, alpha = attention_pallas(encoder_out, decoder_hidden, params)
    jax.block_until_ready((awe, alpha))

    awe_r, alpha_r = attention_ref(encoder_out, decoder_hidden, params)
    assert awe.shape == (B, attention_dim) and alpha.shape == (B, N)
    # MXU f32 matmul path vs. XLA's default dot precision -> small tolerance.
    assert jnp.allclose(awe, awe_r, atol=2e-3, rtol=2e-3)
    assert jnp.allclose(alpha, alpha_r, atol=2e-3, rtol=2e-3)
    assert bool(jnp.all(jnp.isfinite(awe))) and bool(jnp.all(jnp.isfinite(alpha)))
    # alpha rows should sum to 1 (exact softmax divide).
    assert jnp.allclose(jnp.sum(alpha, axis=1), jnp.ones((B,)), atol=1e-5)

    print("KERNEL_OK")
</pallas_src>

<mosaic_0001>
module attributes {stable_mosaic.version = 11 : i64} {
  func.func @attention_kernel(%arg0: i32, %arg1: memref<512x32xf32, #tpu.memory_space<vmem>>, %arg2: memref<64x16xf32, #tpu.memory_space<vmem>>, %arg3: memref<32x32xf32, #tpu.memory_space<vmem>>, %arg4: memref<16x32xf32, #tpu.memory_space<vmem>>, %arg5: memref<1x32xf32, #tpu.memory_space<vmem>>, %arg6: memref<1x32xf32, #tpu.memory_space<vmem>>, %arg7: memref<1x32xf32, #tpu.memory_space<vmem>>, %arg8: memref<16x128xf32, #tpu.memory_space<vmem>>, %arg9: memref<4x128xf32, #tpu.memory_space<vmem>>) attributes {dimension_semantics = [#tpu.dimension_semantics<parallel>], iteration_bounds = array<i64: 1>, scalar_prefetch = 0 : i64, scratch_operands = 0 : i64, tpu.core_type = #tpu.core_type<tc>, window_params = [{transform_indices = @transform_0, window_bounds = array<i64: 512, 32>}, {transform_indices = @transform_1, window_bounds = array<i64: 64, 16>}, {pipeline_mode = #tpu.pipeline_mode<synchronous>, transform_indices = @transform_2, window_bounds = array<i64: 32, 32>}, {pipeline_mode = #tpu.pipeline_mode<synchronous>, transform_indices = @transform_3, window_bounds = array<i64: 16, 32>}, {pipeline_mode = #tpu.pipeline_mode<synchronous>, transform_indices = @transform_4, window_bounds = array<i64: 1, 32>}, {pipeline_mode = #tpu.pipeline_mode<synchronous>, transform_indices = @transform_5, window_bounds = array<i64: 1, 32>}, {pipeline_mode = #tpu.pipeline_mode<synchronous>, transform_indices = @transform_6, window_bounds = array<i64: 1, 32>}, {transform_indices = @transform_7, window_bounds = array<i64: 16, 128>}, {transform_indices = @transform_8, window_bounds = array<i64: 4, 128>}]} {
    %c0 = arith.constant 0 : index
    %c0_0 = arith.constant 0 : index
    %0 = vector.load %arg1[%c0, %c0_0] : memref<512x32xf32, #tpu.memory_space<vmem>>, vector<512x32xf32>
    %c0_1 = arith.constant 0 : index
    %c0_2 = arith.constant 0 : index
    %1 = vector.load %arg3[%c0_1, %c0_2] : memref<32x32xf32, #tpu.memory_space<vmem>>, vector<32x32xf32>
    %cst = arith.constant dense<0.000000e+00> : vector<512x32xf32>
    %2 = tpu.matmul %0, %1, %cst {dimension_numbers = #tpu.dot_dimension_numbers<[1], [0], [0], [1], [0, 0, 1, 1], [], []>} : vector<512x32xf32>, vector<32x32xf32>, vector<512x32xf32> -> vector<512x32xf32>
    %c0_3 = arith.constant 0 : index
    %c0_4 = arith.constant 0 : index
    %3 = vector.load %arg5[%c0_3, %c0_4] : memref<1x32xf32, #tpu.memory_space<vmem>>, vector<1x32xf32>
    %4 = vector.broadcast %3 : vector<1x32xf32> to vector<512x32xf32>
    %5 = arith.addf %2, %4 : vector<512x32xf32>
    %c0_5 = arith.constant 0 : index
    %c0_6 = arith.constant 0 : index
    %6 = vector.load %arg2[%c0_5, %c0_6] : memref<64x16xf32, #tpu.memory_space<vmem>>, vector<64x16xf32>
    %c0_7 = arith.constant 0 : index
    %c0_8 = arith.constant 0 : index
    %7 = vector.load %arg4[%c0_7, %c0_8] : memref<16x32xf32, #tpu.memory_space<vmem>>, vector<16x32xf32>
    %cst_9 = arith.constant dense<0.000000e+00> : vector<64x32xf32>
    %8 = tpu.matmul %6, %7, %cst_9 {dimension_numbers = #tpu.dot_dimension_numbers<[1], [0], [0], [1], [0, 0, 1, 1], [], []>} : vector<64x16xf32>, vector<16x32xf32>, vector<64x32xf32> -> vector<64x32xf32>
    %c0_10 = arith.constant 0 : index
    %c0_11 = arith.constant 0 : index
    %9 = vector.load %arg6[%c0_10, %c0_11] : memref<1x32xf32, #tpu.memory_space<vmem>>, vector<1x32xf32>
    %10 = vector.broadcast %9 : vector<1x32xf32> to vector<64x32xf32>
    %11 = arith.addf %8, %10 : vector<64x32xf32>
    %12 = vector.shape_cast %5 : vector<512x32xf32> to vector<64x8x32xf32>
    %13 = vector.shape_cast %11 : vector<64x32xf32> to vector<64x1x32xf32>
    %14 = vector.broadcast %13 : vector<64x1x32xf32> to vector<64x8x32xf32>
    %15 = arith.addf %12, %14 : vector<64x8x32xf32>
    %16 = math.tanh %15 : vector<64x8x32xf32>
    %c0_12 = arith.constant 0 : index
    %c0_13 = arith.constant 0 : index
    %17 = vector.load %arg7[%c0_12, %c0_13] : memref<1x32xf32, #tpu.memory_space<vmem>>, vector<1x32xf32>
    %18 = vector.shape_cast %17 : vector<1x32xf32> to vector<1x1x32xf32>
    %19 = vector.broadcast %18 : vector<1x1x32xf32> to vector<64x8x32xf32>
    %20 = arith.mulf %16, %19 : vector<64x8x32xf32>
    %cst_14 = arith.constant dense<0.000000e+00> : vector<64x8xf32>
    %21 = vector.multi_reduction <add>, %20, %cst_14 [2] : vector<64x8x32xf32> to vector<64x8xf32>
    %cst_15 = arith.constant dense<0xFF800000> : vector<64xf32>
    %22 = vector.multi_reduction <maximumf>, %21, %cst_15 [1] : vector<64x8xf32> to vector<64xf32>
    %23 = vector.shape_cast %22 : vector<64xf32> to vector<64x1xf32>
    %24 = vector.broadcast %23 : vector<64x1xf32> to vector<64x8xf32>
    %25 = arith.subf %21, %24 : vector<64x8xf32>
    %26 = math.exp %25 : vector<64x8xf32>
    %cst_16 = arith.constant dense<0.000000e+00> : vector<64xf32>
    %27 = vector.multi_reduction <add>, %26, %cst_16 [1] : vector<64x8xf32> to vector<64xf32>
    %28 = vector.shape_cast %27 : vector<64xf32> to vector<64x1xf32>
    %29 = vector.broadcast %28 : vector<64x1xf32> to vector<64x8xf32>
    %30 = arith.divf %26, %29 : vector<64x8xf32>
    %31 = vector.shape_cast %30 : vector<64x8xf32> to vector<64x8x1xf32>
    %32 = vector.broadcast %31 : vector<64x8x1xf32> to vector<64x8x32xf32>
    %33 = arith.mulf %12, %32 : vector<64x8x32xf32>
    %cst_17 = arith.constant dense<0.000000e+00> : vector<64x32xf32>
    %34 = vector.multi_reduction <add>, %33, %cst_17 [1] : vector<64x8x32xf32> to vector<64x32xf32>
    %35 = vector.shape_cast %34 : vector<64x32xf32> to vector<16x128xf32>
    %c0_18 = arith.constant 0 : index
    %c0_19 = arith.constant 0 : index
    %36 = vector.load %arg8[%c0_18, %c0_19] : memref<16x128xf32, #tpu.memory_space<vmem>>, vector<16x128xf32>
    tpu.vector_store %arg8[%c0_18, %c0_19], %35 {strides = array<i32>} : memref<16x128xf32, #tpu.memory_space<vmem>>, vector<16x128xf32>,
    %37 = vector.shape_cast %30 : vector<64x8xf32> to vector<4x128xf32>
    %c0_20 = arith.constant 0 : index
    %c0_21 = arith.constant 0 : index
    %38 = vector.load %arg9[%c0_20, %c0_21] : memref<4x128xf32, #tpu.memory_space<vmem>>, vector<4x128xf32>
    tpu.vector_store %arg9[%c0_20, %c0_21], %37 {strides = array<i32>} : memref<4x128xf32, #tpu.memory_space<vmem>>, vector<4x128xf32>,
    return
  }
  func.func @transform_0(%arg0: i32) -> (i32, i32) {
    %c0_i32 = arith.constant 0 : i32
    %c0_i32_0 = arith.constant 0 : i32
    return %arg0, %c0_i32 : i32, i32
  }
  func.func @transform_1(%arg0: i32) -> (i32, i32) {
    %c0_i32 = arith.constant 0 : i32
    %c0_i32_0 = arith.constant 0 : i32
    return %arg0, %c0_i32 : i32, i32
  }
  func.func @transform_2(%arg0: i32) -> (i32, i32) {
    %c0_i32 = arith.constant 0 : i32
    %c0_i32_0 = arith.constant 0 : i32
    %c0_i32_1 = arith.constant 0 : i32
    return %c0_i32, %c0_i32_0 : i32, i32
  }
  func.func @transform_3(%arg0: i32) -> (i32, i32) {
    %c0_i32 = arith.constant 0 : i32
    %c0_i32_0 = arith.constant 0 : i32
    %c0_i32_1 = arith.constant 0 : i32
    return %c0_i32, %c0_i32_0 : i32, i32
  }
  func.func @transform_4(%arg0: i32) -> (i32, i32) {
    %c0_i32 = arith.constant 0 : i32
    %c0_i32_0 = arith.constant 0 : i32
    %c0_i32_1 = arith.constant 0 : i32
    return %c0_i32, %c0_i32_0 : i32, i32
  }
  func.func @transform_5(%arg0: i32) -> (i32, i32) {
    %c0_i32 = arith.constant 0 : i32
    %c0_i32_0 = arith.constant 0 : i32
    %c0_i32_1 = arith.constant 0 : i32
    return %c0_i32, %c0_i32_0 : i32, i32
  }
  func.func @transform_6(%arg0: i32) -> (i32, i32) {
    %c0_i32 = arith.constant 0 : i32
    %c0_i32_0 = arith.constant 0 : i32
    %c0_i32_1 = arith.constant 0 : i32
    return %c0_i32, %c0_i32_0 : i32, i32
  }
  func.func @transform_7(%arg0: i32) -> (i32, i32) {
    %c0_i32 = arith.constant 0 : i32
    %c0_i32_0 = arith.constant 0 : i32
    return %arg0, %c0_i32 : i32, i32
  }
  func.func @transform_8(%arg0: i32) -> (i32, i32) {
    %c0_i32 = arith.constant 0 : i32
    %c0_i32_0 = arith.constant 0 : i32
    return %arg0, %c0_i32 : i32, i32
  }
}

module attributes {stable_mosaic.version = 11 : i64} {
  func.func @attention_kernel(%arg0: i32, %arg1: memref<512x32xf32, #tpu.memory_space<vmem>>, %arg2: memref<64x16xf32, #tpu.memory_space<vmem>>, %arg3: memref<32x32xf32, #tpu.memory_space<vmem>>, %arg4: memref<16x32xf32, #tpu.memory_space<vmem>>, %arg5: memref<1x32xf32, #tpu.memory_space<vmem>>, %arg6: memref<1x32xf32, #tpu.memory_space<vmem>>, %arg7: memref<1x32xf32, #tpu.memory_space<vmem>>, %arg8: memref<64x32xf32, #tpu.memory_space<vmem>>, %arg9: memref<64x8xf32, #tpu.memory_space<vmem>>) attributes {dimension_semantics = [#tpu.dimension_semantics<parallel>], iteration_bounds = array<i64: 1>, scalar_prefetch = 0 : i64, scratch_operands = 0 : i64, tpu.core_type = #tpu.core_type<tc>, window_params = [{transform_indices = @transform_0, window_bounds = array<i64: 512, 32>}, {transform_indices = @transform_1, window_bounds = array<i64: 64, 16>}, {pipeline_mode = #tpu.pipeline_mode<synchronous>, transform_indices = @transform_2, window_bounds = array<i64: 32, 32>}, {pipeline_mode = #tpu.pipeline_mode<synchronous>, transform_indices = @transform_3, window_bounds = array<i64: 16, 32>}, {pipeline_mode = #tpu.pipeline_mode<synchronous>, transform_indices = @transform_4, window_bounds = array<i64: 1, 32>}, {pipeline_mode = #tpu.pipeline_mode<synchronous>, transform_indices = @transform_5, window_bounds = array<i64: 1, 32>}, {pipeline_mode = #tpu.pipeline_mode<synchronous>, transform_indices = @transform_6, window_bounds = array<i64: 1, 32>}, {transform_indices = @transform_7, window_bounds = array<i64: 64, 32>}, {transform_indices = @transform_8, window_bounds = array<i64: 64, 8>}]} {
    %c0 = arith.constant 0 : index
    %c0_0 = arith.constant 0 : index
    %0 = vector.load %arg1[%c0, %c0_0] : memref<512x32xf32, #tpu.memory_space<vmem>>, vector<512x32xf32>
    %c0_1 = arith.constant 0 : index
    %c0_2 = arith.constant 0 : index
    %1 = vector.load %arg3[%c0_1, %c0_2] : memref<32x32xf32, #tpu.memory_space<vmem>>, vector<32x32xf32>
    %cst = arith.constant dense<0.000000e+00> : vector<512x32xf32>
    %2 = tpu.matmul %0, %1, %cst {dimension_numbers = #tpu.dot_dimension_numbers<[1], [0], [0], [1], [0, 0, 1, 1], [], []>} : vector<512x32xf32>, vector<32x32xf32>, vector<512x32xf32> -> vector<512x32xf32>
    %c0_3 = arith.constant 0 : index
    %c0_4 = arith.constant 0 : index
    %3 = vector.load %arg5[%c0_3, %c0_4] : memref<1x32xf32, #tpu.memory_space<vmem>>, vector<1x32xf32>
    %4 = vector.broadcast %3 : vector<1x32xf32> to vector<512x32xf32>
    %5 = arith.addf %2, %4 : vector<512x32xf32>
    %c0_5 = arith.constant 0 : index
    %c0_6 = arith.constant 0 : index
    %6 = vector.load %arg2[%c0_5, %c0_6] : memref<64x16xf32, #tpu.memory_space<vmem>>, vector<64x16xf32>
    %c0_7 = arith.constant 0 : index
    %c0_8 = arith.constant 0 : index
    %7 = vector.load %arg4[%c0_7, %c0_8] : memref<16x32xf32, #tpu.memory_space<vmem>>, vector<16x32xf32>
    %cst_9 = arith.constant dense<0.000000e+00> : vector<64x32xf32>
    %8 = tpu.matmul %6, %7, %cst_9 {dimension_numbers = #tpu.dot_dimension_numbers<[1], [0], [0], [1], [0, 0, 1, 1], [], []>} : vector<64x16xf32>, vector<16x32xf32>, vector<64x32xf32> -> vector<64x32xf32>
    %c0_10 = arith.constant 0 : index
    %c0_11 = arith.constant 0 : index
    %9 = vector.load %arg6[%c0_10, %c0_11] : memref<1x32xf32, #tpu.memory_space<vmem>>, vector<1x32xf32>
    %10 = vector.broadcast %9 : vector<1x32xf32> to vector<64x32xf32>
    %11 = arith.addf %8, %10 : vector<64x32xf32>
    %12 = vector.shape_cast %5 : vector<512x32xf32> to vector<64x8x32xf32>
    %13 = vector.shape_cast %11 : vector<64x32xf32> to vector<64x1x32xf32>
    %14 = vector.broadcast %13 : vector<64x1x32xf32> to vector<64x8x32xf32>
    %15 = arith.addf %12, %14 : vector<64x8x32xf32>
    %16 = math.tanh %15 : vector<64x8x32xf32>
    %c0_12 = arith.constant 0 : index
    %c0_13 = arith.constant 0 : index
    %17 = vector.load %arg7[%c0_12, %c0_13] : memref<1x32xf32, #tpu.memory_space<vmem>>, vector<1x32xf32>
    %18 = vector.shape_cast %17 : vector<1x32xf32> to vector<1x1x32xf32>
    %19 = vector.broadcast %18 : vector<1x1x32xf32> to vector<64x8x32xf32>
    %20 = arith.mulf %16, %19 : vector<64x8x32xf32>
    %cst_14 = arith.constant dense<0.000000e+00> : vector<64x8xf32>
    %21 = vector.multi_reduction <add>, %20, %cst_14 [2] : vector<64x8x32xf32> to vector<64x8xf32>
    %cst_15 = arith.constant dense<0xFF800000> : vector<64xf32>
    %22 = vector.multi_reduction <maximumf>, %21, %cst_15 [1] : vector<64x8xf32> to vector<64xf32>
    %23 = vector.shape_cast %22 : vector<64xf32> to vector<64x1xf32>
    %24 = vector.broadcast %23 : vector<64x1xf32> to vector<64x8xf32>
    %25 = arith.subf %21, %24 : vector<64x8xf32>
    %26 = math.exp %25 : vector<64x8xf32>
    %cst_16 = arith.constant dense<0.000000e+00> : vector<64xf32>
    %27 = vector.multi_reduction <add>, %26, %cst_16 [1] : vector<64x8xf32> to vector<64xf32>
    %28 = vector.shape_cast %27 : vector<64xf32> to vector<64x1xf32>
    %29 = vector.broadcast %28 : vector<64x1xf32> to vector<64x8xf32>
    %30 = arith.divf %26, %29 : vector<64x8xf32>
    %31 = vector.shape_cast %30 : vector<64x8xf32> to vector<64x8x1xf32>
    %32 = vector.broadcast %31 : vector<64x8x1xf32> to vector<64x8x32xf32>
    %33 = arith.mulf %12, %32 : vector<64x8x32xf32>
    %cst_17 = arith.constant dense<0.000000e+00> : vector<64x32xf32>
    %34 = vector.multi_reduction <add>, %33, %cst_17 [1] : vector<64x8x32xf32> to vector<64x32xf32>
    %c0_18 = arith.constant 0 : index
    %c0_19 = arith.constant 0 : index
    %35 = vector.load %arg8[%c0_18, %c0_19] : memref<64x32xf32, #tpu.memory_space<vmem>>, vector<64x32xf32>
    tpu.vector_store %arg8[%c0_18, %c0_19], %34 {strides = array<i32>} : memref<64x32xf32, #tpu.memory_space<vmem>>, vector<64x32xf32>,
    %c0_20 = arith.constant 0 : index
    %c0_21 = arith.constant 0 : index
    %36 = vector.load %arg9[%c0_20, %c0_21] : memref<64x8xf32, #tpu.memory_space<vmem>>, vector<64x8xf32>
    tpu.vector_store %arg9[%c0_20, %c0_21], %30 {strides = array<i32>} : memref<64x8xf32, #tpu.memory_space<vmem>>, vector<64x8xf32>,
    return
  }
  func.func @transform_0(%arg0: i32) -> (i32, i32) {
    %c0_i32 = arith.constant 0 : i32
    %c0_i32_0 = arith.constant 0 : i32
    return %arg0, %c0_i32 : i32, i32
  }
  func.func @transform_1(%arg0: i32) -> (i32, i32) {
    %c0_i32 = arith.constant 0 : i32
    %c0_i32_0 = arith.constant 0 : i32
    return %arg0, %c0_i32 : i32, i32
  }
  func.func @transform_2(%arg0: i32) -> (i32, i32) {
    %c0_i32 = arith.constant 0 : i32
    %c0_i32_0 = arith.constant 0 : i32
    %c0_i32_1 = arith.constant 0 : i32
    return %c0_i32, %c0_i32_0 : i32, i32
  }
  func.func @transform_3(%arg0: i32) -> (i32, i32) {
    %c0_i32 = arith.constant 0 : i32
    %c0_i32_0 = arith.constant 0 : i32
    %c0_i32_1 = arith.constant 0 : i32
    return %c0_i32, %c0_i32_0 : i32, i32
  }
  func.func @transform_4(%arg0: i32) -> (i32, i32) {
    %c0_i32 = arith.constant 0 : i32
    %c0_i32_0 = arith.constant 0 : i32
    %c0_i32_1 = arith.constant 0 : i32
    return %c0_i32, %c0_i32_0 : i32, i32
  }
  func.func @transform_5(%arg0: i32) -> (i32, i32) {
    %c0_i32 = arith.constant 0 : i32
    %c0_i32_0 = arith.constant 0 : i32
    %c0_i32_1 = arith.constant 0 : i32
    return %c0_i32, %c0_i32_0 : i32, i32
  }
  func.func @transform_6(%arg0: i32) -> (i32, i32) {
    %c0_i32 = arith.constant 0 : i32
    %c0_i32_0 = arith.constant 0 : i32
    %c0_i32_1 = arith.constant 0 : i32
    return %c0_i32, %c0_i32_0 : i32, i32
  }
  func.func @transform_7(%arg0: i32) -> (i32, i32) {
    %c0_i32 = arith.constant 0 : i32
    %c0_i32_0 = arith.constant 0 : i32
    return %arg0, %c0_i32 : i32, i32
  }
  func.func @transform_8(%arg0: i32) -> (i32, i32) {
    %c0_i32 = arith.constant 0 : i32
    %c0_i32_0 = arith.constant 0 : i32
    return %arg0, %c0_i32 : i32, i32
  }
}

</mosaic_0001>

<bundles_post_ra>
// kernel: _attention_impl.1
= control target key start
LH: loop header
LB: loop body
LE: loop exit
PB: predicated region body
PF: predicated region fallthrough
CT: control target
= control target key end

     0   :  { %vm103_vm0 = vcmask 261120   ;;  %vm698_vm1 = vcmask 130048   ;;  %vm2261_vm2 = vcmask 1041409   ;;  %vm2263_vm3 = vcmask 1042434   ;;  %s8646_s2 = inlined_call_operand.vmem [shape: f32[32,32], index: 2, kind: input, shape index: {}]   ;;  %s8647_s0 = inlined_call_operand.vmem [shape: f32[512,32], index: 0, kind: input, shape index: {}]   ;;  %s8648_s3 = inlined_call_operand.vmem [shape: f32[16,32], index: 3, kind: input, shape index: {}]   ;;  %s8649_s1 = inlined_call_operand.vmem [shape: f32[64,16], index: 1, kind: input, shape index: {}]   ;;  %s8650_s5 = inlined_call_operand.vmem [shape: f32[1,32], index: 5, kind: input, shape index: {}]   ;;  %s8651_s4 = inlined_call_operand.vmem [shape: f32[1,32], index: 4, kind: input, shape index: {}]   ;;  %s8652_s6 = inlined_call_operand.vmem [shape: f32[1,32], index: 6, kind: input, shape index: {}]   ;;  %s8653_s8 = inlined_call_operand.vmem [shape: f32[64,8], index: 8, kind: output, shape index: {1}]   ;;  %s8654_s7 = inlined_call_operand.vmem [shape: f32[64,32], index: 7, kind: output, shape index: {0}]  }
   0x1   :  { %v92_v0 = vld [vmem:[%s8646_s2] sm:$0xff]  ;;  %v93_v1 = vld [vmem:[%s8646_s2 + $0x8] sm:$0xff]  ;;  %v94_v2 = vld [vmem:[%s8646_s2 + $0x10] sm:$0xff]  ;;  %vm2265_vm4 = vcmask 1043459   ;;  %vm2267_vm5 = vcmask 1044484   ;;  %vm2269_vm6 = vcmask 1045509  }
   0x2   :  { %v5510_v3 = vpack.c.bf16 %v93_v1, %v92_v0  ;;  %v95_v4 = vld [vmem:[%s8646_s2 + $0x18] sm:$0xff]  ;;  %v64_v5 = vld [vmem:[%s8647_s0 + $0x120] sm:$0xff]  ;;  %v690_v8 = vld [vmem:[%s8648_s3 + $0x8] sm:$0xff]  ;;  %vm2271_vm7 = vcmask 1046534   ;;  %vm2273_vm8 = vcmask 1047559   ;;  %vm2332_vm9 = vcmask 64512  }
   0x3   :  { %v5514_v6 = vpack.c.bf16 %v95_v4, %v94_v2  ;;  %5452 = vmatprep.mubr.msk.f32.mxu1 %vm103_vm0, %v64_v5  ;;  %v689_v7 = vld [vmem:[%s8648_s3] sm:$0xff]  ;;  %v65_v10 = vld [vmem:[%s8647_s0 + $0x128] sm:$0xff]  ;;  %v66_v12 = vld [vmem:[%s8647_s0 + $0x130] sm:$0xff] }
   0x4   :  { %5522 = vmatprep.subr.bf16.mxu1 %v5510_v3  ;;  %5511 = vmatprep.subr.bf16.mxu0 %v5510_v3  ;;  %v5518_v9 = vpack.c.bf16 %v690_v8, %v689_v7  ;;  %v28_v11 = vld [vmem:[%s8647_s0] sm:$0xff]  ;;  %v29_v13 = vld [vmem:[%s8647_s0 + $0x8] sm:$0xff]  ;;  %v30_v14 = vld [vmem:[%s8647_s0 + $0x10] sm:$0xff] }
   0x5   :  { %5524 = vmatpush3.bf16.msra.mxu1 %v5510_v3  ;;  %5513 = vmatpush3.bf16.msra.mxu0 %v5510_v3  ;;  %v67_v15 = vld [vmem:[%s8647_s0 + $0x138] sm:$0xff]  ;;  %v68_v17 = vld [vmem:[%s8647_s0 + $0x140] sm:$0xff]  ;;  %v69_v19 = vld [vmem:[%s8647_s0 + $0x148] sm:$0xff] }
   0x6   :  { %5523 = vmatprep.subr.bf16.mxu1 %v5514_v6  ;;  %5515 = vmatprep.subr.bf16.mxu0 %v5514_v6  ;;  %v31_v16 = vld [vmem:[%s8647_s0 + $0x18] sm:$0xff]  ;;  %v32_v18 = vld [vmem:[%s8647_s0 + $0x20] sm:$0xff]  ;;  %v33_v20 = vld [vmem:[%s8647_s0 + $0x28] sm:$0xff] }
   0x7   :  { %5398 = vmatprep.mubr.msk.f32.mxu0 %vm103_vm0, %v28_v11  ;;  %v70_v21 = vld [vmem:[%s8647_s0 + $0x150] sm:$0xff]  ;;  %v71_v23 = vld [vmem:[%s8647_s0 + $0x158] sm:$0xff]  ;;  %v72_v25 = vld [vmem:[%s8647_s0 + $0x160] sm:$0xff] }
   0x8   :  { %v34_v22 = vld [vmem:[%s8647_s0 + $0x30] sm:$0xff]  ;;  %v35_v24 = vld [vmem:[%s8647_s0 + $0x38] sm:$0xff]  ;;  %v36_v26 = vld [vmem:[%s8647_s0 + $0x40] sm:$0xff] }
   0x9   :  { %5525 = vmatpush3.bf16.msra.mxu1 %v5514_v6  ;;  %5517 = vmatpush3.bf16.msra.mxu0 %v5514_v6  ;;  %v73_v27 = vld [vmem:[%s8647_s0 + $0x168] sm:$0xff]  ;;  %v74_v29 = vld [vmem:[%s8647_s0 + $0x170] sm:$0xff]  ;;  %v75_v31 = vld [vmem:[%s8647_s0 + $0x178] sm:$0xff] }
   0xa   :  { %5519 = vmatprep.subr.bf16.mxu1 %v5518_v9  ;;  %v37_v28 = vld [vmem:[%s8647_s0 + $0x48] sm:$0xff]  ;;  %v38_v30 = vld [vmem:[%s8647_s0 + $0x50] sm:$0xff]  ;;  %v39_v32 = vld [vmem:[%s8647_s0 + $0x58] sm:$0xff] }
   0xb   :  { %v76_v33 = vld [vmem:[%s8647_s0 + $0x180] sm:$0xff]  ;;  %v77_v35 = vld [vmem:[%s8647_s0 + $0x188] sm:$0xff]  ;;  %v78_v37 = vld [vmem:[%s8647_s0 + $0x190] sm:$0xff] }
   0xc   :  { %5453 = vmatmul.mubr.msk.f32.vlgmr.msra.gmra.mrb[0].mxu1 %vm103_vm0, %v65_v10  ;;  %5399 = vmatmul.mubr.msk.f32.vlgmr.msra.gmra.mrb[0].mxu0 %vm103_vm0, %v29_v13  ;;  %v40_v34 = vld [vmem:[%s8647_s0 + $0x60] sm:$0xff]  ;;  %v41_v36 = vld [vmem:[%s8647_s0 + $0x68] sm:$0xff]  ;;  %v42_v38 = vld [vmem:[%s8647_s0 + $0x70] sm:$0xff] }
   0xd   :  { %5521 = vmatpush3.bf16.msra.mxu1 %v5518_v9  ;;  %5455 = vmatprep.mubr.msk.f32.mxu1 %vm103_vm0, %v66_v12  ;;  %v79_v39 = vld [vmem:[%s8647_s0 + $0x198] sm:$0xff]  ;;  %v80_v41 = vld [vmem:[%s8647_s0 + $0x1a0] sm:$0xff]  ;;  %v81_v43 = vld [vmem:[%s8647_s0 + $0x1a8] sm:$0xff] }
   0xe   :  { %5401 = vmatprep.mubr.msk.f32.mxu0 %vm103_vm0, %v30_v14  ;;  %v43_v40 = vld [vmem:[%s8647_s0 + $0x78] sm:$0xff]  ;;  %v44_v42 = vld [vmem:[%s8647_s0 + $0x80] sm:$0xff]  ;;  %v45_v44 = vld [vmem:[%s8647_s0 + $0x88] sm:$0xff] }
   0xf   :  { %v82_v45 = vld [vmem:[%s8647_s0 + $0x1b0] sm:$0xff]  ;;  %v83_v47 = vld [vmem:[%s8647_s0 + $0x1b8] sm:$0xff]  ;;  %v84_v49 = vld [vmem:[%s8647_s0 + $0x1c0] sm:$0xff] }
  0x10   :  { %5456 = vmatmul.mubr.msk.f32.gmra.mrb[2].mxu1 %vm103_vm0, %v67_v15  ;;  %5402 = vmatmul.mubr.msk.f32.gmra.mrb[2].mxu0 %vm103_vm0, %v31_v16  ;;  %v46_v46 = vld [vmem:[%s8647_s0 + $0x90] sm:$0xff]  ;;  %v47_v48 = vld [vmem:[%s8647_s0 + $0x98] sm:$0xff]  ;;  %v48_v50 = vld [vmem:[%s8647_s0 + $0xa0] sm:$0xff] }
  0x11   :  { %5458 = vmatprep.mubr.msk.f32.mxu1 %vm103_vm0, %v68_v17  ;;  %5404 = vmatprep.mubr.msk.f32.mxu0 %vm103_vm0, %v32_v18  ;;  %v85_v51 = vld [vmem:[%s8647_s0 + $0x1c8] sm:$0xff]  ;;  %v86_v53 = vld [vmem:[%s8647_s0 + $0x1d0] sm:$0xff]  ;;  %v87_v55 = vld [vmem:[%s8647_s0 + $0x1d8] sm:$0xff] }
  0x12   :  { %v49_v52 = vld [vmem:[%s8647_s0 + $0xa8] sm:$0xff]  ;;  %v50_v54 = vld [vmem:[%s8647_s0 + $0xb0] sm:$0xff]  ;;  %v51_v56 = vld [vmem:[%s8647_s0 + $0xb8] sm:$0xff] }
  0x13   :  { %v88_v57 = vld [vmem:[%s8647_s0 + $0x1e0] sm:$0xff]  ;;  %v89_v59 = vld [vmem:[%s8647_s0 + $0x1e8] sm:$0xff]  ;;  %v90_v61 = vld [vmem:[%s8647_s0 + $0x1f0] sm:$0xff] }
  0x14   :  { %5459 = vmatmul.mubr.msk.f32.gmra.mrb[4].mxu1 %vm103_vm0, %v69_v19  ;;  %5405 = vmatmul.mubr.msk.f32.gmra.mrb[4].mxu0 %vm103_vm0, %v33_v20  ;;  %v52_v58 = vld [vmem:[%s8647_s0 + $0xc0] sm:$0xff]  ;;  %v53_v60 = vld [vmem:[%s8647_s0 + $0xc8] sm:$0xff]  ;;  %v54_v62 = vld [vmem:[%s8647_s0 + $0xd0] sm:$0xff] }
  0x15   :  { %5461 = vmatprep.mubr.msk.f32.mxu1 %vm103_vm0, %v70_v21  ;;  %5407 = vmatprep.mubr.msk.f32.mxu0 %vm103_vm0, %v34_v22  ;;  %v91_v63 = vld [vmem:[%s8647_s0 + $0x1f8] sm:$0xff]  ;;  %v681_v1 = vld [vmem:[%s8649_s1] sm:$0xff]  ;;  %v682_v3 = vld [vmem:[%s8649_s1 + $0x8] sm:$0xff] }
  0x16   :  { %v55_v0 = vld [vmem:[%s8647_s0 + $0xd8] sm:$0xff]  ;;  %v56_v2 = vld [vmem:[%s8647_s0 + $0xe0] sm:$0xff]  ;;  %v57_v4 = vld [vmem:[%s8647_s0 + $0xe8] sm:$0xff] }
  0x17   :  { %v683_v5 = vld [vmem:[%s8649_s1 + $0x10] sm:$0xff]  ;;  %v684_v7 = vld [vmem:[%s8649_s1 + $0x18] sm:$0xff]  ;;  %v685_v9 = vld [vmem:[%s8649_s1 + $0x20] sm:$0xff] }
  0x18   :  { %5462 = vmatmul.mubr.msk.f32.gmra.mrb[6].mxu1 %vm103_vm0, %v71_v23  ;;  %5408 = vmatmul.mubr.msk.f32.gmra.mrb[6].mxu0 %vm103_vm0, %v35_v24  ;;  %v58_v6 = vld [vmem:[%s8647_s0 + $0xf0] sm:$0xff]  ;;  %v59_v8 = vld [vmem:[%s8647_s0 + $0xf8] sm:$0xff]  ;;  %v60_v10 = vld [vmem:[%s8647_s0 + $0x100] sm:$0xff] }
  0x19   :  { %5464 = vmatprep.mubr.msk.f32.mxu1 %vm103_vm0, %v72_v25  ;;  %5410 = vmatprep.mubr.msk.f32.mxu0 %vm103_vm0, %v36_v26  ;;  %v686_v11 = vld [vmem:[%s8649_s1 + $0x28] sm:$0xff]  ;;  %v687_v13 = vld [vmem:[%s8649_s1 + $0x30] sm:$0xff]  ;;  %v688_v15 = vld [vmem:[%s8649_s1 + $0x38] sm:$0xff] }
  0x1a   :  { %v61_v12 = vld [vmem:[%s8647_s0 + $0x108] sm:$0xff]  ;;  %v62_v14 = vld [vmem:[%s8647_s0 + $0x110] sm:$0xff]  ;;  %v63_v16 = vld [vmem:[%s8647_s0 + $0x118] sm:$0xff] }
  0x1c   :  { %5465 = vmatmul.mubr.msk.f32.gmra.mrb[8].mxu1 %vm103_vm0, %v73_v27  ;;  %5411 = vmatmul.mubr.msk.f32.gmra.mrb[8].mxu0 %vm103_vm0, %v37_v28 }
  0x1d   :  { %5467 = vmatprep.mubr.msk.f32.mxu1 %vm103_vm0, %v74_v29  ;;  %5413 = vmatprep.mubr.msk.f32.mxu0 %vm103_vm0, %v38_v30 }
  0x20   :  { %5468 = vmatmul.mubr.msk.f32.gmra.mrb[10].mxu1 %vm103_vm0, %v75_v31  ;;  %5414 = vmatmul.mubr.msk.f32.gmra.mrb[10].mxu0 %vm103_vm0, %v39_v32 }
  0x21   :  { %5470 = vmatprep.mubr.msk.f32.mxu1 %vm103_vm0, %v76_v33  ;;  %5416 = vmatprep.mubr.msk.f32.mxu0 %vm103_vm0, %v40_v34 }
  0x24   :  { %5471 = vmatmul.mubr.msk.f32.gmra.mrb[12].mxu1 %vm103_vm0, %v77_v35  ;;  %5417 = vmatmul.mubr.msk.f32.gmra.mrb[12].mxu0 %vm103_vm0, %v41_v36 }
  0x25   :  { %5473 = vmatprep.mubr.msk.f32.mxu1 %vm103_vm0, %v78_v37  ;;  %5419 = vmatprep.mubr.msk.f32.mxu0 %vm103_vm0, %v42_v38 }
  0x28   :  { %5474 = vmatmul.mubr.msk.f32.gmra.mrb[14].mxu1 %vm103_vm0, %v79_v39  ;;  %5420 = vmatmul.mubr.msk.f32.gmra.mrb[14].mxu0 %vm103_vm0, %v43_v40 }
  0x29   :  { %5476 = vmatprep.mubr.msk.f32.mxu1 %vm103_vm0, %v80_v41  ;;  %5422 = vmatprep.mubr.msk.f32.mxu0 %vm103_vm0, %v44_v42 }
  0x2c   :  { %5477 = vmatmul.mubr.msk.f32.gmra.mrb[16].mxu1 %vm103_vm0, %v81_v43  ;;  %5423 = vmatmul.mubr.msk.f32.gmra.mrb[16].mxu0 %vm103_vm0, %v45_v44 }
  0x2d   :  { %5479 = vmatprep.mubr.msk.f32.mxu1 %vm103_vm0, %v82_v45  ;;  %5425 = vmatprep.mubr.msk.f32.mxu0 %vm103_vm0, %v46_v46 }
  0x30   :  { %5480 = vmatmul.mubr.msk.f32.gmra.mrb[18].mxu1 %vm103_vm0, %v83_v47  ;;  %5426 = vmatmul.mubr.msk.f32.gmra.mrb[18].mxu0 %vm103_vm0, %v47_v48 }
  0x31   :  { %5482 = vmatprep.mubr.msk.f32.mxu1 %vm103_vm0, %v84_v49  ;;  %5428 = vmatprep.mubr.msk.f32.mxu0 %vm103_vm0, %v48_v50 }
  0x34   :  { %5483 = vmatmul.mubr.msk.f32.gmra.mrb[20].mxu1 %vm103_vm0, %v85_v51  ;;  %5429 = vmatmul.mubr.msk.f32.gmra.mrb[20].mxu0 %vm103_vm0, %v49_v52 }
  0x35   :  { %5485 = vmatprep.mubr.msk.f32.mxu1 %vm103_vm0, %v86_v53  ;;  %5431 = vmatprep.mubr.msk.f32.mxu0 %vm103_vm0, %v50_v54 }
  0x38   :  { %5486 = vmatmul.mubr.msk.f32.gmra.mrb[22].mxu1 %vm103_vm0, %v87_v55  ;;  %5432 = vmatmul.mubr.msk.f32.gmra.mrb[22].mxu0 %vm103_vm0, %v51_v56 }
  0x39   :  { %5488 = vmatprep.mubr.msk.f32.mxu1 %vm103_vm0, %v88_v57  ;;  %5434 = vmatprep.mubr.msk.f32.mxu0 %vm103_vm0, %v52_v58 }
  0x3c   :  { %5489 = vmatmul.mubr.msk.f32.gmra.mrb[24].mxu1 %vm103_vm0, %v89_v59  ;;  %5435 = vmatmul.mubr.msk.f32.gmra.mrb[24].mxu0 %vm103_vm0, %v53_v60 }
  0x3d   :  { %5491 = vmatprep.mubr.msk.f32.mxu1 %vm103_vm0, %v90_v61  ;;  %5437 = vmatprep.mubr.msk.f32.mxu0 %vm103_vm0, %v54_v62 }
  0x40   :  { %5492 = vmatmul.mubr.msk.f32.gmra.mrb[26].mxu1 %vm103_vm0, %v91_v63  ;;  %5438 = vmatmul.mubr.msk.f32.gmra.mrb[26].mxu0 %vm103_vm0, %v55_v0 }
  0x41   :  { %5498 = vmatprep.mubr.msk.f32.mxu1 %vm698_vm1, %v681_v1  ;;  %5440 = vmatprep.mubr.msk.f32.mxu0 %vm103_vm0, %v56_v2 }
  0x44   :  { %5499 = vmatmul.mubr.msk.f32.vlgmr.msra.gmra.mrb[28].mxu1 %vm698_vm1, %v682_v3  ;;  %5441 = vmatmul.mubr.msk.f32.gmra.mrb[28].mxu0 %vm103_vm0, %v57_v4 }
  0x45   :  { %5501 = vmatprep.mubr.msk.f32.mxu1 %vm698_vm1, %v683_v5  ;;  %5443 = vmatprep.mubr.msk.f32.mxu0 %vm103_vm0, %v58_v6 }
  0x48   :  { %5502 = vmatmul.mubr.msk.f32.gmra.mrb[30].mxu1 %vm698_vm1, %v684_v7  ;;  %5444 = vmatmul.mubr.msk.f32.gmra.mrb[30].mxu0 %vm103_vm0, %v59_v8 }
  0x49   :  { %5504 = vmatprep.mubr.msk.f32.mxu1 %vm698_vm1, %v685_v9  ;;  %5446 = vmatprep.mubr.msk.f32.mxu0 %vm103_vm0, %v60_v10 }
  0x4c   :  { %5505 = vmatmul.mubr.msk.f32.gmra.mrb[32].mxu1 %vm698_vm1, %v686_v11  ;;  %5447 = vmatmul.mubr.msk.f32.gmra.mrb[32].mxu0 %vm103_vm0, %v61_v12 }
  0x4d   :  { %5507 = vmatprep.mubr.msk.f32.mxu1 %vm698_vm1, %v687_v13  ;;  %5449 = vmatprep.mubr.msk.f32.mxu0 %vm103_vm0, %v62_v14 }
  0x50   :  { %5508 = vmatmul.mubr.msk.f32.gmra.mrb[34].mxu1 %vm698_vm1, %v688_v15  ;;  %5450 = vmatmul.mubr.msk.f32.gmra.mrb[34].mxu0 %vm103_vm0, %v63_v16 }
  0xdf   :  { %v6269_v17 = vpop.f32.mrb[0].mxu1  ;;  %v6271_v18 = vpop.f32.mrb[0].mxu0 }
  0xe0   :  { %8780 = vst [vmem:[#allocation2_spill] sm:$0xff] %v6269_v17  ;;  %v6273_v19 = vpop.f32.mrb[1].mxu1  ;;  %v6275_v20 = vpop.f32.mrb[1].mxu0 }
  0xe1   :  { %8781 = vst [vmem:[#allocation3_spill] sm:$0xff] %v6273_v19 }
  0xe3   :  { %v6277_v21 = vpop.f32.mrb[2].mxu1  ;;  %v6279_v22 = vpop.f32.mrb[2].mxu0 }
  0xe4   :  { %8782 = vst [vmem:[#allocation4_spill] sm:$0xff] %v6277_v21  ;;  %v6281_v23 = vpop.f32.mrb[3].mxu1  ;;  %v6283_v24 = vpop.f32.mrb[3].mxu0 }
  0xe5   :  { %8783 = vst [vmem:[#allocation5_spill] sm:$0xff] %v6281_v23 }
  0xe7   :  { %v6285_v25 = vpop.f32.mrb[4].mxu1  ;;  %v6287_v26 = vpop.f32.mrb[4].mxu0 }
  0xe8   :  { %v6289_v27 = vpop.f32.mrb[5].mxu1  ;;  %v6291_v28 = vpop.f32.mrb[5].mxu0 }
  0xeb   :  { %v6293_v29 = vpop.f32.mrb[6].mxu1  ;;  %v6295_v30 = vpop.f32.mrb[6].mxu0 }
  0xec   :  { %v6297_v31 = vpop.f32.mrb[7].mxu1  ;;  %v6299_v32 = vpop.f32.mrb[7].mxu0 }
  0xed   :  { %8784 = vst [vmem:[#allocation6_spill] sm:$0xff] %v6297_v31 }
  0xef   :  { %v6301_v33 = vpop.f32.mrb[8].mxu1  ;;  %v6303_v34 = vpop.f32.mrb[8].mxu0 }
  0xf0   :  { %8785 = vst [vmem:[#allocation7_spill] sm:$0xff] %v6301_v33  ;;  %v6305_v35 = vpop.f32.mrb[9].mxu1  ;;  %v6307_v36 = vpop.f32.mrb[9].mxu0 }
  0xf1   :  { %8786 = vst [vmem:[#allocation8_spill] sm:$0xff] %v6305_v35 }
  0xf3   :  { %v6309_v37 = vpop.f32.mrb[10].mxu1  ;;  %v6311_v38 = vpop.f32.mrb[10].mxu0 }
  0xf4   :  { %8787 = vst [vmem:[#allocation9_spill] sm:$0xff] %v6309_v37  ;;  %v6313_v39 = vpop.f32.mrb[11].mxu1  ;;  %v6315_v40 = vpop.f32.mrb[11].mxu0 }
  0xf5   :  { %8788 = vst [vmem:[#allocation10_spill] sm:$0xff] %v6313_v39 }
  0xf7   :  { %v6317_v41 = vpop.f32.mrb[12].mxu1  ;;  %v6319_v42 = vpop.f32.mrb[12].mxu0 }
  0xf8   :  { %8789 = vst [vmem:[#allocation11_spill] sm:$0xff] %v6317_v41  ;;  %v6321_v43 = vpop.f32.mrb[13].mxu1  ;;  %v6323_v44 = vpop.f32.mrb[13].mxu0  ;;  %v6409_v41 = vld [vmem:[%s8650_s5] ss:$0 sm:$0xff] }
  0xf9   :  { %8790 = vst [vmem:[#allocation12_spill] sm:$0xff] %v6321_v43 }
  0xfb   :  { %v6325_v45 = vpop.f32.mrb[14].mxu1  ;;  %v6327_v46 = vpop.f32.mrb[14].mxu0 }
  0xfc   :  { %8791 = vst [vmem:[#allocation13_spill] sm:$0xff] %v6325_v45  ;;  %v6329_v47 = vpop.f32.mrb[15].mxu1  ;;  %v6331_v48 = vpop.f32.mrb[15].mxu0  ;;  %v8655_v45 = vlaneseq }
  0xfd   :  { %8792 = vst [vmem:[#allocation14_spill] sm:$0xff] %v6329_v47 }
  0xfe   :  { %v6404_v43 = vshrl.u32 %v8655_v45, 7 }
  0xff   :  { %v6333_v49 = vpop.f32.mrb[16].mxu1  ;;  %v6335_v50 = vpop.f32.mrb[16].mxu0 }
 0x100   :  { %8793 = vst [vmem:[#allocation15_spill] sm:$0xff] %v6333_v49  ;;  %v6337_v51 = vpop.f32.mrb[17].mxu1  ;;  %v6339_v52 = vpop.f32.mrb[17].mxu0  ;;  %v5916_v49 = vmov 1966171168   ;;  %8807 = vst [vmem:[#allocation29_spill] sm:$0xff] %v6404_v43 }
 0x101   :  { %8794 = vst [vmem:[#allocation16_spill] sm:$0xff] %v6337_v51  ;;  %v838_v51 = vunpack.c.l.s4 %v5916_v49 }
 0x103   :  { %v6341_v53 = vpop.f32.mrb[18].mxu1  ;;  %v6343_v54 = vpop.f32.mrb[18].mxu0 }
 0x104   :  { %8795 = vst [vmem:[#allocation17_spill] sm:$0xff] %v6341_v53  ;;  %v6345_v55 = vpop.f32.mrb[19].mxu1  ;;  %v6347_v56 = vpop.f32.mrb[19].mxu0 }
 0x105   :  { %8796 = vst [vmem:[#allocation18_spill] sm:$0xff] %v6345_v55 }
 0x107   :  { %v6349_v57 = vpop.f32.mrb[20].mxu1  ;;  %v6351_v58 = vpop.f32.mrb[20].mxu0 }
 0x108   :  { %8797 = vst [vmem:[#allocation19_spill] sm:$0xff] %v6349_v57  ;;  %v6353_v59 = vpop.f32.mrb[21].mxu1  ;;  %v6355_v60 = vpop.f32.mrb[21].mxu0 }
 0x109   :  { %8798 = vst [vmem:[#allocation20_spill] sm:$0xff] %v6353_v59 }
 0x10b   :  { %v6357_v61 = vpop.f32.mrb[22].mxu1  ;;  %v6359_v62 = vpop.f32.mrb[22].mxu0 }
 0x10c   :  { %8799 = vst [vmem:[#allocation21_spill] sm:$0xff] %v6357_v61  ;;  %v6361_v63 = vpop.f32.mrb[23].mxu1  ;;  %v6363_v0 = vpop.f32.mrb[23].mxu0 }
 0x10d   :  { %8800 = vst [vmem:[#allocation22_spill] sm:$0xff] %v6361_v63  ;;  %v839_v63 = vunpack.c.0.s8 %v838_v51 }
 0x10f   :  { %v6365_v1 = vpop.f32.mrb[24].mxu1  ;;  %v6367_v2 = vpop.f32.mrb[24].mxu0  ;;  %v6413_v49 = vsub.s32 %v839_v63, %v6404_v43 }
 0x110   :  { %8801 = vst [vmem:[#allocation23_spill] sm:$0xff] %v6365_v1  ;;  %v6369_v3 = vpop.f32.mrb[25].mxu1  ;;  %v6371_v4 = vpop.f32.mrb[25].mxu0 }
 0x111   :  { %8802 = vst [vmem:[#allocation24_spill] sm:$0xff] %v6369_v3 }
 0x113   :  { %v6373_v5 = vpop.f32.mrb[26].mxu1  ;;  %v6375_v6 = vpop.f32.mrb[26].mxu0 }
 0x114   :  { %8803 = vst [vmem:[#allocation25_spill] sm:$0xff] %v6373_v5  ;;  %v6377_v7 = vpop.f32.mrb[27].mxu1  ;;  %v6379_v8 = vpop.f32.mrb[27].mxu0 }
 0x115   :  { %8804 = vst [vmem:[#allocation26_spill] sm:$0xff] %v6377_v7 }
 0x117   :  { %v5500_v9 = vpop.f32.mrb[28].mxu1  ;;  %v6381_v10 = vpop.f32.mrb[28].mxu0 }
 0x118   :  { %v789_v11 = vpop.f32.mrb[29].mxu1  ;;  %v6383_v12 = vpop.f32.mrb[29].mxu0  ;;  %v795_v23 = vadd.f32 %v5500_v9, %v6409_v41  ;;  %v6425_v9 = vsub.s32 0, %v6404_v43 }
 0x119   :  { %v790_v51 = vadd.f32 %v6409_v41, %v789_v11 }
 0x11a   :  { %v892_v21 = vrot.slane %v795_v23, %v6413_v49  ;;  %v885_v63 = vcombine.high %v795_v23, %v795_v23 }
 0x11b   :  { %v6385_v13 = vpop.f32.mrb[30].mxu1  ;;  %v6387_v14 = vpop.f32.mrb[30].mxu0  ;;  %v843_v45 = vrot.slane %v790_v51, %v6413_v49 }
 0x11c   :  { %v6389_v15 = vpop.f32.mrb[31].mxu1  ;;  %v6391_v16 = vpop.f32.mrb[31].mxu0  ;;  %v900_v59 = vcombine.high %v892_v21, %v892_v21  ;;  %v908_v39 = vrot.slane %v892_v21, %v6413_v49 }
 0x11d   :  { %v859_v17 = vrot.slane %v843_v45, %v6413_v49 }
 0x11e   :  { %v922_v37 = vrot.slane %v900_v59, %v6413_v49  ;;  %v1263_v23 = vrot.slane %v908_v39, %v6425_v9 }
 0x11f   :  { %v6393_v53 = vpop.f32.mrb[32].mxu1  ;;  %v6395_v55 = vpop.f32.mrb[32].mxu0  ;;  %v881_v21 = vcombine.high %v859_v17, %v859_v17 }
 0x120   :  { %v809_v5 = vpop.f32.mrb[33].mxu1  ;;  %v6397_v7 = vpop.f32.mrb[33].mxu0  ;;  %v1267_v11 = vrot.slane %v922_v37, %v6425_v9 }
 0x121   :  { %v6417_v57 = vadd.f32 %v6409_v41, %v809_v5  ;;  %v6433_v5 = vld [vmem:[%s8651_s4] ss:$0 sm:$0xff] }
 0x122   :  { %v6447_v43 = vadd.f32 %v6303_v34, %v6433_v5  ;;  %v6459_v34 = vadd.f32 %v6433_v5, %v6283_v24 }
 0x123   :  { %v5509_v47 = vpop.f32.mrb[34].mxu1  ;;  %v6399_v3 = vpop.f32.mrb[34].mxu0 }
 0x124   :  { %8805 = vst [vmem:[#allocation27_spill] sm:$0xff] %v6399_v3  ;;  %v819_v1 = vpop.f32.mrb[35].mxu1  ;;  %v6401_v61 = vpop.f32.mrb[35].mxu0  ;;  %v6428_v19 = vadd.f32 %v5509_v47, %v6409_v41  ;;  %v6441_v3 = vadd.f32 %v6433_v5, %v6307_v36  ;;  %v899_v47 = vrot.slane %v885_v63, %v6413_v49  ;;  %8811 = vst [vmem:[#allocation33_spill] sm:$0xff] %v6447_v43 }
 0x125   :  { %8806 = vst [vmem:[#allocation28_spill] sm:$0xff] %v6401_v61  ;;  %v6437_v59 = vadd.f32 %v6409_v41, %v819_v1  ;;  %v836_v61 = vcombine.high %v790_v51, %v790_v51  ;;  %v1557_v35 = vadd.f32 %v1267_v11, %v6447_v43  ;;  %v851_v1 = vcombine.high %v843_v45, %v843_v45 }
 0x126   :  { %8808 = vst [vmem:[#allocation30_spill] sm:$0xff] %v6428_v19  ;;  %8810 = vst [vmem:[#allocation32_spill] sm:$0xff] %v6441_v3  ;;  %v1231_v19 = vrot.slane %v859_v17, %v6425_v9  ;;  %v1556_v33 = vadd.f32 %v1263_v23, %v6441_v3  ;;  %v6455_v36 = vadd.f32 %v6433_v5, %v6275_v20 }
 0x127   :  { %8809 = vst [vmem:[#allocation31_spill] sm:$0xff] %v6437_v59  ;;  %v1239_v59 = vrot.slane %v881_v21, %v6425_v9  ;;  %v901_v31 = vcombine.high %v899_v47, %v899_v47  ;;  %v930_v63 = vcombine.high %v908_v39, %v908_v39  ;;  %8813 = vst [vmem:[#allocation35_spill] sm:$0xff] %v6459_v34  ;;  %5530 = vtanh.f32 %v1557_v35 }
 0x128   :  { %8812 = vst [vmem:[#allocation34_spill] sm:$0xff] %v6455_v36  ;;  %v932_v51 = vcombine.high %v922_v37, %v922_v37  ;;  %v850_v17 = vrot.slane %v836_v61, %v6413_v49  ;;  %v1548_v11 = vadd.f32 %v1231_v19, %v6455_v36  ;;  %v873_v45 = vrot.slane %v851_v1, %v6413_v49 }
 0x129   :  { %v1550_v21 = vadd.f32 %v1239_v59, %v6459_v34  ;;  %5532 = vtanh.f32 %v1556_v33  ;;  %v915_v20 = vrot.slane %v899_v47, %v6413_v49  ;;  %v6468_v39 = vadd.f32 %v6433_v5, %v6315_v40 }
 0x12a   :  { %v1271_v24 = vrot.slane %v930_v63, %v6425_v9  ;;  %v929_v37 = vrot.slane %v901_v31, %v6413_v49  ;;  %v6474_v61 = vadd.f32 %v6311_v38, %v6433_v5  ;;  %v1275_v19 = vrot.slane %v932_v51, %v6425_v9 }
 0x12b   :  { %8814 = vst [vmem:[#allocation36_spill] sm:$0xff] %v6468_v39  ;;  %5534 = vtanh.f32 %v1548_v11  ;;  %v6479_v33 = vadd.f32 %v6433_v5, %v6323_v44  ;;  %v852_v35 = vcombine.high %v850_v17, %v850_v17  ;;  %v883_v59 = vcombine.high %v873_v45, %v873_v45 }
 0x12c   :  { %8815 = vst [vmem:[#allocation37_spill] sm:$0xff] %v6474_v61  ;;  %5536 = vtanh.f32 %v1550_v21  ;;  %v1279_v40 = vrot.slane %v915_v20, %v6425_v9  ;;  %v1558_v23 = vadd.f32 %v1271_v24, %v6468_v39  ;;  %v6485_v31 = vadd.f32 %v6319_v42, %v6433_v5 }
 0x12d   :  { %8816 = vst [vmem:[#allocation38_spill] sm:$0xff] %v6479_v33  ;;  %v1283_v38 = vrot.slane %v929_v37, %v6425_v9  ;;  %v6489_v47 = vrot.slane %v850_v17, %v6413_v49  ;;  %v1559_v1 = vadd.f32 %v1275_v19, %v6474_v61  ;;  %v1235_v44 = vrot.slane %v873_v45, %v6425_v9 }
 0x12e   :  { %8817 = vst [vmem:[#allocation39_spill] sm:$0xff] %v6485_v31  ;;  %v6495_v63 = vadd.f32 %v6271_v18, %v6433_v5  ;;  %v1243_v51 = vrot.slane %v883_v59, %v6425_v9  ;;  %v880_v11 = vrot.slane %v852_v35, %v6413_v49  ;;  %v1560_v42 = vadd.f32 %v1279_v40, %v6479_v33 }
 0x12f   :  { %v6502_v24 = vadd.f32 %v6279_v22, %v6433_v5  ;;  %v805_v17 = vadd.f32 %v6385_v13, %v6409_v41  ;;  %5538 = vtanh.f32 %v1558_v23  ;;  %v1561_v45 = vadd.f32 %v1283_v38, %v6485_v31  ;;  %v6520_v22 = vld [vmem:[%s8652_s6] ss:$0 sm:$0xff] }
 0x130   :  { %8818 = vst [vmem:[#allocation40_spill] sm:$0xff] %v6495_v63  ;;  %v6509_v18 = vadd.f32 %v6287_v26, %v6433_v5  ;;  %v1247_v35 = vrot.slane %v6489_v47, %v6425_v9  ;;  %5540 = vtanh.f32 %v1559_v1  ;;  %v6515_v59 = vadd.f32 %v6409_v41, %v6389_v15 }
 0x131   :  { %v5531_v21 = vpop.eup %5530  ;;  %8819 = vst [vmem:[#allocation41_spill] sm:$0xff] %v6502_v24  ;;  %v6524_v13 = vadd.f32 %v6433_v5, %v6291_v28  ;;  %v1549_v26 = vadd.f32 %v1235_v44, %v6495_v63  ;;  %v6529_v40 = vadd.f32 %v6327_v46, %v6433_v5  ;;  %v931_v23 = vcombine.high %v915_v20, %v915_v20 }
 0x132   :  { %8820 = vst [vmem:[#allocation42_spill] sm:$0xff] %v6509_v18  ;;  %v1551_v38 = vadd.f32 %v1243_v51, %v6502_v24  ;;  %v1251_v15 = vrot.slane %v880_v11, %v6425_v9  ;;  %5542 = vtanh.f32 %v1560_v42  ;;  %v933_v1 = vcombine.high %v929_v37, %v929_v37 }
 0x133   :  { %v5533_v19 = vpop.eup %5532  ;;  %8821 = vst [vmem:[#allocation43_spill] sm:$0xff] %v6524_v13  ;;  %8822 = vst [vmem:[#allocation44_spill] sm:$0xff] %v6529_v40  ;;  %v990_v36 = vrot.slane %v805_v17, %v6413_v49  ;;  %5544 = vtanh.f32 %v1561_v45  ;;  %v1692_v33 = vmul.f32 %v5531_v21, %v6520_v22  ;;  %v1552_v63 = vadd.f32 %v1247_v35, %v6524_v13 }
 0x134   :  { %v1691_v28 = vmul.f32 %v5533_v19, %v6520_v22  ;;  %v882_v46 = vcombine.high %v6489_v47, %v6489_v47  ;;  %v941_v20 = vrot.slane %v6515_v59, %v6413_v49  ;;  %v6543_v37 = vadd.f32 %v6433_v5, %v6331_v48 }
 0x135   :  { %v5535_v34 = vpop.eup %5534  ;;  %5546 = vtanh.f32 %v1549_v26  ;;  %v1287_v51 = vrot.slane %v931_v23, %v6425_v9  ;;  %v1774_v21 = vsel %vm103_vm0, %v1692_v33, 0.0  ;;  %v884_v45 = vcombine.high %v880_v11, %v880_v11 }
 0x136   :  { %v5537_v44 = vpop.eup %5536  ;;  %8823 = vst [vmem:[#allocation45_spill] sm:$0xff] %v6543_v37  ;;  %v1771_v42 = vsel %vm103_vm0, %v1691_v28, 0.0  ;;  %v1553_v19 = vadd.f32 %v1251_v15, %v6509_v18  ;;  %v1291_v35 = vrot.slane %v933_v1, %v6425_v9  ;;  %1775 = vadd.xlane.f32.xlu1 %v1774_v21  ;;  %5548 = vtanh.f32 %v1551_v38 }
 0x137   :  { %1772 = vadd.xlane.f32.xlu0 %v1771_v42  ;;  %v998_v47 = vcombine.high %v990_v36, %v990_v36  ;;  %v1683_v13 = vmul.f32 %v5535_v34, %v6520_v22  ;;  %v1685_v48 = vmul.f32 %v5537_v44, %v6520_v22  ;;  %v6554_v26 = vadd.f32 %v6295_v30, %v6433_v5 }
 0x138   :  { %v983_v23 = vcombine.high %v805_v17, %v805_v17  ;;  %v6557_v33 = vrot.slane %v990_v36, %v6413_v49  ;;  %v949_v11 = vcombine.high %v941_v20, %v941_v20  ;;  %5550 = vtanh.f32 %v1552_v63 }
 0x139   :  { %8824 = vst [vmem:[#allocation46_spill] sm:$0xff] %v6554_v26  ;;  %v5539_v15 = vpop.eup %5538  ;;  %v6561_v1 = vadd.f32 %v6433_v5, %v6299_v32  ;;  %v1562_v38 = vadd.f32 %v1287_v51, %v6543_v37  ;;  %v1747_v34 = vsel %vm103_vm0, %v1683_v13, 0.0  ;;  %5552 = vtanh.f32 %v1553_v19 }
 0x13a   :  { %v5541_v28 = vpop.eup %5540  ;;  %v1563_v30 = vadd.f32 %v1291_v35, %v6529_v40  ;;  %v1753_v17 = vsel %vm103_vm0, %v1685_v48, 0.0  ;;  %v6569_v36 = vadd.f32 %v6367_v2, %v6433_v5  ;;  %v1259_v63 = vrot.slane %v884_v45, %v6425_v9 }
 0x13b   :  { %8825 = vst [vmem:[#allocation47_spill] sm:$0xff] %v6561_v1  ;;  %1748 = vadd.xlane.f32.xlu0 %v1747_v34  ;;  %v1255_v32 = vrot.slane %v882_v46, %v6425_v9  ;;  %1754 = vadd.xlane.f32.xlu1 %v1753_v17  ;;  %v1020_v44 = vrot.slane %v998_v47, %v6413_v49  ;;  %5554 = vtanh.f32 %v1562_v38 }
 0x13c   :  { %8826 = vst [vmem:[#allocation48_spill] sm:$0xff] %v6569_v36  ;;  %v6576_v13 = vadd.f32 %v6433_v5, %v6371_v4  ;;  %v5543_v51 = vpop.eup %5542  ;;  %v997_v42 = vrot.slane %v983_v23, %v6413_v49  ;;  %v6580_v21 = vrot.slane %v949_v11, %v6413_v49  ;;  %v1693_v2 = vmul.f32 %v5539_v15, %v6520_v22 }
 0x13d   :  { %v1327_v45 = vrot.slane %v6557_v33, %v6425_v9  ;;  %v5545_v19 = vpop.eup %5544  ;;  %v6586_v46 = vrot.slane %v941_v20, %v6413_v49  ;;  %v1331_v35 = vrot.slane %v1020_v44, %v6425_v9  ;;  %v1694_v4 = vmul.f32 %v5541_v28, %v6520_v22 }
 0x13e   :  { %8827 = vst [vmem:[#allocation49_spill] sm:$0xff] %v6576_v13  ;;  %5556 = vtanh.f32 %v1563_v30  ;;  %v6592_v47 = vadd.f32 %v6335_v50, %v6433_v5  ;;  %v6596_v48 = vadd.f32 %v6433_v5, %v6339_v52  ;;  %v1777_v23 = vsel %vm103_vm0, %v1693_v2, 0.0 }
 0x13f   :  { %v5547_v11 = vpop.eup %5546  ;;  %v1573_v20 = vadd.f32 %v1331_v35, %v6569_v36  ;;  %1778 = vadd.xlane.f32.xlu0 %v1777_v23  ;;  %v1572_v15 = vadd.f32 %v1327_v45, %v6576_v13  ;;  %v1780_v38 = vsel %vm103_vm0, %v1694_v4, 0.0  ;;  %v1695_v34 = vmul.f32 %v5543_v51, %v6520_v22 }
 0x140   :  { %8828 = vst [vmem:[#allocation50_spill] sm:$0xff] %v6592_v47  ;;  %8829 = vst [vmem:[#allocation51_spill] sm:$0xff] %v6596_v48  ;;  %v1555_v28 = vadd.f32 %v1259_v63, %v6554_v26  ;;  %v934_v50 = vcombine.high %v6515_v59, %v6515_v59  ;;  %v1299_v52 = vrot.slane %v6580_v21, %v6425_v9  ;;  %1781 = vadd.xlane.f32.xlu1 %v1780_v38  ;;  %v5549_v17 = vpop.eup %5548 }
 0x141   :  { %v1696_v30 = vmul.f32 %v5545_v19, %v6520_v22  ;;  %v1554_v2 = vadd.f32 %v1255_v32, %v6561_v1  ;;  %v999_v35 = vcombine.high %v997_v42, %v997_v42  ;;  %v1295_v45 = vrot.slane %v6586_v46, %v6425_v9 }
 0x142   :  { %v1028_v51 = vcombine.high %v6557_v33, %v6557_v33  ;;  %5558 = vtanh.f32 %v1573_v20  ;;  %v1783_v63 = vsel %vm103_vm0, %v1695_v34, 0.0  ;;  %v1030_v59 = vcombine.high %v1020_v44, %v1020_v44  ;;  %v5551_v23 = vpop.eup %5550 }
 0x143   :  { %v1684_v4 = vmul.f32 %v5547_v11, %v6520_v22  ;;  %5560 = vtanh.f32 %v1572_v15  ;;  %1784 = vadd.xlane.f32.xlu0 %v1783_v63  ;;  %v1786_v19 = vsel %vm103_vm0, %v1696_v30, 0.0  ;;  %v6619_v32 = vadd.f32 %v6375_v6, %v6433_v5  ;;  %v5553_v33 = vpop.eup %5552 }
 0x144   :  { %v6623_v38 = vadd.f32 %v6433_v5, %v6379_v8  ;;  %5562 = vtanh.f32 %v1555_v28  ;;  %v948_v20 = vrot.slane %v934_v50, %v6413_v49  ;;  %v1565_v44 = vadd.f32 %v1299_v52, %v6592_v47  ;;  %1787 = vadd.xlane.f32.xlu1 %v1786_v19 }
 0x145   :  { %8830 = vst [vmem:[#allocation52_spill] sm:$0xff] %v6619_v32  ;;  %v1686_v11 = vmul.f32 %v5549_v17, %v6520_v22  ;;  %5564 = vtanh.f32 %v1554_v2  ;;  %v1564_v15 = vadd.f32 %v1295_v45, %v6596_v48  ;;  %v1335_v34 = vrot.slane %v1028_v51, %v6425_v9  ;;  %v5555_v52 = vpop.eup %5554 }
 0x146   :  { %8831 = vst [vmem:[#allocation53_spill] sm:$0xff] %v6623_v38  ;;  %v6631_v6 = vrot.slane %v997_v42, %v6413_v49  ;;  %v1339_v8 = vrot.slane %v1030_v59, %v6425_v9  ;;  %v1750_v30 = vsel %vm103_vm0, %v1684_v4, 0.0  ;;  %v6636_v28 = vrot.slane %v999_v35, %v6413_v49 }
 0x147   :  { %v1687_v50 = vmul.f32 %v5551_v23, %v6520_v22  ;;  %v6641_v17 = vadd.f32 %v6393_v53, %v6409_v41  ;;  %1751 = vadd.xlane.f32.xlu0 %v1750_v30  ;;  %v6645_v2 = vadd.f32 %v6381_v10, %v6433_v5  ;;  %v1756_v42 = vsel %vm103_vm0, %v1686_v11, 0.0 }
 0x148   :  { %v1688_v45 = vmul.f32 %v5553_v33, %v6520_v22  ;;  %v5557_v51 = vpop.eup %5556  ;;  %v950_v63 = vcombine.high %v948_v20, %v948_v20  ;;  %5566 = vtanh.f32 %v1565_v44  ;;  %v981_v35 = vcombine.high %v6580_v21, %v6580_v21  ;;  %1757 = vadd.xlane.f32.xlu1 %v1756_v42 }
 0x149   :  { %8832 = vst [vmem:[#allocation54_spill] sm:$0xff] %v6645_v2  ;;  %v979_v59 = vcombine.high %v6586_v46, %v6586_v46  ;;  %5568 = vtanh.f32 %v1564_v15  ;;  %v1574_v41 = vadd.f32 %v1335_v34, %v6623_v38  ;;  %v6656_v53 = vadd.f32 %v6433_v5, %v6383_v12 }
 0x14a   :  { %v1343_v10 = vrot.slane %v6631_v6, %v6425_v9  ;;  %v1575_v4 = vadd.f32 %v1339_v8, %v6619_v32  ;;  %v1347_v23 = vrot.slane %v6636_v28, %v6425_v9  ;;  %v1759_v21 = vsel %vm103_vm0, %v1687_v50, 0.0 }
 0x14b   :  { %8833 = vst [vmem:[#allocation55_spill] sm:$0xff] %v6656_v53  ;;  %v1697_v46 = vmul.f32 %v5555_v52, %v6520_v22  ;;  %v1088_v19 = vrot.slane %v6641_v17, %v6413_v49  ;;  %v6669_v33 = vadd.f32 %v6343_v54, %v6433_v5  ;;  %1760 = vadd.xlane.f32.xlu0 %v1759_v21  ;;  %v1762_v12 = vsel %vm103_vm0, %v1688_v45, 0.0 }
 0x14c   :  { %v1698_v44 = vmul.f32 %v5557_v51, %v6520_v22  ;;  %v5559_v11 = vpop.eup %5558  ;;  %v1307_v15 = vrot.slane %v981_v35, %v6425_v9  ;;  %v6676_v34 = vadd.f32 %v6433_v5, %v6347_v56  ;;  %v1303_v8 = vrot.slane %v979_v59, %v6425_v9  ;;  %1763 = vadd.xlane.f32.xlu1 %v1762_v12 }
 0x14d   :  { %8834 = vst [vmem:[#allocation56_spill] sm:$0xff] %v6669_v33  ;;  %v6680_v30 = vrot.slane %v950_v63, %v6413_v49  ;;  %v5561_v54 = vpop.eup %5560  ;;  %v6683_v50 = vrot.slane %v948_v20, %v6413_v49  ;;  %5570 = vtanh.f32 %v1574_v41  ;;  %v1576_v52 = vadd.f32 %v1343_v10, %v6656_v53 }
 0x14e   :  { %8835 = vst [vmem:[#allocation57_spill] sm:$0xff] %v6676_v34  ;;  %v1708_v42 = vmul.f32 %v5559_v11, %v6520_v22  ;;  %v5563_v45 = vpop.eup %5562  ;;  %5572 = vtanh.f32 %v1575_v4  ;;  %v1577_v56 = vadd.f32 %v1347_v23, %v6645_v2  ;;  %v1789_v51 = vsel %vm103_vm0, %v1697_v46, 0.0 }
 0x14f   :  { %v1707_v35 = vmul.f32 %v5561_v54, %v6520_v22  ;;  %v5565_v63 = vpop.eup %5564  ;;  %v1096_v59 = vcombine.high %v1088_v19, %v1088_v19  ;;  %v6692_v21 = vadd.f32 %v6351_v58, %v6433_v5  ;;  %v6696_v20 = vadd.f32 %v6433_v5, %v6355_v60  ;;  %1790 = vadd.xlane.f32.xlu0 %v1789_v51 }
 0x150   :  { %v1792_v41 = vsel %vm103_vm0, %v1698_v44, 0.0  ;;  %v1567_v10 = vadd.f32 %v1307_v15, %v6669_v33  ;;  %v1566_v4 = vadd.f32 %v1303_v8, %v6676_v34  ;;  %v1315_v23 = vrot.slane %v6680_v30, %v6425_v9 }
 0x151   :  { %8836 = vst [vmem:[#allocation58_spill] sm:$0xff] %v6692_v21  ;;  %8837 = vst [vmem:[#allocation59_spill] sm:$0xff] %v6696_v20  ;;  %1793 = vadd.xlane.f32.xlu1 %v1792_v41  ;;  %v1819_v46 = vsel %vm103_vm0, %v1707_v35, 0.0  ;;  %v1311_v58 = vrot.slane %v6683_v50, %v6425_v9  ;;  %5574 = vtanh.f32 %v1576_v52  ;;  %v1029_v60 = vcombine.high %v6631_v6, %v6631_v6 }
 0x152   :  { %v1822_v12 = vsel %vm103_vm0, %v1708_v42, 0.0  ;;  %v5567_v44 = vpop.eup %5566  ;;  %5576 = vtanh.f32 %v1577_v56  ;;  %v1031_v11 = vcombine.high %v6636_v28, %v6636_v28  ;;  %v1689_v15 = vmul.f32 %v5565_v63, %v6520_v22 }
 0x153   :  { %v5569_v8 = vpop.eup %5568  ;;  %v6713_v54 = vrot.slane %v1088_v19, %v6413_v49  ;;  %1820 = vadd.xlane.f32.xlu0 %v1819_v46  ;;  %v1690_v51 = vmul.f32 %v5563_v45, %v6520_v22  ;;  %v6717_v52 = vrot.slane %v1096_v59, %v6413_v49  ;;  %v1039_v6 = vrot.slane %v6417_v57, %v6413_v49 }
 0x154   :  { %5578 = vtanh.f32 %v1567_v10  ;;  %v1569_v42 = vadd.f32 %v1315_v23, %v6692_v21  ;;  %v1568_v28 = vadd.f32 %v1311_v58, %v6696_v20  ;;  %v6725_v19 = vadd.f32 %v6433_v5, %v6391_v16 }
 0x155   :  { %1823 = vadd.xlane.f32.xlu1 %v1822_v12  ;;  %5580 = vtanh.f32 %v1566_v4  ;;  %v1351_v56 = vrot.slane %v1029_v60, %v6425_v9  ;;  %v6730_v45 = vadd.f32 %v6387_v14, %v6433_v5  ;;  %v1355_v35 = vrot.slane %v1031_v11, %v6425_v9 }
 0x156   :  { %8838 = vst [vmem:[#allocation60_spill] sm:$0xff] %v6725_v19  ;;  %v1765_v63 = vsel %vm103_vm0, %v1689_v15, 0.0  ;;  %v1699_v59 = vmul.f32 %v5569_v8, %v6520_v22  ;;  %v6737_v10 = vadd.f32 %v6285_v25, %v6433_v5  ;;  %v1391_v16 = vrot.slane %v6713_v54, %v6425_v9 }
 0x157   :  { %8839 = vst [vmem:[#allocation61_spill] sm:$0xff] %v6730_v45  ;;  %v5571_v41 = vpop.eup %5570  ;;  %1766 = vadd.xlane.f32.xlu0 %v1765_v63  ;;  %v1768_v4 = vsel %vm103_vm0, %v1690_v51, 0.0  ;;  %v1700_v14 = vmul.f32 %v5567_v44, %v6520_v22  ;;  %v6745_v46 = vadd.f32 %v6433_v5, %v6289_v27  ;;  %v1081_v58 = vcombine.high %v6641_v17, %v6641_v17 }
 0x158   :  { %8840 = vst [vmem:[#allocation62_spill] sm:$0xff] %v6737_v10  ;;  %v5573_v23 = vpop.eup %5572  ;;  %v1395_v25 = vrot.slane %v6717_v52, %v6425_v9  ;;  %v1047_v60 = vcombine.high %v1039_v6, %v1039_v6  ;;  %5582 = vtanh.f32 %v1568_v28  ;;  %v982_v12 = vcombine.high %v6680_v30, %v6680_v30 }
 0x159   :  { %8841 = vst [vmem:[#allocation63_spill] sm:$0xff] %v6745_v46  ;;  %1769 = vadd.xlane.f32.xlu1 %v1768_v4  ;;  %v980_v44 = vcombine.high %v6683_v50, %v6683_v50  ;;  %v1578_v11 = vadd.f32 %v1351_v56, %v6725_v19  ;;  %5584 = vtanh.f32 %v1569_v42  ;;  %v1579_v27 = vadd.f32 %v1355_v35, %v6730_v45 }
 0x15a   :  { %v1795_v15 = vsel %vm103_vm0, %v1699_v59, 0.0  ;;  %v1709_v17 = vmul.f32 %v5571_v41, %v6520_v22  ;;  %v1588_v51 = vadd.f32 %v1391_v16, %v6745_v46  ;;  %v1798_v28 = vsel %vm103_vm0, %v1700_v14, 0.0 }
 0x15b   :  { %v5575_v8 = vpop.eup %5574  ;;  %1796 = vadd.xlane.f32.xlu0 %v1795_v15  ;;  %v1710_v30 = vmul.f32 %v5573_v23, %v6520_v22  ;;  %v1095_v50 = vrot.slane %v1081_v58, %v6413_v49  ;;  %v1589_v56 = vadd.f32 %v1395_v25, %v6737_v10  ;;  %v6766_v42 = vadd.f32 %v6359_v62, %v6433_v5 }
 0x15c   :  { %v5577_v63 = vpop.eup %5576  ;;  %v6770_v35 = vadd.f32 %v6433_v5, %v6363_v0  ;;  %v6773_v59 = vrot.slane %v1039_v6, %v6413_v49  ;;  %v1323_v41 = vrot.slane %v982_v12, %v6425_v9  ;;  %v1319_v16 = vrot.slane %v980_v44, %v6425_v9 }
 0x15d   :  { %8842 = vst [vmem:[#allocation64_spill] sm:$0xff] %v6766_v42  ;;  %1799 = vadd.xlane.f32.xlu1 %v1798_v28  ;;  %5586 = vtanh.f32 %v1578_v11  ;;  %v1825_v14 = vsel %vm103_vm0, %v1709_v17, 0.0  ;;  %v1711_v62 = vmul.f32 %v5575_v8, %v6520_v22  ;;  %v6780_v23 = vrot.slane %v1047_v60, %v6413_v49 }
 0x15e   :  { %8843 = vst [vmem:[#allocation65_spill] sm:$0xff] %v6770_v35  ;;  %v5579_v4 = vpop.eup %5578  ;;  %5588 = vtanh.f32 %v1579_v27  ;;  %v1126_v58 = vcombine.high %v6713_v54, %v6713_v54  ;;  %v1828_v6 = vsel %vm103_vm0, %v1710_v30, 0.0  ;;  %v1712_v25 = vmul.f32 %v5577_v63, %v6520_v22 }
 0x15f   :  { %v5581_v0 = vpop.eup %5580  ;;  %5590 = vtanh.f32 %v1588_v51  ;;  %1826 = vadd.xlane.f32.xlu0 %v1825_v14  ;;  %v1097_v12 = vcombine.high %v1095_v50, %v1095_v50  ;;  %v1128_v44 = vcombine.high %v6717_v52, %v6717_v52  ;;  %v1032_v11 = vcombine.high %v6417_v57, %v6417_v57  ;;  %v8847_v14 = vld [vmem:[#allocation6_spill] sm:$0xff] }
 0x160   :  { %5592 = vtanh.f32 %v1589_v56  ;;  %v1571_v60 = vadd.f32 %v1323_v41, %v6766_v42  ;;  %v1570_v27 = vadd.f32 %v1319_v16, %v6770_v35  ;;  %v6794_v54 = vadd.f32 %v6433_v5, %v6397_v7 }
 0x161   :  { %1829 = vadd.xlane.f32.xlu1 %v1828_v6  ;;  %v1359_v15 = vrot.slane %v6773_v59, %v6425_v9  ;;  %v1831_v17 = vsel %vm103_vm0, %v1711_v62, 0.0  ;;  %v6801_v52 = vadd.f32 %v6395_v55, %v6433_v5  ;;  %v1363_v57 = vrot.slane %v6780_v23, %v6425_v9 }
 0x162   :  { %8844 = vst [vmem:[#allocation66_spill] sm:$0xff] %v6794_v54  ;;  %v1701_v8 = vmul.f32 %v5581_v0, %v6520_v22  ;;  %v5583_v51 = vpop.eup %5582  ;;  %v1399_v28 = vrot.slane %v1126_v58, %v6425_v9  ;;  %v1834_v7 = vsel %vm103_vm0, %v1712_v25, 0.0  ;;  %v1702_v30 = vmul.f32 %v5579_v4, %v6520_v22 }
 0x163   :  { %8845 = vst [vmem:[#allocation67_spill] sm:$0xff] %v6801_v52  ;;  %1832 = vadd.xlane.f32.xlu0 %v1831_v17  ;;  %v5585_v63 = vpop.eup %5584  ;;  %v6811_v56 = vadd.f32 %v6293_v29, %v6433_v5  ;;  %v6814_v55 = vrot.slane %v1095_v50, %v6413_v49  ;;  %v6817_v41 = vrot.slane %v1097_v12, %v6413_v49  ;;  %5594 = vtanh.f32 %v1570_v27 }
 0x164   :  { %v1403_v16 = vrot.slane %v1128_v44, %v6425_v9  ;;  %v6822_v62 = vadd.f32 %v6433_v5, %v8847_v14  ;;  %v1046_v4 = vrot.slane %v1032_v11, %v6413_v49  ;;  %v1580_v0 = vadd.f32 %v1359_v15, %v6794_v54  ;;  %v8849_v11 = vld [vmem:[#allocation7_spill] sm:$0xff] }
 0x165   :  { %8846 = vst [vmem:[#allocation68_spill] sm:$0xff] %v6811_v56  ;;  %1835 = vadd.xlane.f32.xlu1 %v1834_v7  ;;  %5596 = vtanh.f32 %v1571_v60  ;;  %v1581_v29 = vadd.f32 %v1363_v57, %v6801_v52  ;;  %v1801_v50 = vsel %vm103_vm0, %v1701_v8, 0.0  ;;  %v1703_v58 = vmul.f32 %v5583_v51, %v6520_v22  ;;  %v8851_v51 = vld [vmem:[#allocation8_spill] sm:$0xff]  ;;  %v8858_v52 = vld [vmem:[#allocation3_spill] sm:$0xff] }
 0x166   :  { %8848 = vst [vmem:[#allocation6_spill] sm:$0xff] %v6822_v62  ;;  %v1590_v25 = vadd.f32 %v1399_v28, %v6822_v62  ;;  %v1804_v12 = vsel %vm103_vm0, %v1702_v30, 0.0  ;;  %v1704_v44 = vmul.f32 %v5585_v63, %v6520_v22  ;;  %v6834_v27 = vadd.f32 %v8849_v11, %v6433_v5 }
 0x167   :  { %v5587_v6 = vpop.eup %5586  ;;  %1802 = vadd.xlane.f32.xlu0 %v1801_v50  ;;  %v1407_v60 = vrot.slane %v6814_v55, %v6425_v9  ;;  %v1411_v15 = vrot.slane %v6817_v41, %v6425_v9  ;;  %v1591_v57 = vadd.f32 %v1403_v16, %v6811_v56  ;;  %v6843_v28 = vadd.f32 %v6433_v5, %v8851_v51  ;;  %v8862_v56 = vld [vmem:[#allocation10_spill] sm:$0xff] }
 0x168   :  { %v5589_v17 = vpop.eup %5588  ;;  %8850 = vst [vmem:[#allocation7_spill] sm:$0xff] %v6834_v27  ;;  %v1048_v7 = vcombine.high %v1046_v4, %v1046_v4  ;;  %5598 = vtanh.f32 %v1580_v0  ;;  %v1077_v30 = vcombine.high %v6773_v59, %v6773_v59  ;;  %v1079_v14 = vcombine.high %v6780_v23, %v6780_v23 }
 0x169   :  { %1805 = vadd.xlane.f32.xlu1 %v1804_v12  ;;  %v5591_v8 = vpop.eup %5590  ;;  %8852 = vst [vmem:[#allocation8_spill] sm:$0xff] %v6843_v28  ;;  %5600 = vtanh.f32 %v1581_v29  ;;  %v1807_v50 = vsel %vm103_vm0, %v1703_v58, 0.0  ;;  %v1713_v16 = vmul.f32 %v5587_v6, %v6520_v22  ;;  %v1810_v12 = vsel %vm103_vm0, %v1704_v44, 0.0  ;;  %v8853_v29 = vld [vmem:[#allocation30_spill] sm:$0xff]  ;;  %v8854_v6 = vld [vmem:[#allocation28_spill] sm:$0xff] }
 0x16a   :  { %v5593_v63 = vpop.eup %5592  ;;  %5602 = vtanh.f32 %v1590_v25  ;;  %v1714_v11 = vmul.f32 %v5589_v17, %v6520_v22  ;;  %v1592_v0 = vadd.f32 %v1407_v60, %v6843_v28  ;;  %v1593_v51 = vadd.f32 %v1411_v15, %v6834_v27  ;;  %v8856_v17 = vld [vmem:[#allocation27_spill] sm:$0xff] }
 0x16b   :  { %1808 = vadd.xlane.f32.xlu0 %v1807_v50  ;;  %5604 = vtanh.f32 %v1591_v57  ;;  %v6856_v59 = vrot.slane %v1046_v4, %v6413_v49  ;;  %v6859_v23 = vrot.slane %v1048_v7, %v6413_v49  ;;  %v1186_v58 = vrot.slane %v8853_v29, %v6413_v49 }
 0x16c   :  { %v6865_v25 = vadd.f32 %v6433_v5, %v8854_v6  ;;  %v1367_v44 = vrot.slane %v1077_v30, %v6425_v9  ;;  %v6870_v60 = vadd.f32 %v8856_v17, %v6433_v5  ;;  %v1371_v4 = vrot.slane %v1079_v14, %v6425_v9 }
 0x16d   :  { %1811 = vadd.xlane.f32.xlu1 %v1810_v12  ;;  %v1837_v15 = vsel %vm103_vm0, %v1713_v16, 0.0  ;;  %v1723_v57 = vmul.f32 %v5591_v8, %v6520_v22  ;;  %v5595_v7 = vpop.eup %5594  ;;  %v1840_v50 = vsel %vm103_vm0, %v1714_v11, 0.0  ;;  %v1724_v12 = vmul.f32 %v5593_v63, %v6520_v22 }
 0x16e   :  { %8855 = vst [vmem:[#allocation30_spill] sm:$0xff] %v6865_v25  ;;  %8857 = vst [vmem:[#allocation28_spill] sm:$0xff] %v6870_v60  ;;  %v6879_v30 = vadd.f32 %v6433_v5, %v8858_v52  ;;  %v1127_v17 = vcombine.high %v6814_v55, %v6814_v55  ;;  %v1129_v14 = vcombine.high %v6817_v41, %v6817_v41  ;;  %5606 = vtanh.f32 %v1592_v0  ;;  %v8860_v41 = vld [vmem:[#allocation2_spill] sm:$0xff] }
 0x16f   :  { %1838 = vadd.xlane.f32.xlu0 %v1837_v15  ;;  %v5597_v6 = vpop.eup %5596  ;;  %v1375_v8 = vrot.slane %v6856_v59, %v6425_v9  ;;  %v1379_v16 = vrot.slane %v6859_v23, %v6425_v9  ;;  %v1194_v63 = vcombine.high %v1186_v58, %v1186_v58  ;;  %v1582_v11 = vadd.f32 %v1367_v44, %v6865_v25 }
 0x170   :  { %8859 = vst [vmem:[#allocation27_spill] sm:$0xff] %v6879_v30  ;;  %5608 = vtanh.f32 %v1593_v51  ;;  %v1583_v52 = vadd.f32 %v1371_v4, %v6870_v60  ;;  %v1867_v15 = vsel %vm103_vm0, %v1723_v57, 0.0  ;;  %v1705_v55 = vmul.f32 %v5595_v7, %v6520_v22 }
 0x171   :  { %1841 = vadd.xlane.f32.xlu1 %v1840_v50  ;;  %v6895_v27 = vadd.f32 %v8860_v41, %v6433_v5  ;;  %v1870_v0 = vsel %vm103_vm0, %v1724_v12, 0.0  ;;  %v1706_v50 = vmul.f32 %v5597_v6, %v6520_v22  ;;  %v6901_v51 = vadd.f32 %v6433_v5, %v8862_v56  ;;  %v8864_v56 = vld [vmem:[#allocation31_spill] sm:$0xff] }
 0x172   :  { %v5599_v54 = vpop.eup %5598  ;;  %v1415_v44 = vrot.slane %v1127_v17, %v6425_v9  ;;  %v1584_v4 = vadd.f32 %v1375_v8, %v6879_v30  ;;  %v6906_v57 = vrot.slane %v1186_v58, %v6413_v49  ;;  %v6911_v6 = vrot.slane %v1194_v63, %v6413_v49  ;;  %v8865_v8 = vld [vmem:[#allocation9_spill] sm:$0xff] }
 0x173   :  { %8861 = vst [vmem:[#allocation3_spill] sm:$0xff] %v6895_v27  ;;  %1868 = vadd.xlane.f32.xlu0 %v1867_v15  ;;  %v5601_v28 = vpop.eup %5600  ;;  %8863 = vst [vmem:[#allocation2_spill] sm:$0xff] %v6901_v51  ;;  %v1419_v15 = vrot.slane %v1129_v14, %v6425_v9  ;;  %v1585_v12 = vadd.f32 %v1379_v16, %v6895_v27  ;;  %5610 = vtanh.f32 %v1582_v11  ;;  %v1813_v17 = vsel %vm103_vm0, %v1705_v55, 0.0  ;;  %v8867_v14 = vld [vmem:[#allocation20_spill] sm:$0xff] }
 0x174   :  { %v5603_v7 = vpop.eup %5602  ;;  %v1137_v60 = vrot.slane %v8864_v56, %v6413_v49  ;;  %5612 = vtanh.f32 %v1583_v52  ;;  %v1715_v58 = vmul.f32 %v5599_v54, %v6520_v22  ;;  %v6923_v16 = vadd.f32 %v6433_v5, %v8867_v14  ;;  %v8869_v14 = vld [vmem:[#allocation19_spill] sm:$0xff] }
 0x175   :  { %1871 = vadd.xlane.f32.xlu1 %v1870_v0  ;;  %v5605_v41 = vpop.eup %5604  ;;  %v6919_v0 = vadd.f32 %v8865_v8, %v6433_v5  ;;  %v1816_v63 = vsel %vm103_vm0, %v1706_v50, 0.0  ;;  %v1716_v11 = vmul.f32 %v5601_v28, %v6520_v22  ;;  %v1594_v27 = vadd.f32 %v1415_v44, %v6901_v51 }
 0x176   :  { %8868 = vst [vmem:[#allocation31_spill] sm:$0xff] %v6923_v16  ;;  %5614 = vtanh.f32 %v1584_v4  ;;  %v1179_v52 = vcombine.high %v8853_v29, %v8853_v29  ;;  %v1455_v54 = vrot.slane %v6906_v57, %v6425_v9  ;;  %v1078_v55 = vcombine.high %v6856_v59, %v6856_v59 }
 0x177   :  { %8866 = vst [vmem:[#allocation10_spill] sm:$0xff] %v6919_v0  ;;  %1814 = vadd.xlane.f32.xlu0 %v1813_v17  ;;  %v1080_v17 = vcombine.high %v6859_v23, %v6859_v23  ;;  %5616 = vtanh.f32 %v1585_v12  ;;  %v1459_v28 = vrot.slane %v6911_v6, %v6425_v9  ;;  %v1145_v50 = vcombine.high %v1137_v60, %v1137_v60 }
 0x178   :  { %v1843_v44 = vsel %vm103_vm0, %v1715_v58, 0.0  ;;  %v1725_v4 = vmul.f32 %v5603_v7, %v6520_v22  ;;  %v1595_v29 = vadd.f32 %v1419_v15, %v6919_v0  ;;  %v5607_v8 = vpop.eup %5606  ;;  %v1846_v59 = vsel %vm103_vm0, %v1716_v11, 0.0 }
 0x179   :  { %1817 = vadd.xlane.f32.xlu1 %v1816_v63  ;;  %v6943_v63 = vadd.f32 %v8869_v14, %v6433_v5  ;;  %v1726_v23 = vmul.f32 %v5605_v41, %v6520_v22  ;;  %5618 = vtanh.f32 %v1594_v27  ;;  %v1193_v30 = vrot.slane %v1179_v52, %v6413_v49 }
 0x17a   :  { %v5609_v12 = vpop.eup %5608  ;;  %v1604_v58 = vadd.f32 %v1455_v54, %v6923_v16  ;;  %v1383_v7 = vrot.slane %v1078_v55, %v6425_v9  ;;  %v1387_v15 = vrot.slane %v1080_v17, %v6425_v9  ;;  %v6953_v14 = vrot.slane %v1137_v60, %v6413_v49  ;;  %v8871_v54 = vld [vmem:[#allocation4_spill] sm:$0xff]  ;;  %v8873_v55 = vld [vmem:[#allocation5_spill] sm:$0xff] }
 0x17b   :  { %8870 = vst [vmem:[#allocation9_spill] sm:$0xff] %v6943_v63  ;;  %1844 = vadd.xlane.f32.xlu0 %v1843_v44  ;;  %v1605_v25 = vadd.f32 %v1459_v28, %v6943_v63  ;;  %v6956_v11 = vrot.slane %v1145_v50, %v6413_v49  ;;  %v1873_v41 = vsel %vm103_vm0, %v1725_v4, 0.0  ;;  %v1727_v27 = vmul.f32 %v5607_v8, %v6520_v22 }
 0x17c   :  { %5620 = vtanh.f32 %v1595_v29  ;;  %v6962_v44 = vadd.f32 %v8871_v54, %v6433_v5  ;;  %v6966_v17 = vadd.f32 %v6433_v5, %v8873_v55  ;;  %v1876_v60 = vsel %vm103_vm0, %v1726_v23, 0.0 }
 0x17d   :  { %1847 = vadd.xlane.f32.xlu1 %v1846_v59  ;;  %v5611_v52 = vpop.eup %5610  ;;  %v1728_v28 = vmul.f32 %v5609_v12, %v6520_v22  ;;  %v1195_v59 = vcombine.high %v1193_v30, %v1193_v30  ;;  %v1224_v4 = vcombine.high %v6906_v57, %v6906_v57  ;;  %5622 = vtanh.f32 %v1604_v58 }
 0x17e   :  { %8872 = vst [vmem:[#allocation20_spill] sm:$0xff] %v6962_v44  ;;  %8874 = vst [vmem:[#allocation19_spill] sm:$0xff] %v6966_v17  ;;  %v5613_v50 = vpop.eup %5612  ;;  %v1130_v29 = vcombine.high %v8864_v56, %v8864_v56  ;;  %v1586_v8 = vadd.f32 %v1383_v7, %v6966_v17  ;;  %v1226_v54 = vcombine.high %v6911_v6, %v6911_v6  ;;  %5624 = vtanh.f32 %v1605_v25  ;;  %v8875_v7 = vld [vmem:[#allocation11_spill] sm:$0xff]  ;;  %v8877_v6 = vld [vmem:[#allocation12_spill] sm:$0xff] }
 0x17f   :  { %1874 = vadd.xlane.f32.xlu0 %v1873_v41  ;;  %v1423_v23 = vrot.slane %v6953_v14, %v6425_v9  ;;  %v1427_v41 = vrot.slane %v6956_v11, %v6425_v9  ;;  %v1879_v57 = vsel %vm103_vm0, %v1727_v27, 0.0  ;;  %v1717_v58 = vmul.f32 %v5611_v52, %v6520_v22  ;;  %v8879_v17 = vld [vmem:[#allocation22_spill] sm:$0xff] }
 0x180   :  { %v5615_v12 = vpop.eup %5614  ;;  %v1587_v56 = vadd.f32 %v1387_v15, %v6962_v44  ;;  %v6990_v25 = vadd.f32 %v6433_v5, %v8877_v6  ;;  %v1882_v16 = vsel %vm103_vm0, %v1728_v28, 0.0  ;;  %v1718_v63 = vmul.f32 %v5613_v50, %v6520_v22 }
 0x181   :  { %1877 = vadd.xlane.f32.xlu1 %v1876_v60  ;;  %v5617_v55 = vpop.eup %5616  ;;  %v6986_v60 = vadd.f32 %v8875_v7, %v6433_v5  ;;  %v6996_v27 = vadd.f32 %v6433_v5, %v8879_v17  ;;  %v6999_v15 = vrot.slane %v1193_v30, %v6413_v49  ;;  %v7002_v52 = vrot.slane %v1195_v59, %v6413_v49  ;;  %v8881_v59 = vld [vmem:[#allocation21_spill] sm:$0xff] }
 0x182   :  { %8878 = vst [vmem:[#allocation5_spill] sm:$0xff] %v6990_v25  ;;  %v1463_v7 = vrot.slane %v1224_v4, %v6425_v9  ;;  %5626 = vtanh.f32 %v1586_v8  ;;  %v1144_v28 = vrot.slane %v1130_v29, %v6413_v49  ;;  %v1596_v50 = vadd.f32 %v1423_v23, %v6990_v25  ;;  %v8885_v23 = vld [vmem:[#allocation24_spill] sm:$0xff] }
 0x183   :  { %8876 = vst [vmem:[#allocation4_spill] sm:$0xff] %v6986_v60  ;;  %1880 = vadd.xlane.f32.xlu0 %v1879_v57  ;;  %8880 = vst [vmem:[#allocation11_spill] sm:$0xff] %v6996_v27  ;;  %v1467_v57 = vrot.slane %v1226_v54, %v6425_v9  ;;  %v5619_v6 = vpop.eup %5618  ;;  %v1597_v17 = vadd.f32 %v1427_v41, %v6986_v60  ;;  %v1849_v44 = vsel %vm103_vm0, %v1717_v58, 0.0  ;;  %5628 = vtanh.f32 %v1587_v56 }
 0x184   :  { %v1719_v30 = vmul.f32 %v5615_v12, %v6520_v22  ;;  %v7013_v0 = vadd.f32 %v8881_v59, %v6433_v5  ;;  %v1852_v29 = vsel %vm103_vm0, %v1718_v63, 0.0  ;;  %v1720_v8 = vmul.f32 %v5617_v55, %v6520_v22 }
 0x185   :  { %1883 = vadd.xlane.f32.xlu1 %v1882_v16  ;;  %v8883_v16 = vld [vmem:[#allocation23_spill] sm:$0xff]  ;;  %v7023_v41 = vadd.f32 %v6433_v5, %v8885_v23  ;;  %v1471_v12 = vrot.slane %v6999_v15, %v6425_v9  ;;  %v1475_v58 = vrot.slane %v7002_v52, %v6425_v9  ;;  %v1606_v56 = vadd.f32 %v1463_v7, %v6996_v27 }
 0x186   :  { %8882 = vst [vmem:[#allocation12_spill] sm:$0xff] %v7013_v0  ;;  %v7017_v4 = vadd.f32 %v8883_v16, %v6433_v5  ;;  %v5621_v54 = vpop.eup %5620  ;;  %v1146_v59 = vcombine.high %v1144_v28, %v1144_v28  ;;  %v1175_v63 = vcombine.high %v6953_v14, %v6953_v14  ;;  %5630 = vtanh.f32 %v1596_v50 }
 0x187   :  { %1850 = vadd.xlane.f32.xlu0 %v1849_v44  ;;  %8886 = vst [vmem:[#allocation21_spill] sm:$0xff] %v7023_v41  ;;  %v1607_v44 = vadd.f32 %v1467_v57, %v7013_v0  ;;  %v5623_v55 = vpop.eup %5622  ;;  %v1177_v16 = vcombine.high %v6956_v11, %v6956_v11  ;;  %5632 = vtanh.f32 %v1597_v17  ;;  %v1855_v23 = vsel %vm103_vm0, %v1719_v30, 0.0 }
 0x188   :  { %8884 = vst [vmem:[#allocation22_spill] sm:$0xff] %v7017_v4  ;;  %v1729_v25 = vmul.f32 %v5619_v6, %v6520_v22  ;;  %v5625_v60 = vpop.eup %5624  ;;  %v1858_v7 = vsel %vm103_vm0, %v1720_v8, 0.0  ;;  %v1730_v57 = vmul.f32 %v5621_v54, %v6520_v22  ;;  %v1609_v14 = vadd.f32 %v1475_v58, %v7017_v4 }
 0x189   :  { %1853 = vadd.xlane.f32.xlu1 %v1852_v29  ;;  %v1608_v29 = vadd.f32 %v1471_v12, %v7023_v41  ;;  %5634 = vtanh.f32 %v1606_v56  ;;  %v1160_v50 = vrot.slane %v1144_v28, %v6413_v49  ;;  %v1174_v11 = vrot.slane %v1146_v59, %v6413_v49  ;;  %v5914_v56 = vld [vmem:[%s8651_s4] ss:$0 sm:$0xff] }
 0x18a   :  { %v1431_v17 = vrot.slane %v1175_v63, %v6425_v9  ;;  %5636 = vtanh.f32 %v1607_v44  ;;  %v1435_v6 = vrot.slane %v1177_v16, %v6425_v9  ;;  %v1885_v30 = vsel %vm103_vm0, %v1729_v25, 0.0  ;;  %v8889_v44 = vld [vmem:[#allocation13_spill] sm:$0xff] }
 0x18b   :  { %1856 = vadd.xlane.f32.xlu0 %v1855_v23  ;;  %v1739_v8 = vmul.f32 %v5623_v55, %v6520_v22  ;;  %v8887_v23 = vld [vmem:[#allocation14_spill] sm:$0xff]  ;;  %v1888_v58 = vsel %vm103_vm0, %v1730_v57, 0.0  ;;  %v1740_v28 = vmul.f32 %v5625_v60, %v6520_v22  ;;  %v7057_v59 = vadd.f32 %v5914_v56, %v8889_v44 }
 0x18c   :  { %v5627_v54 = vpop.eup %5626  ;;  %v7049_v12 = vadd.f32 %v6433_v5, %v8887_v23  ;;  %v1225_v25 = vcombine.high %v6999_v15, %v6999_v15  ;;  %v1227_v5 = vcombine.high %v7002_v52, %v7002_v52  ;;  %5638 = vtanh.f32 %v1608_v29  ;;  %v8891_v15 = vld [vmem:[#allocation16_spill] sm:$0xff] }
 0x18d   :  { %1859 = vadd.xlane.f32.xlu1 %v1858_v7  ;;  %v5629_v49 = vpop.eup %5628  ;;  %8890 = vst [vmem:[#allocation24_spill] sm:$0xff] %v7057_v59  ;;  %5640 = vtanh.f32 %v1609_v14  ;;  %v1439_v63 = vrot.slane %v1160_v50, %v6425_v9  ;;  %v1443_v55 = vrot.slane %v1174_v11, %v6425_v9  ;;  %v1599_v16 = vadd.f32 %v1435_v6, %v7057_v59 }
 0x18e   :  { %8888 = vst [vmem:[#allocation23_spill] sm:$0xff] %v7049_v12  ;;  %v1598_v60 = vadd.f32 %v1431_v17, %v7049_v12  ;;  %v1915_v7 = vsel %vm103_vm0, %v1739_v8, 0.0  ;;  %v1721_v57 = vmul.f32 %v5627_v54, %v6520_v22  ;;  %v7070_v23 = vadd.f32 %v5914_v56, %v8891_v15 }
 0x18f   :  { %1886 = vadd.xlane.f32.xlu0 %v1885_v30  ;;  %v1918_v52 = vsel %vm103_vm0, %v1740_v28, 0.0  ;;  %v1722_v29 = vmul.f32 %v5629_v49, %v6520_v22  ;;  %v1479_v44 = vrot.slane %v1225_v25, %v6425_v9  ;;  %v1483_v6 = vrot.slane %v1227_v5, %v6425_v9  ;;  %v8897_v5 = vld [vmem:[#allocation25_spill] sm:$0xff] }
 0x190   :  { %v5631_v30 = vpop.eup %5630  ;;  %8892 = vst [vmem:[#allocation14_spill] sm:$0xff] %v7070_v23  ;;  %v1176_v8 = vcombine.high %v1160_v50, %v1160_v50  ;;  %v1178_v54 = vcombine.high %v1174_v11, %v1174_v11  ;;  %v1600_v12 = vadd.f32 %v1439_v63, %v7070_v23  ;;  %5642 = vtanh.f32 %v1598_v60 }
 0x191   :  { %1889 = vadd.xlane.f32.xlu1 %v1888_v58  ;;  %v5633_v14 = vpop.eup %5632  ;;  %v8893_v58 = vld [vmem:[#allocation15_spill] sm:$0xff]  ;;  %5644 = vtanh.f32 %v1599_v16  ;;  %v1861_v28 = vsel %vm103_vm0, %v1721_v57, 0.0  ;;  %v1731_v49 = vmul.f32 %v5631_v30, %v6520_v22  ;;  %v1864_v25 = vsel %vm103_vm0, %v1722_v29, 0.0 }
 0x192   :  { %v7075_v17 = vadd.f32 %v5914_v56, %v8893_v58  ;;  %v8895_v58 = vld [vmem:[#allocation26_spill] sm:$0xff]  ;;  %v1732_v50 = vmul.f32 %v5633_v14, %v6520_v22  ;;  %v7089_v63 = vadd.f32 %v5914_v56, %v8897_v5  ;;  %v1451_v16 = vrot.slane %v1178_v54, %v6425_v9 }
 0x193   :  { %1916 = vadd.xlane.f32.xlu0 %v1915_v7  ;;  %v5635_v15 = vpop.eup %5634  ;;  %v7084_v59 = vadd.f32 %v5914_v56, %v8895_v58  ;;  %5646 = vtanh.f32 %v1600_v12  ;;  %v1891_v30 = vsel %vm103_vm0, %v1731_v49, 0.0  ;;  %v5917_v21 = vmov 0  }
 0x194   :  { %8894 = vst [vmem:[#allocation13_spill] sm:$0xff] %v7075_v17  ;;  %v1601_v7 = vadd.f32 %v1443_v55, %v7075_v17  ;;  %v5637_v11 = vpop.eup %5636  ;;  %8898 = vst [vmem:[#allocation15_spill] sm:$0xff] %v7089_v63  ;;  %v1447_v55 = vrot.slane %v1176_v8, %v6425_v9  ;;  %v1611_v29 = vadd.f32 %v1483_v6, %v7089_v63  ;;  %v5915_v6 = vld [vmem:[%s8652_s6] ss:$0 sm:$0xff]  ;;  %5529 = vset.pattern.permute.xlu0 %v5917_v21 }
 0x195   :  { %1919 = vadd.xlane.f32.xlu1 %v1918_v52  ;;  %8896 = vst [vmem:[#allocation16_spill] sm:$0xff] %v7084_v59  ;;  %v1610_v60 = vadd.f32 %v1479_v44, %v7084_v59  ;;  %v1741_v52 = vmul.f32 %v5635_v15, %v6520_v22  ;;  %v1894_v44 = vsel %vm103_vm0, %v1732_v50, 0.0  ;;  %v1742_v8 = vmul.f32 %v5637_v11, %v6520_v22 }
 0x196   :  { %v5639_v57 = vpop.eup %5638  ;;  %5648 = vtanh.f32 %v1601_v7  ;;  %5528 = vset.pattern.permute.xlu1 %v5917_v21 }
 0x197   :  { %1862 = vadd.xlane.f32.xlu0 %v1861_v28  ;;  %v5641_v14 = vpop.eup %5640  ;;  %v8899_v28 = vld [vmem:[#allocation18_spill] sm:$0xff]  ;;  %5650 = vtanh.f32 %v1610_v60  ;;  %v1921_v7 = vsel %vm103_vm0, %v1741_v52, 0.0  ;;  %v1743_v49 = vmul.f32 %v5915_v6, %v5639_v57  ;;  %v1924_v22 = vsel %vm103_vm0, %v1742_v8, 0.0 }
 0x198   :  { %v7098_v58 = vadd.f32 %v5914_v56, %v8899_v28  ;;  %5652 = vtanh.f32 %v1611_v29 }
 0x199   :  { %1865 = vadd.xlane.f32.xlu1 %v1864_v25  ;;  %v8901_v25 = vld [vmem:[#allocation17_spill] sm:$0xff]  ;;  %v1927_v5 = vsel %vm103_vm0, %v1743_v49, 0.0 }
 0x19a   :  { %8900 = vst [vmem:[#allocation26_spill] sm:$0xff] %v7098_v58  ;;  %v7103_v54 = vadd.f32 %v5914_v56, %v8901_v25  ;;  %v1602_v12 = vadd.f32 %v1447_v55, %v7098_v58  ;;  %v5643_v50 = vpop.eup %5642  ;;  %v1744_v56 = vmul.f32 %v5915_v6, %v5641_v14 }
 0x19b   :  { %1892 = vadd.xlane.f32.xlu0 %v1891_v30  ;;  %v5645_v11 = vpop.eup %5644  ;;  %v1733_v60 = vmul.f32 %v5915_v6, %v5643_v50 }
 0x19c   :  { %8902 = vst [vmem:[#allocation25_spill] sm:$0xff] %v7103_v54  ;;  %v1603_v15 = vadd.f32 %v1451_v16, %v7103_v54  ;;  %5654 = vtanh.f32 %v1602_v12  ;;  %v1930_v30 = vsel %vm103_vm0, %v1744_v56, 0.0  ;;  %v1734_v57 = vmul.f32 %v5915_v6, %v5645_v11 }
 0x19d   :  { %1895 = vadd.xlane.f32.xlu1 %v1894_v44  ;;  %v5647_v55 = vpop.eup %5646  ;;  %v1897_v16 = vsel %vm103_vm0, %v1733_v60, 0.0 }
 0x19e   :  { %5656 = vtanh.f32 %v1603_v15  ;;  %v1735_v29 = vmul.f32 %v5915_v6, %v5647_v55  ;;  %v1900_v14 = vsel %vm103_vm0, %v1734_v57, 0.0 }
 0x19f   :  { %1922 = vadd.xlane.f32.xlu0 %v1921_v7 }
 0x1a0   :  { %v5649_v52 = vpop.eup %5648  ;;  %v1903_v25 = vsel %vm103_vm0, %v1735_v29, 0.0  ;;  %v8903_v29 = vlaneseq }
 0x1a1   :  { %1925 = vadd.xlane.f32.xlu1 %v1924_v22  ;;  %v5651_v28 = vpop.eup %5650  ;;  %v1736_v44 = vmul.f32 %v5915_v6, %v5649_v52 }
 0x1a2   :  { %v5653_v8 = vpop.eup %5652  ;;  %v1745_v12 = vmul.f32 %v5915_v6, %v5651_v28  ;;  %v2004_v28 = vand.u32 127, %v8903_v29 }
 0x1a3   :  { %1928 = vadd.xlane.f32.xlu0 %v1927_v5  ;;  %v1906_v49 = vsel %vm103_vm0, %v1736_v44, 0.0  ;;  %v1746_v15 = vmul.f32 %v5915_v6, %v5653_v8  ;;  %v8904_v44 = vld [vmem:[#allocation29_spill] sm:$0xff] }
 0x1a4   :  { %v1933_v22 = vsel %vm103_vm0, %v1745_v12, 0.0  ;;  %v7136_v8 = vsub.s32 %v2004_v28, %v8904_v44 }
 0x1a5   :  { %1931 = vadd.xlane.f32.xlu1 %v1930_v30  ;;  %v1936_v11 = vsel %vm103_vm0, %v1746_v15, 0.0 }
 0x1a6   :  { %v5655_v7 = vpop.eup %5654  ;;  %8905 = vst [vmem:[#allocation18_spill] sm:$0xff] %v7136_v8 }
 0x1a7   :  { %1898 = vadd.xlane.f32.xlu0 %v1897_v16  ;;  %v1737_v56 = vmul.f32 %v5915_v6, %v5655_v7 }
 0x1a8   :  { %v5657_v50 = vpop.eup %5656 }
 0x1a9   :  { %1901 = vadd.xlane.f32.xlu1 %v1900_v14  ;;  %v1738_v5 = vmul.f32 %v5915_v6, %v5657_v50  ;;  %v1909_v60 = vsel %vm103_vm0, %v1737_v56, 0.0 }
 0x1ab   :  { %1904 = vadd.xlane.f32.xlu0 %v1903_v25  ;;  %v1912_v55 = vsel %vm103_vm0, %v1738_v5, 0.0 }
 0x1ad   :  { %1907 = vadd.xlane.f32.xlu1 %v1906_v49 }
 0x1af   :  { %1934 = vadd.xlane.f32.xlu0 %v1933_v22 }
 0x1b1   :  { %1937 = vadd.xlane.f32.xlu1 %v1936_v11 }
 0x1b3   :  { %1910 = vadd.xlane.f32.xlu0 %v1909_v60 }
 0x1b5   :  { %1913 = vadd.xlane.f32.xlu1 %v1912_v55 }
 0x1c3   :  { %v7124_v57 = vpop.xlane.xlu1 %1775 }
 0x1c4   :  { %v7122_v30 = vpop.xlane.xlu0 %1772  ;;  %v2044_v25 = vrot.slane %v7124_v57, %v7136_v8 }
 0x1c5   :  { %v2040_v15 = vrot.slane %v7122_v30, %v7136_v8 }
 0x1c7   :  { %v2275_v50 = vsel %vm2261_vm2, %v2044_v25, %v2040_v15 }
 0x1c8   :  { %v7126_v52 = vpop.xlane.xlu0 %1748  ;;  %v7128_v16 = vpop.xlane.xlu1 %1754 }
 0x1c9   :  { %v2008_v29 = vrot.slane %v7126_v52, %v7136_v8  ;;  %v2016_v63 = vrot.slane %v7128_v16, %v7136_v8 }
 0x1cc   :  { %v7131_v14 = vpop.xlane.xlu0 %1778 }
 0x1cd   :  { %v7133_v6 = vpop.xlane.xlu1 %1781  ;;  %v2048_v7 = vrot.slane %v7131_v14, %v7136_v8 }
 0x1ce   :  { %v2052_v22 = vrot.slane %v7133_v6, %v7136_v8 }
 0x1cf   :  { %v2276_v11 = vsel %vm2263_vm3, %v2048_v7, %v2275_v50 }
 0x1d0   :  { %v7140_v12 = vpop.xlane.xlu0 %1784  ;;  %v2277_v28 = vsel %vm2265_vm4, %v2052_v22, %v2276_v11 }
 0x1d1   :  { %v7144_v49 = vpop.xlane.xlu1 %1787  ;;  %v2056_v55 = vrot.slane %v7140_v12, %v7136_v8 }
 0x1d2   :  { %v2060_v7 = vrot.slane %v7144_v49, %v7136_v8 }
 0x1d3   :  { %v2278_v58 = vsel %vm2267_vm5, %v2056_v55, %v2277_v28 }
 0x1d4   :  { %v7151_v56 = vpop.xlane.xlu0 %1751  ;;  %v2279_v55 = vsel %vm2269_vm6, %v2060_v7, %v2278_v58 }
 0x1d5   :  { %v7154_v5 = vpop.xlane.xlu1 %1757  ;;  %v2012_v60 = vrot.slane %v7151_v56, %v7136_v8 }
 0x1d6   :  { %v2020_v54 = vrot.slane %v7154_v5, %v7136_v8 }
 0x1d7   :  { %v2262_v50 = vsel %vm2261_vm2, %v2012_v60, %v2008_v29 }
 0x1d8   :  { %v7163_v25 = vpop.xlane.xlu0 %1760  ;;  %v2264_v11 = vsel %vm2263_vm3, %v2016_v63, %v2262_v50 }
 0x1d9   :  { %v7165_v15 = vpop.xlane.xlu1 %1763  ;;  %v2024_v29 = vrot.slane %v7163_v25, %v7136_v8  ;;  %v2266_v59 = vsel %vm2265_vm4, %v2020_v54, %v2264_v11 }
 0x1da   :  { %v2028_v0 = vrot.slane %v7165_v15, %v7136_v8 }
 0x1db   :  { %v2268_v58 = vsel %vm2267_vm5, %v2024_v29, %v2266_v59 }
 0x1dc   :  { %v7175_v22 = vpop.xlane.xlu0 %1790 }
 0x1dd   :  { %v2064_v23 = vrot.slane %v7175_v22, %v7136_v8 }
 0x1de   :  { %v7180_v17 = vpop.xlane.xlu1 %1793 }
 0x1df   :  { %v2068_v60 = vrot.slane %v7180_v17, %v7136_v8  ;;  %v2280_v28 = vsel %vm2271_vm7, %v2064_v23, %v2279_v55 }
 0x1e0   :  { %v7189_v63 = vpop.xlane.xlu0 %1820 }
 0x1e1   :  { %v2281_v50 = vsel %vm2273_vm8, %v2068_v60, %v2280_v28  ;;  %v2270_v60 = vsel %vm2269_vm6, %v2028_v0, %v2268_v58  ;;  %v2104_v51 = vrot.slane %v7189_v63, %v7136_v8 }
 0x1e2   :  { %v7192_v4 = vpop.xlane.xlu1 %1823  ;;  %v2336_v41 = vsel %vm2332_vm9, %v2281_v50, -inf }
 0x1e3   :  { %2337 = vmax.xlane.f32.xlu1 %v2336_v41  ;;  %v2108_v0 = vrot.slane %v7192_v4, %v7136_v8 }
 0x1e4   :  { %v7198_v7 = vpop.xlane.xlu0 %1766 }
 0x1e5   :  { %v2032_v23 = vrot.slane %v7198_v7, %v7136_v8 }
 0x1e6   :  { %v7202_v54 = vpop.xlane.xlu1 %1769 }
 0x1e7   :  { %v2036_v11 = vrot.slane %v7202_v54, %v7136_v8  ;;  %v2272_v55 = vsel %vm2271_vm7, %v2032_v23, %v2270_v60  ;;  %v2289_v60 = vsel %vm2261_vm2, %v2108_v0, %v2104_v51 }
 0x1e8   :  { %v7208_v28 = vpop.xlane.xlu0 %1796 }
 0x1e9   :  { %v2274_v41 = vsel %vm2273_vm8, %v2036_v11, %v2272_v55 }
 0x1ea   :  { %v7211_v50 = vpop.xlane.xlu1 %1799  ;;  %v2333_v59 = vsel %vm2332_vm9, %v2274_v41, -inf }
 0x1eb   :  { %2334 = vmax.xlane.f32.xlu0 %v2333_v59  ;;  %v2076_v46 = vrot.slane %v7211_v50, %v7136_v8 }
 0x1ec   :  { %v7214_v29 = vpop.xlane.xlu0 %1826 }
 0x1ed   :  { %v2112_v23 = vrot.slane %v7214_v29, %v7136_v8 }
 0x1ee   :  { %v7216_v27 = vpop.xlane.xlu1 %1829 }
 0x1ef   :  { %v2116_v55 = vrot.slane %v7216_v27, %v7136_v8  ;;  %v2290_v59 = vsel %vm2263_vm3, %v2112_v23, %v2289_v60  ;;  %v2072_v23 = vrot.slane %v7208_v28, %v7136_v8 }
 0x1f0   :  { %v7222_v58 = vpop.xlane.xlu0 %1832 }
 0x1f1   :  { %v2120_v10 = vrot.slane %v7222_v58, %v7136_v8  ;;  %v2291_v42 = vsel %vm2265_vm4, %v2116_v55, %v2290_v59  ;;  %v2282_v55 = vsel %vm2261_vm2, %v2076_v46, %v2072_v23 }
 0x1f2   :  { %v7226_v11 = vpop.xlane.xlu1 %1835 }
 0x1f3   :  { %v2124_v60 = vrot.slane %v7226_v11, %v7136_v8  ;;  %v2292_v20 = vsel %vm2267_vm5, %v2120_v10, %v2291_v42 }
 0x1f4   :  { %v7231_v41 = vpop.xlane.xlu0 %1802 }
 0x1f5   :  { %v2080_v51 = vrot.slane %v7231_v41, %v7136_v8  ;;  %v2293_v21 = vsel %vm2269_vm6, %v2124_v60, %v2292_v20 }
 0x1f6   :  { %v7234_v62 = vpop.xlane.xlu1 %1805 }
 0x1f7   :  { %v2084_v59 = vrot.slane %v7234_v62, %v7136_v8  ;;  %v2283_v34 = vsel %vm2263_vm3, %v2080_v51, %v2282_v55 }
 0x1f8   :  { %v7241_v35 = vpop.xlane.xlu0 %1808 }
 0x1f9   :  { %v2088_v10 = vrot.slane %v7241_v35, %v7136_v8  ;;  %v2284_v42 = vsel %vm2265_vm4, %v2084_v59, %v2283_v34 }
 0x1fa   :  { %v7245_v0 = vpop.xlane.xlu1 %1811 }
 0x1fb   :  { %v2092_v2 = vrot.slane %v7245_v0, %v7136_v8  ;;  %v2285_v20 = vsel %vm2267_vm5, %v2088_v10, %v2284_v42 }
 0x1fc   :  { %v7255_v33 = vpop.xlane.xlu0 %1838 }
 0x1fd   :  { %v2128_v47 = vrot.slane %v7255_v33, %v7136_v8  ;;  %v2286_v59 = vsel %vm2269_vm6, %v2092_v2, %v2285_v20 }
 0x1fe   :  { %v7260_v48 = vpop.xlane.xlu1 %1841 }
 0x1ff   :  { %v2132_v45 = vrot.slane %v7260_v48, %v7136_v8  ;;  %v2294_v46 = vsel %vm2271_vm7, %v2128_v47, %v2293_v21 }
 0x200   :  { %v7269_v23 = vpop.xlane.xlu0 %1868 }
 0x201   :  { %v2295_v51 = vsel %vm2273_vm8, %v2132_v45, %v2294_v46 }
 0x202   :  { %v7272_v55 = vpop.xlane.xlu1 %1871  ;;  %v2342_v19 = vsel %vm2332_vm9, %v2295_v51, -inf }
 0x203   :  { %2343 = vmax.xlane.f32.xlu1 %v2342_v19  ;;  %v2172_v32 = vrot.slane %v7272_v55, %v7136_v8 }
 0x204   :  { %v7278_v60 = vpop.xlane.xlu0 %1814 }
 0x205   :  { %v2096_v47 = vrot.slane %v7278_v60, %v7136_v8 }
 0x206   :  { %v7282_v34 = vpop.xlane.xlu1 %1817 }
 0x207   :  { %v2100_v45 = vrot.slane %v7282_v34, %v7136_v8  ;;  %v2287_v21 = vsel %vm2271_vm7, %v2096_v47, %v2286_v59  ;;  %v2168_v47 = vrot.slane %v7269_v23, %v7136_v8 }
 0x208   :  { %v7288_v46 = vpop.xlane.xlu0 %1844 }
 0x209   :  { %8906 = vst [vmem:[#allocation17_spill] sm:$0xff] %v7288_v46  ;;  %v2288_v19 = vsel %vm2273_vm8, %v2100_v45, %v2287_v21  ;;  %v2303_v45 = vsel %vm2261_vm2, %v2172_v32, %v2168_v47 }
 0x20a   :  { %v7291_v51 = vpop.xlane.xlu1 %1847  ;;  %v2339_v10 = vsel %vm2332_vm9, %v2288_v19, -inf }
 0x20b   :  { %2340 = vmax.xlane.f32.xlu0 %v2339_v10  ;;  %v2140_v13 = vrot.slane %v7291_v51, %v7136_v8 }
 0x20c   :  { %v7294_v42 = vpop.xlane.xlu0 %1874 }
 0x20d   :  { %v2176_v2 = vrot.slane %v7294_v42, %v7136_v8 }
 0x20e   :  { %v7296_v53 = vpop.xlane.xlu1 %1877 }
 0x20f   :  { %v2180_v59 = vrot.slane %v7296_v53, %v7136_v8  ;;  %v2304_v19 = vsel %vm2263_vm3, %v2176_v2, %v2303_v45  ;;  %v2136_v2 = vrot.slane %v7288_v46, %v7136_v8 }
 0x210   :  { %v7300_v38 = vpop.xlane.xlu0 %1880 }
 0x211   :  { %8907 = vst [vmem:[#allocation29_spill] sm:$0xff] %v7300_v38  ;;  %v2184_v36 = vrot.slane %v7300_v38, %v7136_v8  ;;  %v2305_v26 = vsel %vm2265_vm4, %v2180_v59, %v2304_v19  ;;  %v2296_v24 = vsel %vm2261_vm2, %v2140_v13, %v2136_v2 }
 0x212   :  { %v7304_v20 = vpop.xlane.xlu1 %1883 }
 0x213   :  { %v2188_v45 = vrot.slane %v7304_v20, %v7136_v8  ;;  %v2306_v18 = vsel %vm2267_vm5, %v2184_v36, %v2305_v26 }
 0x214   :  { %v7311_v21 = vpop.xlane.xlu0 %1850 }
 0x215   :  { %8908 = vst [vmem:[#allocation69_spill] sm:$0xff] %v7311_v21  ;;  %v2144_v32 = vrot.slane %v7311_v21, %v7136_v8  ;;  %v2307_v61 = vsel %vm2269_vm6, %v2188_v45, %v2306_v18 }
 0x216   :  { %v7314_v10 = vpop.xlane.xlu1 %1853 }
 0x217   :  { %8909 = vst [vmem:[#allocation70_spill] sm:$0xff] %v7314_v10  ;;  %v2148_v59 = vrot.slane %v7314_v10, %v7136_v8  ;;  %v2297_v40 = vsel %vm2263_vm3, %v2144_v32, %v2296_v24 }
 0x218   :  { %v7321_v1 = vpop.xlane.xlu0 %1856 }
 0x219   :  { %8910 = vst [vmem:[#allocation71_spill] sm:$0xff] %v7321_v1  ;;  %v2152_v26 = vrot.slane %v7321_v1, %v7136_v8  ;;  %v2298_v13 = vsel %vm2265_vm4, %v2148_v59, %v2297_v40 }
 0x21a   :  { %v7325_v47 = vpop.xlane.xlu1 %1859 }
 0x21b   :  { %8911 = vst [vmem:[#allocation72_spill] sm:$0xff] %v7325_v47  ;;  %v2156_v43 = vrot.slane %v7325_v47, %v7136_v8  ;;  %v2299_v18 = vsel %vm2267_vm5, %v2152_v26, %v2298_v13 }
 0x21c   :  { %v7335_v19 = vpop.xlane.xlu0 %1886 }
 0x21d   :  { %8912 = vst [vmem:[#allocation73_spill] sm:$0xff] %v7335_v19  ;;  %v2192_v37 = vrot.slane %v7335_v19, %v7136_v8 }
 0x21e   :  { %v7340_v31 = vpop.xlane.xlu1 %1889 }
 0x21f   :  { %v2196_v39 = vrot.slane %v7340_v31, %v7136_v8  ;;  %v2308_v36 = vsel %vm2271_vm7, %v2192_v37, %v2307_v61  ;;  %v2300_v37 = vsel %vm2269_vm6, %v2156_v43, %v2299_v18 }
 0x220   :  { %v7349_v2 = vpop.xlane.xlu0 %1916 }
 0x221   :  { %8913 = vst [vmem:[#allocation74_spill] sm:$0xff] %v7349_v2  ;;  %v2309_v24 = vsel %vm2273_vm8, %v2196_v39, %v2308_v36 }
 0x222   :  { %v7352_v32 = vpop.xlane.xlu1 %1919  ;;  %v2348_v3 = vsel %vm2332_vm9, %v2309_v24, -inf }
 0x223   :  { %8914 = vst [vmem:[#allocation75_spill] sm:$0xff] %v7352_v32  ;;  %2349 = vmax.xlane.f32.xlu1 %v2348_v3  ;;  %v2236_v1 = vrot.slane %v7352_v32, %v7136_v8 }
 0x224   :  { %v7358_v45 = vpop.xlane.xlu0 %1862 }
 0x225   :  { %8915 = vst [vmem:[#allocation76_spill] sm:$0xff] %v7358_v45  ;;  %v2160_v61 = vrot.slane %v7358_v45, %v7136_v8 }
 0x226   :  { %v7362_v40 = vpop.xlane.xlu1 %1865 }
 0x227   :  { %8916 = vst [vmem:[#allocation77_spill] sm:$0xff] %v7362_v40  ;;  %v2164_v39 = vrot.slane %v7362_v40, %v7136_v8  ;;  %v2301_v59 = vsel %vm2271_vm7, %v2160_v61, %v2300_v37  ;;  %v2232_v61 = vrot.slane %v7349_v2, %v7136_v8 }
 0x228   :  { %v7368_v36 = vpop.xlane.xlu0 %1892 }
 0x229   :  { %8917 = vst [vmem:[#allocation78_spill] sm:$0xff] %v7368_v36  ;;  %v2302_v3 = vsel %vm2273_vm8, %v2164_v39, %v2301_v59  ;;  %v2317_v39 = vsel %vm2261_vm2, %v2236_v1, %v2232_v61  ;;  %v2200_v2 = vrot.slane %v7368_v36, %v7136_v8 }
 0x22a   :  { %v7371_v24 = vpop.xlane.xlu1 %1895  ;;  %v2345_v26 = vsel %vm2332_vm9, %v2302_v3, -inf }
 0x22b   :  { %8918 = vst [vmem:[#allocation79_spill] sm:$0xff] %v7371_v24  ;;  %2346 = vmax.xlane.f32.xlu0 %v2345_v26  ;;  %v2204_v37 = vrot.slane %v7371_v24, %v7136_v8 }
 0x22c   :  { %v7374_v13 = vpop.xlane.xlu0 %1922 }
 0x22d   :  { %8919 = vst [vmem:[#allocation80_spill] sm:$0xff] %v7374_v13  ;;  %v2240_v43 = vrot.slane %v7374_v13, %v7136_v8  ;;  %v2310_v61 = vsel %vm2261_vm2, %v2204_v37, %v2200_v2 }
 0x22e   :  { %v7376_v45 = vpop.xlane.xlu1 %1925 }
 0x22f   :  { %8920 = vst [vmem:[#allocation81_spill] sm:$0xff] %v7376_v45  ;;  %v2244_v59 = vrot.slane %v7376_v45, %v7136_v8  ;;  %v2318_v26 = vsel %vm2263_vm3, %v2240_v43, %v2317_v39 }
 0x230   :  { %v7380_v21 = vpop.xlane.xlu0 %1928 }
 0x231   :  { %8921 = vst [vmem:[#allocation82_spill] sm:$0xff] %v7380_v21  ;;  %v2248_v1 = vrot.slane %v7380_v21, %v7136_v8  ;;  %v2319_v24 = vsel %vm2265_vm4, %v2244_v59, %v2318_v26 }
 0x232   :  { %v7384_v18 = vpop.xlane.xlu1 %1931 }
 0x233   :  { %8922 = vst [vmem:[#allocation83_spill] sm:$0xff] %v7384_v18  ;;  %v2320_v36 = vsel %vm2267_vm5, %v2248_v1, %v2319_v24 }
 0x234   :  { %v7393_v3 = vpop.xlane.xlu0 %1898 }
 0x235   :  { %8923 = vst [vmem:[#allocation84_spill] sm:$0xff] %v7393_v3  ;;  %v2208_v13 = vrot.slane %v7393_v3, %v7136_v8  ;;  %v2252_v3 = vrot.slane %v7384_v18, %v7136_v8 }
 0x236   :  { %v7398_v32 = vpop.xlane.xlu1 %1901 }
 0x237   :  { %8924 = vst [vmem:[#allocation85_spill] sm:$0xff] %v7398_v32  ;;  %v2212_v45 = vrot.slane %v7398_v32, %v7136_v8  ;;  %v2311_v43 = vsel %vm2263_vm3, %v2208_v13, %v2310_v61  ;;  %v2321_v24 = vsel %vm2269_vm6, %v2252_v3, %v2320_v36 }
 0x238   :  { %v7408_v40 = vpop.xlane.xlu0 %1904 }
 0x239   :  { %8925 = vst [vmem:[#allocation86_spill] sm:$0xff] %v7408_v40  ;;  %v2216_v21 = vrot.slane %v7408_v40, %v7136_v8  ;;  %v2312_v2 = vsel %vm2265_vm4, %v2212_v45, %v2311_v43 }
 0x23a   :  { %v7411_v39 = vpop.xlane.xlu1 %1907 }
 0x23b   :  { %8926 = vst [vmem:[#allocation87_spill] sm:$0xff] %v7411_v39  ;;  %v2220_v13 = vrot.slane %v7411_v39, %v7136_v8  ;;  %v2313_v1 = vsel %vm2267_vm5, %v2216_v21, %v2312_v2 }
 0x23c   :  { %v7419_v37 = vpop.xlane.xlu0 %1934 }
 0x23d   :  { %8927 = vst [vmem:[#allocation88_spill] sm:$0xff] %v7419_v37  ;;  %v2256_v59 = vrot.slane %v7419_v37, %v7136_v8  ;;  %v2314_v36 = vsel %vm2269_vm6, %v2220_v13, %v2313_v1  ;;  %v7459_v13 = vsub.s32 5, %v8904_v44 }
 0x23e   :  { %v7423_v26 = vpop.xlane.xlu1 %1937 }
 0x23f   :  { %8928 = vst [vmem:[#allocation89_spill] sm:$0xff] %v7423_v26  ;;  %v2260_v61 = vrot.slane %v7423_v26, %v7136_v8  ;;  %v2322_v40 = vsel %vm2271_vm7, %v2256_v59, %v2321_v24  ;;  %v7450_v59 = vsub.s32 2, %v8904_v44 }
 0x240   :  { %v7432_v45 = vpop.xlane.xlu0 %1910 }
 0x241   :  { %8929 = vst [vmem:[#allocation90_spill] sm:$0xff] %v7432_v45  ;;  %v2323_v43 = vsel %vm2273_vm8, %v2260_v61, %v2322_v40  ;;  %v2224_v37 = vrot.slane %v7432_v45, %v7136_v8  ;;  %v7447_v40 = vsub.s32 1, %v8904_v44  ;;  %v7453_v61 = vsub.s32 3, %v8904_v44 }
 0x242   :  { %v7437_v32 = vpop.xlane.xlu1 %1913  ;;  %v2354_v39 = vsel %vm2332_vm9, %v2323_v43, -inf  ;;  %v7473_v45 = vsub.s32 7, %v8904_v44 }
 0x243   :  { %8930 = vst [vmem:[#allocation91_spill] sm:$0xff] %v7437_v32  ;;  %v2228_v26 = vrot.slane %v7437_v32, %v7136_v8  ;;  %2355 = vmax.xlane.f32.xlu1 %v2354_v39  ;;  %v2315_v21 = vsel %vm2271_vm7, %v2224_v37, %v2314_v36  ;;  %v7456_v39 = vsub.s32 4, %v8904_v44  ;;  %v7466_v36 = vsub.s32 6, %v8904_v44 }
 0x245   :  { %v2316_v3 = vsel %vm2273_vm8, %v2228_v26, %v2315_v21 }
 0x246   :  { %v2351_v2 = vsel %vm2332_vm9, %v2316_v3, -inf }
 0x247   :  { %2352 = vmax.xlane.f32.xlu0 %v2351_v2 }
 0x270   :  { %v2338_v37 = vpop.xlane.xlu1 %2337 }
 0x271   :  { %v2400_v26 = vrot.slane %v2338_v37, %v6425_v9  ;;  %v2404_v24 = vrot.slane %v2338_v37, %v7447_v40  ;;  %v2408_v1 = vrot.slane %v2338_v37, %v7450_v59  ;;  %v2412_v43 = vrot.slane %v2338_v37, %v7453_v61 }
 0x272   :  { %v2416_v21 = vrot.slane %v2338_v37, %v7456_v39  ;;  %v2420_v32 = vrot.slane %v2338_v37, %v7459_v13  ;;  %v2424_v19 = vrot.slane %v2338_v37, %v7466_v36 }
 0x273   :  { %v2693_v3 = vsub.f32 %v7122_v30, %v2400_v26  ;;  %v2694_v2 = vsub.f32 %v7124_v57, %v2404_v24  ;;  %v2695_v8 = vsub.f32 %v7131_v14, %v2408_v1  ;;  %v2696_v18 = vsub.f32 %v7133_v6, %v2412_v43 }
 0x274   :  { %v2697_v38 = vsub.f32 %v7140_v12, %v2416_v21  ;;  %v2428_v30 = vrot.slane %v2338_v37, %v7473_v45  ;;  %v2698_v44 = vsub.f32 %v7144_v49, %v2420_v32  ;;  %v2699_v24 = vsub.f32 %v7175_v22, %v2424_v19 }
 0x275   :  { %v2765_v46 = vmul.f32 1.442695, %v2693_v3  ;;  %v2767_v47 = vmul.f32 1.442695, %v2694_v2  ;;  %v2769_v10 = vmul.f32 1.442695, %v2695_v8 }
 0x276   :  { %v2771_v14 = vmul.f32 1.442695, %v2696_v18  ;;  %v2773_v6 = vmul.f32 1.442695, %v2697_v38  ;;  %v2775_v12 = vmul.f32 1.442695, %v2698_v44 }
 0x277   :  { %5658 = vpow2.f32 %v2765_v46  ;;  %v2700_v46 = vsub.f32 %v7180_v17, %v2428_v30  ;;  %v2777_v18 = vmul.f32 1.442695, %v2699_v24 }
 0x278   :  { %v7480_v57 = vpop.xlane.xlu0 %2334  ;;  %5660 = vpow2.f32 %v2767_v47 }
 0x279   :  { %v2372_v26 = vrot.slane %v7480_v57, %v7447_v40  ;;  %5662 = vpow2.f32 %v2769_v10  ;;  %v2368_v8 = vrot.slane %v7480_v57, %v6425_v9  ;;  %v2376_v47 = vrot.slane %v7480_v57, %v7450_v59 }
 0x27a   :  { %5664 = vpow2.f32 %v2771_v14  ;;  %v2779_v32 = vmul.f32 1.442695, %v2700_v46  ;;  %v2380_v17 = vrot.slane %v7480_v57, %v7453_v61  ;;  %v2384_v43 = vrot.slane %v7480_v57, %v7456_v39 }
 0x27b   :  { %5666 = vpow2.f32 %v2773_v6  ;;  %v2686_v49 = vsub.f32 %v7151_v56, %v2372_v26  ;;  %v2685_v38 = vsub.f32 %v7126_v52, %v2368_v8  ;;  %v2687_v37 = vsub.f32 %v7128_v16, %v2376_v47 }
 0x27c   :  { %5668 = vpow2.f32 %v2775_v12  ;;  %v2688_v3 = vsub.f32 %v7154_v5, %v2380_v17  ;;  %v2388_v30 = vrot.slane %v7480_v57, %v7459_v13  ;;  %v2689_v44 = vsub.f32 %v7163_v25, %v2384_v43 }
 0x27d   :  { %5670 = vpow2.f32 %v2777_v18  ;;  %v2751_v19 = vmul.f32 1.442695, %v2686_v49  ;;  %v2749_v56 = vmul.f32 1.442695, %v2685_v38  ;;  %v2753_v21 = vmul.f32 1.442695, %v2687_v37 }
 0x27e   :  { %5672 = vpow2.f32 %v2779_v32  ;;  %v2755_v14 = vmul.f32 1.442695, %v2688_v3  ;;  %v2392_v5 = vrot.slane %v7480_v57, %v7466_v36  ;;  %v2690_v24 = vsub.f32 %v7165_v15, %v2388_v30 }
 0x27f   :  { %5674 = vpow2.f32 %v2751_v19  ;;  %v2757_v8 = vmul.f32 1.442695, %v2689_v44  ;;  %v2396_v49 = vrot.slane %v7480_v57, %v7473_v45 }
 0x280   :  { %5676 = vpow2.f32 %v2749_v56  ;;  %v2759_v15 = vmul.f32 1.442695, %v2690_v24  ;;  %v2691_v32 = vsub.f32 %v7198_v7, %v2392_v5 }
 0x281   :  { %v7493_v10 = vpop.eup %5658  ;;  %5678 = vpow2.f32 %v2753_v21  ;;  %v2692_v43 = vsub.f32 %v7202_v54, %v2396_v49 }
 0x282   :  { %v7495_v22 = vpop.eup %5660  ;;  %2966 = vperm.xlu1 %5528, %v7493_v10   ;;  %5680 = vpow2.f32 %v2755_v14  ;;  %v2761_v7 = vmul.f32 1.442695, %v2691_v32 }
 0x283   :  { %2969 = vperm.xlu0 %5529, %v7495_v22   ;;  %v7502_v1 = vpop.eup %5662  ;;  %5682 = vpow2.f32 %v2757_v8  ;;  %v2763_v14 = vmul.f32 1.442695, %v2692_v43 }
 0x284   :  { %v7504_v52 = vpop.eup %5664  ;;  %5684 = vpow2.f32 %v2759_v15 }
 0x285   :  { %v7511_v2 = vpop.eup %5666 }
 0x286   :  { %2972 = vperm.xlu1 %5528, %v7502_v1   ;;  %v7513_v16 = vpop.eup %5668 }
 0x287   :  { %2975 = vperm.xlu0 %5529, %v7504_v52   ;;  %v7520_v26 = vpop.eup %5670 }
 0x288   :  { %v7522_v6 = vpop.eup %5672 }
 0x289   :  { %v7531_v46 = vpop.eup %5674 }
 0x28a   :  { %2978 = vperm.xlu1 %5528, %v7511_v2   ;;  %v7537_v18 = vpop.eup %5676 }
 0x28b   :  { %2981 = vperm.xlu0 %5529, %v7513_v16   ;;  %v7548_v37 = vpop.eup %5678 }
 0x28e   :  { %2984 = vperm.xlu1 %5528, %v7520_v26  }
 0x28f   :  { %2987 = vperm.xlu0 %5529, %v7522_v6  }
 0x290   :  { %v7529_v12 = vpop.xlane.xlu1 %2343 }
 0x291   :  { %v2468_v25 = vrot.slane %v7529_v12, %v7447_v40  ;;  %v2476_v47 = vrot.slane %v7529_v12, %v7453_v61  ;;  %v2484_v38 = vrot.slane %v7529_v12, %v7459_v13  ;;  %v2464_v57 = vrot.slane %v7529_v12, %v6425_v9 }
 0x292   :  { %2945 = vperm.xlu1 %5528, %v7531_v46   ;;  %v2492_v21 = vrot.slane %v7529_v12, %v7473_v45  ;;  %v2472_v54 = vrot.slane %v7529_v12, %v7450_v59 }
 0x293   :  { %2942 = vperm.xlu0 %5529, %v7537_v18   ;;  %v2710_v17 = vsub.f32 %v7192_v4, %v2468_v25  ;;  %v2712_v19 = vsub.f32 %v7216_v27, %v2476_v47  ;;  %v2714_v4 = vsub.f32 %v7226_v11, %v2484_v38  ;;  %v7557_v27 = vpop.eup %5680  ;;  %v2709_v44 = vsub.f32 %v7189_v63, %v2464_v57 }
 0x294   :  { %v2716_v24 = vsub.f32 %v7260_v48, %v2492_v21  ;;  %v7568_v8 = vpop.eup %5682  ;;  %v2480_v47 = vrot.slane %v7529_v12, %v7456_v39  ;;  %v2711_v49 = vsub.f32 %v7214_v29, %v2472_v54 }
 0x295   :  { %v2799_v56 = vmul.f32 1.442695, %v2710_v17  ;;  %v2803_v3 = vmul.f32 1.442695, %v2712_v19  ;;  %v2807_v5 = vmul.f32 1.442695, %v2714_v4  ;;  %v7574_v15 = vpop.eup %5684  ;;  %v2488_v17 = vrot.slane %v7529_v12, %v7466_v36 }
 0x296   :  { %2948 = vperm.xlu1 %5528, %v7548_v37   ;;  %v2797_v25 = vmul.f32 1.442695, %v2709_v44  ;;  %v2811_v63 = vmul.f32 1.442695, %v2716_v24  ;;  %v2713_v19 = vsub.f32 %v7222_v58, %v2480_v47  ;;  %v2801_v29 = vmul.f32 1.442695, %v2711_v49 }
 0x297   :  { %5686 = vpow2.f32 %v2799_v56  ;;  %v2715_v12 = vsub.f32 %v7255_v33, %v2488_v17 }
 0x298   :  { %v7559_v30 = vpop.xlane.xlu0 %2340  ;;  %5688 = vpow2.f32 %v2761_v7  ;;  %v2805_v21 = vmul.f32 1.442695, %v2713_v19 }
 0x299   :  { %5690 = vpow2.f32 %v2803_v3  ;;  %v2436_v11 = vrot.slane %v7559_v30, %v7447_v40  ;;  %v2444_v48 = vrot.slane %v7559_v30, %v7453_v61  ;;  %v2452_v57 = vrot.slane %v7559_v30, %v7459_v13 }
 0x29a   :  { %2951 = vperm.xlu1 %5528, %v7557_v27   ;;  %5692 = vpow2.f32 %v2763_v14  ;;  %v2432_v58 = vrot.slane %v7559_v30, %v6425_v9  ;;  %v2460_v4 = vrot.slane %v7559_v30, %v7473_v45  ;;  %v2809_v33 = vmul.f32 1.442695, %v2715_v12 }
 0x29b   :  { %5694 = vpow2.f32 %v2807_v5  ;;  %v2702_v32 = vsub.f32 %v7211_v50, %v2436_v11  ;;  %v2704_v7 = vsub.f32 %v7234_v62, %v2444_v48  ;;  %v2706_v14 = vsub.f32 %v7245_v0, %v2452_v57 }
 0x29c   :  { %5696 = vpow2.f32 %v2797_v25  ;;  %v2440_v54 = vrot.slane %v7559_v30, %v7450_v59  ;;  %v2701_v5 = vsub.f32 %v7208_v28, %v2432_v58  ;;  %v2708_v25 = vsub.f32 %v7282_v34, %v2460_v4 }
 0x29d   :  { %5698 = vpow2.f32 %v2811_v63  ;;  %v2783_v50 = vmul.f32 1.442695, %v2702_v32  ;;  %v2787_v62 = vmul.f32 1.442695, %v2704_v7  ;;  %v2791_v11 = vmul.f32 1.442695, %v2706_v14 }
 0x29e   :  { %2954 = vperm.xlu1 %5528, %v7568_v8   ;;  %5700 = vpow2.f32 %v2801_v29  ;;  %v2448_v47 = vrot.slane %v7559_v30, %v7456_v39  ;;  %v2703_v63 = vsub.f32 %v7231_v41, %v2440_v54  ;;  %v2781_v49 = vmul.f32 1.442695, %v2701_v5 }
 0x29f   :  { %5702 = vpow2.f32 %v2783_v50  ;;  %v2795_v48 = vmul.f32 1.442695, %v2708_v25  ;;  %v2456_v29 = vrot.slane %v7559_v30, %v7466_v36 }
 0x2a0   :  { %5704 = vpow2.f32 %v2805_v21  ;;  %v2705_v41 = vsub.f32 %v7241_v35, %v2448_v47  ;;  %v2785_v57 = vmul.f32 1.442695, %v2703_v63 }
 0x2a1   :  { %v7579_v38 = vpop.eup %5686  ;;  %5706 = vpow2.f32 %v2787_v62  ;;  %v2707_v35 = vsub.f32 %v7278_v60, %v2456_v29 }
 0x2a2   :  { %2957 = vperm.xlu1 %5528, %v7574_v15   ;;  %3017 = vperm.xlu0 %5529, %v7579_v38   ;;  %v7586_v56 = vpop.eup %5688  ;;  %5708 = vpow2.f32 %v2809_v33  ;;  %v2789_v4 = vmul.f32 1.442695, %v2705_v41 }
 0x2a3   :  { %v7591_v43 = vpop.eup %5690  ;;  %5710 = vpow2.f32 %v2791_v11  ;;  %v2793_v60 = vmul.f32 1.442695, %v2707_v35 }
 0x2a4   :  { %v7598_v3 = vpop.eup %5692  ;;  %5712 = vpow2.f32 %v2781_v49 }
 0x2a5   :  { %v7603_v44 = vpop.eup %5694  ;;  %5714 = vpow2.f32 %v2795_v48 }
 0x2a6   :  { %2960 = vperm.xlu1 %5528, %v7586_v56   ;;  %3023 = vperm.xlu0 %5529, %v7591_v43   ;;  %v7610_v24 = vpop.eup %5696  ;;  %5716 = vpow2.f32 %v2785_v57 }
 0x2a7   :  { %v7613_v0 = vpop.eup %5698 }
 0x2a8   :  { %v7622_v32 = vpop.eup %5700 }
 0x2a9   :  { %v7628_v19 = vpop.eup %5702 }
 0x2aa   :  { %2963 = vperm.xlu1 %5528, %v7598_v3   ;;  %3029 = vperm.xlu0 %5529, %v7603_v44   ;;  %v7639_v21 = vpop.eup %5704 }
 0x2ab   :  { %v7641_v30 = vpop.eup %5706 }
 0x2ac   :  { %v7651_v33 = vpop.eup %5708 }
 0x2ad   :  { %v7655_v5 = vpop.eup %5710 }
 0x2ae   :  { %3014 = vperm.xlu1 %5528, %v7610_v24   ;;  %3035 = vperm.xlu0 %5529, %v7613_v0   ;;  %v7665_v49 = vpop.eup %5712 }
 0x2af   :  { %v7667_v48 = vpop.eup %5714 }
 0x2b0   :  { %v7620_v28 = vpop.xlane.xlu1 %2349  ;;  %v7677_v57 = vpop.eup %5716 }
 0x2b1   :  { %v2532_v34 = vrot.slane %v7620_v28, %v7447_v40  ;;  %v2540_v17 = vrot.slane %v7620_v28, %v7453_v61  ;;  %v2548_v7 = vrot.slane %v7620_v28, %v7459_v13  ;;  %v2536_v11 = vrot.slane %v7620_v28, %v7450_v59 }
 0x2b2   :  { %3020 = vperm.xlu1 %5528, %v7622_v32   ;;  %2993 = vperm.xlu0 %5529, %v7628_v19  }
 0x2b3   :  { %v2726_v50 = vsub.f32 %v7272_v55, %v2532_v34  ;;  %v2728_v12 = vsub.f32 %v7296_v53, %v2540_v17  ;;  %v2528_v55 = vrot.slane %v7620_v28, %v6425_v9  ;;  %v2556_v53 = vrot.slane %v7620_v28, %v7473_v45 }
 0x2b4   :  { %v2730_v62 = vsub.f32 %v7304_v20, %v2548_v7  ;;  %v2544_v34 = vrot.slane %v7620_v28, %v7456_v39  ;;  %v2552_v7 = vrot.slane %v7620_v28, %v7466_v36  ;;  %v8933_v28 = vld [vmem:[#allocation73_spill] sm:$0xff] }
 0x2b5   :  { %v2831_v58 = vmul.f32 1.442695, %v2726_v50  ;;  %v2835_v14 = vmul.f32 1.442695, %v2728_v12  ;;  %v2725_v25 = vsub.f32 %v7269_v23, %v2528_v55  ;;  %v2732_v20 = vsub.f32 %v7340_v31, %v2556_v53 }
 0x2b6   :  { %3026 = vperm.xlu1 %5528, %v7639_v21   ;;  %2999 = vperm.xlu0 %5529, %v7641_v30   ;;  %v2839_v47 = vmul.f32 1.442695, %v2730_v62  ;;  %v2727_v23 = vsub.f32 %v7294_v42, %v2536_v11  ;;  %v8931_v42 = vld [vmem:[#allocation29_spill] sm:$0xff] }
 0x2b7   :  { %5718 = vpow2.f32 %v2831_v58  ;;  %v2829_v17 = vmul.f32 1.442695, %v2725_v25  ;;  %v2843_v31 = vmul.f32 1.442695, %v2732_v20  ;;  %v2729_v12 = vsub.f32 %v8931_v42, %v2544_v34  ;;  %v8934_v20 = vld [vmem:[#allocation72_spill] sm:$0xff] }
 0x2b8   :  { %v7653_v54 = vpop.xlane.xlu0 %2346  ;;  %5720 = vpow2.f32 %v2789_v4  ;;  %v2833_v58 = vmul.f32 1.442695, %v2727_v23 }
 0x2b9   :  { %5722 = vpow2.f32 %v2835_v14  ;;  %v2500_v63 = vrot.slane %v7653_v54, %v7447_v40  ;;  %v2508_v29 = vrot.slane %v7653_v54, %v7453_v61  ;;  %v2516_v35 = vrot.slane %v7653_v54, %v7459_v13 }
 0x2ba   :  { %3032 = vperm.xlu1 %5528, %v7651_v33   ;;  %3005 = vperm.xlu0 %5529, %v7655_v5   ;;  %5724 = vpow2.f32 %v2793_v60  ;;  %v2731_v14 = vsub.f32 %v8933_v28, %v2552_v7  ;;  %v2837_v60 = vmul.f32 1.442695, %v2729_v12  ;;  %v2496_v11 = vrot.slane %v7653_v54, %v6425_v9  ;;  %v8937_v7 = vld [vmem:[#allocation77_spill] sm:$0xff] }
 0x2bb   :  { %5726 = vpow2.f32 %v2839_v47  ;;  %v2718_v41 = vsub.f32 %v7291_v51, %v2500_v63  ;;  %v8932_v51 = vld [vmem:[#allocation70_spill] sm:$0xff]  ;;  %v2524_v25 = vrot.slane %v7653_v54, %v7473_v45  ;;  %v2722_v47 = vsub.f32 %v8934_v20, %v2516_v35 }
 0x2bc   :  { %5728 = vpow2.f32 %v2829_v17  ;;  %v2720_v4 = vsub.f32 %v8932_v51, %v2508_v29  ;;  %v2841_v17 = vmul.f32 1.442695, %v2731_v14  ;;  %v8936_v29 = vld [vmem:[#allocation17_spill] sm:$0xff]  ;;  %v2512_v51 = vrot.slane %v7653_v54, %v7456_v39 }
 0x2bd   :  { %5730 = vpow2.f32 %v2843_v31  ;;  %v2815_v55 = vmul.f32 1.442695, %v2718_v41  ;;  %v2504_v31 = vrot.slane %v7653_v54, %v7450_v59  ;;  %v2717_v41 = vsub.f32 %v8936_v29, %v2496_v11 }
 0x2be   :  { %2990 = vperm.xlu1 %5528, %v7665_v49   ;;  %3011 = vperm.xlu0 %5529, %v7667_v48   ;;  %5732 = vpow2.f32 %v2833_v58  ;;  %v2819_v63 = vmul.f32 1.442695, %v2720_v4  ;;  %v2724_v42 = vsub.f32 %v8937_v7, %v2524_v25  ;;  %v2823_v12 = vmul.f32 1.442695, %v2722_v47  ;;  %v8939_v4 = vld [vmem:[#allocation69_spill] sm:$0xff] }
 0x2bf   :  { %5734 = vpow2.f32 %v2815_v55  ;;  %v2719_v55 = vsub.f32 %v8939_v4, %v2504_v31  ;;  %v2813_v28 = vmul.f32 1.442695, %v2717_v41  ;;  %v8943_v41 = vld [vmem:[#allocation75_spill] sm:$0xff] }
 0x2c0   :  { %5736 = vpow2.f32 %v2837_v60  ;;  %v2827_v14 = vmul.f32 1.442695, %v2724_v42 }
 0x2c1   :  { %v7679_v50 = vpop.eup %5718  ;;  %5738 = vpow2.f32 %v2819_v63  ;;  %v2520_v63 = vrot.slane %v7653_v54, %v7466_v36  ;;  %v2817_v29 = vmul.f32 1.442695, %v2719_v55 }
 0x2c2   :  { %2996 = vperm.xlu1 %5528, %v7677_v57   ;;  %3065 = vperm.xlu0 %5529, %v7679_v50   ;;  %v7689_v53 = vpop.eup %5720  ;;  %5740 = vpow2.f32 %v2841_v17  ;;  %v8942_v17 = vld [vmem:[#allocation71_spill] sm:$0xff] }
 0x2c3   :  { %v7691_v62 = vpop.eup %5722  ;;  %5742 = vpow2.f32 %v2823_v12  ;;  %v2721_v31 = vsub.f32 %v8942_v17, %v2512_v51  ;;  %v8944_v12 = vld [vmem:[#allocation81_spill] sm:$0xff]  ;;  %v8947_v51 = vld [vmem:[#allocation76_spill] sm:$0xff] }
 0x2c4   :  { %v7701_v34 = vpop.eup %5724  ;;  %5744 = vpow2.f32 %v2813_v28  ;;  %v2723_v28 = vsub.f32 %v8947_v51, %v2520_v63 }
 0x2c5   :  { %v7703_v23 = vpop.eup %5726  ;;  %5746 = vpow2.f32 %v2827_v14  ;;  %v2821_v55 = vmul.f32 1.442695, %v2721_v31 }
 0x2c6   :  { %3002 = vperm.xlu1 %5528, %v7689_v53   ;;  %3071 = vperm.xlu0 %5529, %v7691_v62   ;;  %8935 = vst [vmem:[#allocation29_spill] sm:$0xff] %v7703_v23  ;;  %v7711_v58 = vpop.eup %5728  ;;  %5748 = vpow2.f32 %v2817_v29  ;;  %v2825_v63 = vmul.f32 1.442695, %v2723_v28  ;;  %v8951_v29 = vld [vmem:[#allocation74_spill] sm:$0xff] }
 0x2c7   :  { %v7713_v35 = vpop.eup %5730 }
 0x2c8   :  { %8938 = vst [vmem:[#allocation70_spill] sm:$0xff] %v7713_v35  ;;  %v7722_v11 = vpop.eup %5732 }
 0x2c9   :  { %8940 = vst [vmem:[#allocation73_spill] sm:$0xff] %v7722_v11  ;;  %v7728_v47 = vpop.eup %5734 }
 0x2ca   :  { %3008 = vperm.xlu1 %5528, %v7701_v34   ;;  %3077 = vperm.xlu0 %5529, %v7703_v23   ;;  %8941 = vst [vmem:[#allocation72_spill] sm:$0xff] %v7728_v47 }
 0x2ce   :  { %3062 = vperm.xlu1 %5528, %v7711_v58   ;;  %3083 = vperm.xlu0 %5529, %v7713_v35   ;;  %v7739_v35 = vpop.eup %5736 }
 0x2cf   :  { %8945 = vst [vmem:[#allocation17_spill] sm:$0xff] %v7739_v35  ;;  %v7741_v54 = vpop.eup %5738 }
 0x2d0   :  { %v7720_v60 = vpop.xlane.xlu1 %2355  ;;  %8946 = vst [vmem:[#allocation77_spill] sm:$0xff] %v7741_v54 }
 0x2d1   :  { %v2596_v25 = vrot.slane %v7720_v60, %v7447_v40  ;;  %v2604_v20 = vrot.slane %v7720_v60, %v7453_v61  ;;  %v2612_v42 = vrot.slane %v7720_v60, %v7459_v13  ;;  %v2620_v14 = vrot.slane %v7720_v60, %v7473_v45 }
 0x2d2   :  { %3068 = vperm.xlu1 %5528, %v7722_v11   ;;  %3041 = vperm.xlu0 %5529, %v7728_v47   ;;  %v2600_v31 = vrot.slane %v7720_v60, %v7450_v59  ;;  %v2608_v28 = vrot.slane %v7720_v60, %v7456_v39 }
 0x2d3   :  { %v2742_v7 = vsub.f32 %v8943_v41, %v2596_v25  ;;  %v2744_v4 = vsub.f32 %v8944_v12, %v2604_v20  ;;  %v2592_v25 = vrot.slane %v7720_v60, %v6425_v9  ;;  %v8948_v20 = vld [vmem:[#allocation83_spill] sm:$0xff] }
 0x2d4   :  { %v2746_v17 = vsub.f32 %v8948_v20, %v2612_v42  ;;  %v7753_v12 = vpop.xlane.xlu0 %2352  ;;  %v8952_v42 = vld [vmem:[#allocation89_spill] sm:$0xff] }
 0x2d5   :  { %v2863_v23 = vmul.f32 1.442695, %v2742_v7  ;;  %v2867_v41 = vmul.f32 1.442695, %v2744_v4  ;;  %v7751_v7 = vpop.eup %5740  ;;  %v2741_v51 = vsub.f32 %v8951_v29, %v2592_v25  ;;  %v2564_v20 = vrot.slane %v7753_v12, %v7447_v40 }
 0x2d6   :  { %3074 = vperm.xlu1 %5528, %v7739_v35   ;;  %3047 = vperm.xlu0 %5529, %v7741_v54   ;;  %8949 = vst [vmem:[#allocation69_spill] sm:$0xff] %v7751_v7  ;;  %v7755_v47 = vpop.eup %5742  ;;  %v2871_v4 = vmul.f32 1.442695, %v2746_v17  ;;  %v2572_v17 = vrot.slane %v7753_v12, %v7453_v61 }
 0x2d7   :  { %5750 = vpow2.f32 %v2863_v23  ;;  %8950 = vst [vmem:[#allocation71_spill] sm:$0xff] %v7755_v47  ;;  %v2748_v23 = vsub.f32 %v8952_v42, %v2620_v14  ;;  %v7765_v54 = vpop.eup %5744  ;;  %v2861_v29 = vmul.f32 1.442695, %v2741_v51 }
 0x2d8   :  { %5752 = vpow2.f32 %v2821_v55  ;;  %8953 = vst [vmem:[#allocation75_spill] sm:$0xff] %v7765_v54  ;;  %v7767_v35 = vpop.eup %5746  ;;  %v8955_v55 = vld [vmem:[#allocation80_spill] sm:$0xff] }
 0x2d9   :  { %5754 = vpow2.f32 %v2867_v41  ;;  %8954 = vst [vmem:[#allocation81_spill] sm:$0xff] %v7767_v35  ;;  %v2743_v25 = vsub.f32 %v8955_v55, %v2600_v31  ;;  %v2875_v14 = vmul.f32 1.442695, %v2748_v23  ;;  %v8956_v41 = vld [vmem:[#allocation79_spill] sm:$0xff]  ;;  %v8959_v31 = vld [vmem:[#allocation82_spill] sm:$0xff]  ;;  %v2580_v23 = vrot.slane %v7753_v12, %v7459_v13 }
 0x2da   :  { %3080 = vperm.xlu1 %5528, %v7751_v7   ;;  %3053 = vperm.xlu0 %5529, %v7755_v47   ;;  %5756 = vpow2.f32 %v2825_v63  ;;  %v2734_v42 = vsub.f32 %v8956_v41, %v2564_v20  ;;  %v7777_v47 = vpop.eup %5748  ;;  %v2616_v63 = vrot.slane %v7720_v60, %v7466_v36  ;;  %v2745_v51 = vsub.f32 %v8959_v31, %v2608_v28  ;;  %v8963_v60 = vld [vmem:[#allocation88_spill] sm:$0xff] }
 0x2db   :  { %5758 = vpow2.f32 %v2871_v4  ;;  %8957 = vst [vmem:[#allocation76_spill] sm:$0xff] %v7777_v47  ;;  %v2865_v55 = vmul.f32 1.442695, %v2743_v25  ;;  %v8960_v4 = vld [vmem:[#allocation85_spill] sm:$0xff]  ;;  %v2560_v25 = vrot.slane %v7753_v12, %v6425_v9 }
 0x2dc   :  { %5760 = vpow2.f32 %v2861_v29  ;;  %v2736_v20 = vsub.f32 %v8960_v4, %v2572_v17  ;;  %v2847_v41 = vmul.f32 1.442695, %v2734_v42  ;;  %v2869_v28 = vmul.f32 1.442695, %v2745_v51 }
 0x2dd   :  { %5762 = vpow2.f32 %v2875_v14  ;;  %v2588_v29 = vrot.slane %v7753_v12, %v7473_v45  ;;  %v8964_v14 = vld [vmem:[#allocation87_spill] sm:$0xff]  ;;  %v2568_v51 = vrot.slane %v7753_v12, %v7450_v59 }
 0x2de   :  { %3038 = vperm.xlu1 %5528, %v7765_v54   ;;  %3059 = vperm.xlu0 %5529, %v7767_v35   ;;  %5764 = vpow2.f32 %v2865_v55  ;;  %v2738_v17 = vsub.f32 %v8964_v14, %v2580_v23  ;;  %v2851_v42 = vmul.f32 1.442695, %v2736_v20  ;;  %v8967_v55 = vld [vmem:[#allocation78_spill] sm:$0xff] }
 0x2df   :  { %5766 = vpow2.f32 %v2847_v41 }
 0x2e0   :  { %5768 = vpow2.f32 %v2869_v28  ;;  %v2855_v23 = vmul.f32 1.442695, %v2738_v17  ;;  %v8971_v28 = vld [vmem:[#allocation84_spill] sm:$0xff]  ;;  %v2584_v17 = vrot.slane %v7753_v12, %v7466_v36 }
 0x2e1   :  { %v7779_v7 = vpop.eup %5750  ;;  %5770 = vpow2.f32 %v2851_v42  ;;  %v2735_v14 = vsub.f32 %v8971_v28, %v2568_v51  ;;  %v8974_v42 = vld [vmem:[#allocation86_spill] sm:$0xff] }
 0x2e2   :  { %8958 = vst [vmem:[#allocation83_spill] sm:$0xff] %v7779_v7  ;;  %3044 = vperm.xlu1 %5528, %v7777_v47   ;;  %3113 = vperm.xlu0 %5529, %v7779_v7   ;;  %v7789_v35 = vpop.eup %5752  ;;  %v2747_v47 = vsub.f32 %v8963_v60, %v2616_v63  ;;  %v2733_v60 = vsub.f32 %v8967_v55, %v2560_v25 }
 0x2e3   :  { %8961 = vst [vmem:[#allocation74_spill] sm:$0xff] %v7789_v35  ;;  %v7791_v54 = vpop.eup %5754  ;;  %v2849_v55 = vmul.f32 1.442695, %v2735_v14 }
 0x2e4   :  { %8962 = vst [vmem:[#allocation89_spill] sm:$0xff] %v7791_v54  ;;  %v7801_v31 = vpop.eup %5756  ;;  %v2873_v63 = vmul.f32 1.442695, %v2747_v47  ;;  %v2576_v47 = vrot.slane %v7753_v12, %v7456_v39 }
 0x2e5   :  { %8965 = vst [vmem:[#allocation80_spill] sm:$0xff] %v7801_v31  ;;  %v7803_v4 = vpop.eup %5758 }
 0x2e6   :  { %3050 = vperm.xlu1 %5528, %v7789_v35   ;;  %3119 = vperm.xlu0 %5529, %v7791_v54   ;;  %8966 = vst [vmem:[#allocation79_spill] sm:$0xff] %v7803_v4  ;;  %v8968_v54 = vld [vmem:[#allocation91_spill] sm:$0xff]  ;;  %v7811_v20 = vpop.eup %5760  ;;  %5772 = vpow2.f32 %v2873_v63  ;;  %v2737_v63 = vsub.f32 %v8974_v42, %v2576_v47 }
 0x2e7   :  { %v2740_v7 = vsub.f32 %v8968_v54, %v2588_v29  ;;  %8969 = vst [vmem:[#allocation82_spill] sm:$0xff] %v7811_v20  ;;  %v7813_v41 = vpop.eup %5762  ;;  %5774 = vpow2.f32 %v2855_v23 }
 0x2e8   :  { %8970 = vst [vmem:[#allocation85_spill] sm:$0xff] %v7813_v41  ;;  %v7820_v54 = vpop.eup %5764  ;;  %v2853_v28 = vmul.f32 1.442695, %v2737_v63 }
 0x2e9   :  { %v2859_v25 = vmul.f32 1.442695, %v2740_v7  ;;  %8972 = vst [vmem:[#allocation88_spill] sm:$0xff] %v7820_v54  ;;  %v7822_v29 = vpop.eup %5766  ;;  %v8977_v7 = vld [vmem:[#allocation90_spill] sm:$0xff] }
 0x2ea   :  { %3056 = vperm.xlu1 %5528, %v7801_v31   ;;  %3125 = vperm.xlu0 %5529, %v7803_v4   ;;  %v2845_v31 = vmul.f32 1.442695, %v2733_v60  ;;  %8973 = vst [vmem:[#allocation87_spill] sm:$0xff] %v7822_v29  ;;  %v7829_v51 = vpop.eup %5768  ;;  %v2739_v23 = vsub.f32 %v8977_v7, %v2584_v17 }
 0x2eb   :  { %8975 = vst [vmem:[#allocation78_spill] sm:$0xff] %v7829_v51  ;;  %v7831_v60 = vpop.eup %5770 }
 0x2ec   :  { %5776 = vpow2.f32 %v2845_v31  ;;  %8976 = vst [vmem:[#allocation91_spill] sm:$0xff] %v7831_v60  ;;  %v2857_v31 = vmul.f32 1.442695, %v2739_v23 }
 0x2ed   :  { %5778 = vpow2.f32 %v2859_v25 }
 0x2ee   :  { %3110 = vperm.xlu1 %5528, %v7811_v20   ;;  %3131 = vperm.xlu0 %5529, %v7813_v41   ;;  %5780 = vpow2.f32 %v2849_v55 }
 0x2ef   :  { %5782 = vpow2.f32 %v2853_v28 }
 0x2f0   :  { %v7836_v12 = vpop.eup %5772  ;;  %5784 = vpow2.f32 %v2857_v31 }
 0x2f1   :  { %8978 = vst [vmem:[#allocation84_spill] sm:$0xff] %v7836_v12  ;;  %v7838_v47 = vpop.eup %5774 }
 0x2f2   :  { %3116 = vperm.xlu1 %5528, %v7820_v54   ;;  %3089 = vperm.xlu0 %5529, %v7822_v29   ;;  %8979 = vst [vmem:[#allocation86_spill] sm:$0xff] %v7838_v47 }
 0x2f6   :  { %3122 = vperm.xlu1 %5528, %v7829_v51   ;;  %3095 = vperm.xlu0 %5529, %v7831_v60   ;;  %v7842_v14 = vpop.eup %5776 }
 0x2f7   :  { %8980 = vst [vmem:[#allocation90_spill] sm:$0xff] %v7842_v14  ;;  %v7844_v25 = vpop.eup %5778 }
 0x2f8   :  { %8981 = vst [vmem:[#allocation92_spill] sm:$0xff] %v7844_v25  ;;  %v7848_v17 = vpop.eup %5780 }
 0x2f9   :  { %8982 = vst [vmem:[#allocation93_spill] sm:$0xff] %v7848_v17  ;;  %v7851_v55 = vpop.eup %5782 }
 0x2fa   :  { %3128 = vperm.xlu1 %5528, %v7836_v12   ;;  %3101 = vperm.xlu0 %5529, %v7838_v47   ;;  %8983 = vst [vmem:[#allocation94_spill] sm:$0xff] %v7851_v55  ;;  %v7854_v28 = vpop.eup %5784  ;;  %v8985_v47 = vld [vmem:[#allocation18_spill] sm:$0xff] }
 0x2fb   :  { %8984 = vst [vmem:[#allocation95_spill] sm:$0xff] %v7854_v28 }
 0x2fe   :  { %3086 = vperm.xlu1 %5528, %v7842_v14   ;;  %3107 = vperm.xlu0 %5529, %v7844_v25  }
 0x301   :  { %v2967_v42 = vpop.permute.xlu1 %2966 }
 0x302   :  { %v2970_v63 = vpop.permute.xlu0 %2969  ;;  %3092 = vperm.xlu1 %5528, %v7848_v17   ;;  %v3168_v60 = vrot.slane %v2967_v42, %v8985_v47 }
 0x303   :  { %v3172_v31 = vrot.slane %v2970_v63, %v8985_v47 }
 0x305   :  { %v2973_v7 = vpop.permute.xlu1 %2972  ;;  %v3396_v17 = vsel %vm2261_vm2, %v3172_v31, %v3168_v60 }
 0x306   :  { %3098 = vperm.xlu1 %5528, %v7851_v55   ;;  %v2976_v23 = vpop.permute.xlu0 %2975  ;;  %v3176_v25 = vrot.slane %v2973_v7, %v8985_v47 }
 0x307   :  { %v3180_v12 = vrot.slane %v2976_v23, %v8985_v47 }
 0x308   :  { %v3397_v55 = vsel %vm2263_vm3, %v3176_v25, %v3396_v17 }
 0x309   :  { %v2979_v41 = vpop.permute.xlu1 %2978  ;;  %v3398_v54 = vsel %vm2265_vm4, %v3180_v12, %v3397_v55 }
 0x30a   :  { %3104 = vperm.xlu1 %5528, %v7854_v28   ;;  %v2982_v14 = vpop.permute.xlu0 %2981  ;;  %v3184_v51 = vrot.slane %v2979_v41, %v8985_v47 }
 0x30b   :  { %v3188_v42 = vrot.slane %v2982_v14, %v8985_v47 }
 0x30c   :  { %v3399_v63 = vsel %vm2267_vm5, %v3184_v51, %v3398_v54 }
 0x30d   :  { %v2985_v29 = vpop.permute.xlu1 %2984  ;;  %v3400_v35 = vsel %vm2269_vm6, %v3188_v42, %v3399_v63 }
 0x30e   :  { %v3192_v28 = vrot.slane %v2985_v29, %v8985_v47  ;;  %v2988_v7 = vpop.permute.xlu0 %2987 }
 0x30f   :  { %v3196_v60 = vrot.slane %v2988_v7, %v8985_v47 }
 0x310   :  { %v3401_v23 = vsel %vm2271_vm7, %v3192_v28, %v3400_v35 }
 0x311   :  { %v2946_v4 = vpop.permute.xlu1 %2945  ;;  %v3402_v41 = vsel %vm2273_vm8, %v3196_v60, %v3401_v23 }
 0x312   :  { %v2943_v17 = vpop.permute.xlu0 %2942  ;;  %v3456_v12 = vsel %vm2332_vm9, %v3402_v41, 0.0  ;;  %v3140_v29 = vrot.slane %v2946_v4, %v8985_v47 }
 0x313   :  { %v3136_v51 = vrot.slane %v2943_v17, %v8985_v47 }
 0x315   :  { %v2949_v20 = vpop.permute.xlu1 %2948  ;;  %v3389_v7 = vsel %vm2261_vm2, %v3140_v29, %v3136_v51 }
 0x316   :  { %v3144_v55 = vrot.slane %v2949_v20, %v8985_v47 }
 0x318   :  { %v3390_v23 = vsel %vm2263_vm3, %v3144_v55, %v3389_v7 }
 0x319   :  { %v2952_v25 = vpop.permute.xlu1 %2951 }
 0x31a   :  { %v3148_v42 = vrot.slane %v2952_v25, %v8985_v47 }
 0x31c   :  { %v3391_v4 = vsel %vm2265_vm4, %v3148_v42, %v3390_v23 }
 0x31d   :  { %v2955_v31 = vpop.permute.xlu1 %2954  ;;  %3457 = vadd.xlane.f32.xlu0 %v3456_v12 }
 0x31e   :  { %v3152_v35 = vrot.slane %v2955_v31, %v8985_v47 }
 0x320   :  { %v3392_v17 = vsel %vm2267_vm5, %v3152_v35, %v3391_v4 }
 0x321   :  { %v2958_v14 = vpop.permute.xlu1 %2957  ;;  %v3018_v54 = vpop.permute.xlu0 %3017 }
 0x322   :  { %v3156_v60 = vrot.slane %v2958_v14, %v8985_v47  ;;  %v3236_v42 = vrot.slane %v3018_v54, %v8985_v47 }
 0x324   :  { %v3393_v25 = vsel %vm2269_vm6, %v3156_v60, %v3392_v17 }
 0x325   :  { %v2961_v28 = vpop.permute.xlu1 %2960  ;;  %v3024_v63 = vpop.permute.xlu0 %3023 }
 0x326   :  { %v3160_v41 = vrot.slane %v2961_v28, %v8985_v47 }
 0x328   :  { %v3394_v11 = vsel %vm2271_vm7, %v3160_v41, %v3393_v25  ;;  %v3244_v41 = vrot.slane %v3024_v63, %v8985_v47 }
 0x329   :  { %v2964_v12 = vpop.permute.xlu1 %2963  ;;  %v3030_v20 = vpop.permute.xlu0 %3029 }
 0x32a   :  { %v3164_v31 = vrot.slane %v2964_v12, %v8985_v47  ;;  %v3252_v54 = vrot.slane %v3030_v20, %v8985_v47 }
 0x32c   :  { %v3395_v29 = vsel %vm2273_vm8, %v3164_v31, %v3394_v11 }
 0x32d   :  { %v3015_v51 = vpop.permute.xlu1 %3014  ;;  %v3036_v14 = vpop.permute.xlu0 %3035  ;;  %v3453_v55 = vsel %vm2332_vm9, %v3395_v29, 0.0 }
 0x32e   :  { %3454 = vadd.xlane.f32.xlu1 %v3453_v55  ;;  %v3232_v28 = vrot.slane %v3015_v51, %v8985_v47 }
 0x330   :  { %v3410_v60 = vsel %vm2261_vm2, %v3236_v42, %v3232_v28  ;;  %v3260_v28 = vrot.slane %v3036_v14, %v8985_v47 }
 0x331   :  { %v3021_v35 = vpop.permute.xlu1 %3020  ;;  %v2994_v23 = vpop.permute.xlu0 %2993 }
 0x332   :  { %v3240_v7 = vrot.slane %v3021_v35, %v8985_v47  ;;  %v3204_v20 = vrot.slane %v2994_v23, %v8985_v47 }
 0x334   :  { %v3411_v4 = vsel %vm2263_vm3, %v3240_v7, %v3410_v60 }
 0x335   :  { %v3027_v11 = vpop.permute.xlu1 %3026  ;;  %v3000_v12 = vpop.permute.xlu0 %2999  ;;  %v3412_v25 = vsel %vm2265_vm4, %v3244_v41, %v3411_v4 }
 0x336   :  { %v3248_v17 = vrot.slane %v3027_v11, %v8985_v47 }
 0x338   :  { %v3413_v31 = vsel %vm2267_vm5, %v3248_v17, %v3412_v25 }
 0x339   :  { %v3033_v29 = vpop.permute.xlu1 %3032  ;;  %v3006_v55 = vpop.permute.xlu0 %3005  ;;  %v3414_v42 = vsel %vm2269_vm6, %v3252_v54, %v3413_v31  ;;  %v3212_v54 = vrot.slane %v3000_v12, %v8985_v47 }
 0x33a   :  { %v3256_v51 = vrot.slane %v3033_v29, %v8985_v47  ;;  %v3220_v23 = vrot.slane %v3006_v55, %v8985_v47 }
 0x33c   :  { %v3415_v63 = vsel %vm2271_vm7, %v3256_v51, %v3414_v42 }
 0x33d   :  { %v2991_v35 = vpop.permute.xlu1 %2990  ;;  %v3416_v7 = vsel %vm2273_vm8, %v3260_v28, %v3415_v63  ;;  %v3012_v60 = vpop.permute.xlu0 %3011 }
 0x33e   :  { %v3462_v4 = vsel %vm2332_vm9, %v3416_v7, 0.0  ;;  %v3200_v41 = vrot.slane %v2991_v35, %v8985_v47 }
 0x33f   :  { %3463 = vadd.xlane.f32.xlu1 %v3462_v4 }
 0x340   :  { %v3403_v14 = vsel %vm2261_vm2, %v3204_v20, %v3200_v41  ;;  %v3228_v41 = vrot.slane %v3012_v60, %v8985_v47 }
 0x341   :  { %v2997_v11 = vpop.permute.xlu1 %2996  ;;  %v3066_v25 = vpop.permute.xlu0 %3065 }
 0x342   :  { %v3208_v17 = vrot.slane %v2997_v11, %v8985_v47  ;;  %v3300_v55 = vrot.slane %v3066_v25, %v8985_v47 }
 0x344   :  { %v3404_v31 = vsel %vm2263_vm3, %v3208_v17, %v3403_v14 }
 0x345   :  { %v3003_v29 = vpop.permute.xlu1 %3002  ;;  %v3072_v28 = vpop.permute.xlu0 %3071  ;;  %v3405_v42 = vsel %vm2265_vm4, %v3212_v54, %v3404_v31 }
 0x346   :  { %v3216_v51 = vrot.slane %v3003_v29, %v8985_v47 }
 0x348   :  { %v3406_v63 = vsel %vm2267_vm5, %v3216_v51, %v3405_v42 }
 0x349   :  { %v3009_v35 = vpop.permute.xlu1 %3008  ;;  %v3078_v4 = vpop.permute.xlu0 %3077  ;;  %v3407_v20 = vsel %vm2269_vm6, %v3220_v23, %v3406_v63  ;;  %v3308_v23 = vrot.slane %v3072_v28, %v8985_v47 }
 0x34a   :  { %v3224_v7 = vrot.slane %v3009_v35, %v8985_v47  ;;  %v3316_v25 = vrot.slane %v3078_v4, %v8985_v47 }
 0x34c   :  { %v3408_v12 = vsel %vm2271_vm7, %v3224_v7, %v3407_v20 }
 0x34d   :  { %v3063_v11 = vpop.permute.xlu1 %3062  ;;  %v3409_v17 = vsel %vm2273_vm8, %v3228_v41, %v3408_v12  ;;  %v3084_v14 = vpop.permute.xlu0 %3083 }
 0x34e   :  { %v3459_v31 = vsel %vm2332_vm9, %v3409_v17, 0.0  ;;  %v3296_v54 = vrot.slane %v3063_v11, %v8985_v47 }
 0x34f   :  { %3460 = vadd.xlane.f32.xlu0 %v3459_v31 }
 0x350   :  { %v3424_v60 = vsel %vm2261_vm2, %v3300_v55, %v3296_v54  ;;  %v3324_v54 = vrot.slane %v3084_v14, %v8985_v47 }
 0x351   :  { %v3069_v29 = vpop.permute.xlu1 %3068  ;;  %v3042_v42 = vpop.permute.xlu0 %3041 }
 0x352   :  { %v3304_v51 = vrot.slane %v3069_v29, %v8985_v47  ;;  %v3268_v4 = vrot.slane %v3042_v42, %v8985_v47 }
 0x354   :  { %v3425_v63 = vsel %vm2263_vm3, %v3304_v51, %v3424_v60 }
 0x355   :  { %v3075_v35 = vpop.permute.xlu1 %3074  ;;  %v3048_v41 = vpop.permute.xlu0 %3047  ;;  %v3426_v20 = vsel %vm2265_vm4, %v3308_v23, %v3425_v63 }
 0x356   :  { %v3312_v7 = vrot.slane %v3075_v35, %v8985_v47 }
 0x358   :  { %v3427_v12 = vsel %vm2267_vm5, %v3312_v7, %v3426_v20 }
 0x359   :  { %v3081_v11 = vpop.permute.xlu1 %3080  ;;  %v3054_v31 = vpop.permute.xlu0 %3053  ;;  %v3428_v55 = vsel %vm2269_vm6, %v3316_v25, %v3427_v12  ;;  %v3276_v25 = vrot.slane %v3048_v41, %v8985_v47 }
 0x35a   :  { %v3320_v17 = vrot.slane %v3081_v11, %v8985_v47  ;;  %v3284_v42 = vrot.slane %v3054_v31, %v8985_v47 }
 0x35c   :  { %v3429_v28 = vsel %vm2271_vm7, %v3320_v17, %v3428_v55 }
 0x35d   :  { %v3039_v29 = vpop.permute.xlu1 %3038  ;;  %v3430_v51 = vsel %vm2273_vm8, %v3324_v54, %v3429_v28  ;;  %v3060_v60 = vpop.permute.xlu0 %3059 }
 0x35e   :  { %v3468_v63 = vsel %vm2332_vm9, %v3430_v51, 0.0  ;;  %v3264_v23 = vrot.slane %v3039_v29, %v8985_v47 }
 0x35f   :  { %3469 = vadd.xlane.f32.xlu1 %v3468_v63 }
 0x360   :  { %v3417_v14 = vsel %vm2261_vm2, %v3268_v4, %v3264_v23  ;;  %v3292_v23 = vrot.slane %v3060_v60, %v8985_v47 }
 0x361   :  { %v3045_v35 = vpop.permute.xlu1 %3044  ;;  %v3114_v20 = vpop.permute.xlu0 %3113 }
 0x362   :  { %v3272_v7 = vrot.slane %v3045_v35, %v8985_v47  ;;  %v3364_v31 = vrot.slane %v3114_v20, %v8985_v47 }
 0x364   :  { %v3418_v12 = vsel %vm2263_vm3, %v3272_v7, %v3417_v14 }
 0x365   :  { %v3051_v11 = vpop.permute.xlu1 %3050  ;;  %v3120_v54 = vpop.permute.xlu0 %3119  ;;  %v3419_v55 = vsel %vm2265_vm4, %v3276_v25, %v3418_v12 }
 0x366   :  { %v3280_v17 = vrot.slane %v3051_v11, %v8985_v47 }
 0x368   :  { %v3420_v28 = vsel %vm2267_vm5, %v3280_v17, %v3419_v55 }
 0x369   :  { %v3057_v29 = vpop.permute.xlu1 %3056  ;;  %v3126_v63 = vpop.permute.xlu0 %3125  ;;  %v3421_v4 = vsel %vm2269_vm6, %v3284_v42, %v3420_v28  ;;  %v3372_v28 = vrot.slane %v3120_v54, %v8985_v47 }
 0x36a   :  { %v3288_v51 = vrot.slane %v3057_v29, %v8985_v47 }
 0x36c   :  { %v3422_v41 = vsel %vm2271_vm7, %v3288_v51, %v3421_v4 }
 0x36d   :  { %v3111_v35 = vpop.permute.xlu1 %3110  ;;  %v3423_v7 = vsel %vm2273_vm8, %v3292_v23, %v3422_v41  ;;  %v3132_v25 = vpop.permute.xlu0 %3131  ;;  %v3380_v41 = vrot.slane %v3126_v63, %v8985_v47 }
 0x36e   :  { %v3465_v14 = vsel %vm2332_vm9, %v3423_v7, 0.0  ;;  %v3360_v12 = vrot.slane %v3111_v35, %v8985_v47  ;;  %v3388_v7 = vrot.slane %v3132_v25, %v8985_v47 }
 0x36f   :  { %3466 = vadd.xlane.f32.xlu0 %v3465_v14 }
 0x370   :  { %v3438_v60 = vsel %vm2261_vm2, %v3364_v31, %v3360_v12 }
 0x371   :  { %v3117_v11 = vpop.permute.xlu1 %3116  ;;  %v3090_v29 = vpop.permute.xlu0 %3089 }
 0x372   :  { %v3368_v17 = vrot.slane %v3117_v11, %v8985_v47  ;;  %v3332_v63 = vrot.slane %v3090_v29, %v8985_v47 }
 0x374   :  { %v3439_v55 = vsel %vm2263_vm3, %v3368_v17, %v3438_v60 }
 0x375   :  { %v3123_v42 = vpop.permute.xlu1 %3122  ;;  %v3440_v23 = vsel %vm2265_vm4, %v3372_v28, %v3439_v55  ;;  %v3096_v12 = vpop.permute.xlu0 %3095 }
 0x376   :  { %v3376_v51 = vrot.slane %v3123_v42, %v8985_v47 }
 0x378   :  { %v3441_v4 = vsel %vm2267_vm5, %v3376_v51, %v3440_v23  ;;  %v3340_v23 = vrot.slane %v3096_v12, %v8985_v47 }
 0x379   :  { %v3129_v20 = vpop.permute.xlu1 %3128  ;;  %v3442_v14 = vsel %vm2269_vm6, %v3380_v41, %v3441_v4  ;;  %v3102_v28 = vpop.permute.xlu0 %3101 }
 0x37a   :  { %v3384_v35 = vrot.slane %v3129_v20, %v8985_v47  ;;  %v3348_v29 = vrot.slane %v3102_v28, %v8985_v47 }
 0x37c   :  { %v3443_v54 = vsel %vm2271_vm7, %v3384_v35, %v3442_v14 }
 0x37d   :  { %v3087_v31 = vpop.permute.xlu1 %3086  ;;  %v3444_v11 = vsel %vm2273_vm8, %v3388_v7, %v3443_v54  ;;  %v3108_v35 = vpop.permute.xlu0 %3107 }
 0x37e   :  { %v3474_v17 = vsel %vm2332_vm9, %v3444_v11, 0.0  ;;  %v3328_v60 = vrot.slane %v3087_v31, %v8985_v47  ;;  %v3356_v31 = vrot.slane %v3108_v35, %v8985_v47 }
 0x37f   :  { %3475 = vadd.xlane.f32.xlu1 %v3474_v17 }
 0x380   :  { %v3431_v25 = vsel %vm2261_vm2, %v3332_v63, %v3328_v60 }
 0x381   :  { %v3093_v55 = vpop.permute.xlu1 %3092 }
 0x382   :  { %v3336_v42 = vrot.slane %v3093_v55, %v8985_v47 }
 0x384   :  { %v3432_v51 = vsel %vm2263_vm3, %v3336_v42, %v3431_v25 }
 0x385   :  { %v3099_v4 = vpop.permute.xlu1 %3098  ;;  %v3433_v20 = vsel %vm2265_vm4, %v3340_v23, %v3432_v51 }
 0x386   :  { %v3344_v41 = vrot.slane %v3099_v4, %v8985_v47 }
 0x388   :  { %v3434_v7 = vsel %vm2267_vm5, %v3344_v41, %v3433_v20 }
 0x389   :  { %v3105_v14 = vpop.permute.xlu1 %3104  ;;  %v3435_v11 = vsel %vm2269_vm6, %v3348_v29, %v3434_v7 }
 0x38a   :  { %v3352_v54 = vrot.slane %v3105_v14, %v8985_v47 }
 0x38c   :  { %v3436_v17 = vsel %vm2271_vm7, %v3352_v54, %v3435_v11 }
 0x38d   :  { %v3437_v12 = vsel %vm2273_vm8, %v3356_v31, %v3436_v17 }
 0x38e   :  { %v3471_v60 = vsel %vm2332_vm9, %v3437_v12, 0.0 }
 0x38f   :  { %3472 = vadd.xlane.f32.xlu0 %v3471_v60 }
 0x3aa   :  { %v3458_v63 = vpop.xlane.xlu0 %3457 }
 0x3ab   :  { %v3524_v55 = vrot.slane %v3458_v63, %v7447_v40  ;;  %v3520_v42 = vrot.slane %v3458_v63, %v6425_v9  ;;  %v3532_v28 = vrot.slane %v3458_v63, %v7453_v61  ;;  %v3528_v25 = vrot.slane %v3458_v63, %v7450_v59 }
 0x3ac   :  { %v3540_v51 = vrot.slane %v3458_v63, %v7459_v13  ;;  %v3536_v23 = vrot.slane %v3458_v63, %v7456_v39  ;;  %v3548_v4 = vrot.slane %v3458_v63, %v7473_v45  ;;  %v3544_v41 = vrot.slane %v3458_v63, %v7466_v36 }
 0x3ad   :  { %5786 = vrcp.f32 %v3524_v55 }
 0x3ae   :  { %5788 = vrcp.f32 %v3520_v42 }
 0x3af   :  { %5790 = vrcp.f32 %v3532_v28 }
 0x3b0   :  { %5792 = vrcp.f32 %v3528_v25 }
 0x3b1   :  { %5794 = vrcp.f32 %v3540_v51 }
 0x3b2   :  { %5796 = vrcp.f32 %v3536_v23 }
 0x3b3   :  { %5798 = vrcp.f32 %v3548_v4 }
 0x3b4   :  { %5800 = vrcp.f32 %v3544_v41 }
 0x3b7   :  { %v5787_v20 = vpop.eup %5786 }
 0x3b8   :  { %v5789_v35 = vpop.eup %5788  ;;  %v3824_v7 = vmul.f32 %v5787_v20, %v7495_v22 }
 0x3b9   :  { %v5791_v29 = vpop.eup %5790  ;;  %v3822_v14 = vmul.f32 %v5789_v35, %v7493_v10 }
 0x3ba   :  { %v5793_v54 = vpop.eup %5792  ;;  %3980 = vperm.xlu0 %5529, %v3824_v7   ;;  %v3828_v60 = vmul.f32 %v5791_v29, %v7504_v52 }
 0x3bb   :  { %v3455_v31 = vpop.xlane.xlu1 %3454  ;;  %3975 = vperm.xlu1 %5528, %v3822_v14   ;;  %v5795_v55 = vpop.eup %5794  ;;  %v3826_v22 = vmul.f32 %v5793_v54, %v7502_v1 }
 0x3bc   :  { %v3488_v11 = vrot.slane %v3455_v31, %v6425_v9  ;;  %v3492_v17 = vrot.slane %v3455_v31, %v7447_v40  ;;  %v3500_v12 = vrot.slane %v3455_v31, %v7453_v61  ;;  %v3496_v63 = vrot.slane %v3455_v31, %v7450_v59  ;;  %v5797_v42 = vpop.eup %5796 }
 0x3bd   :  { %v3508_v10 = vrot.slane %v3455_v31, %v7459_v13  ;;  %v3832_v28 = vmul.f32 %v5795_v55, %v7513_v16  ;;  %v3504_v25 = vrot.slane %v3455_v31, %v7456_v39  ;;  %v5799_v51 = vpop.eup %5798  ;;  %v3830_v52 = vmul.f32 %v5797_v42, %v7511_v2 }
 0x3be   :  { %5802 = vrcp.f32 %v3488_v11  ;;  %3990 = vperm.xlu0 %5529, %v3828_v60   ;;  %v5801_v23 = vpop.eup %5800  ;;  %v3516_v1 = vrot.slane %v3455_v31, %v7473_v45  ;;  %v3836_v4 = vmul.f32 %v5799_v51, %v7522_v6  ;;  %v3512_v41 = vrot.slane %v3455_v31, %v7466_v36 }
 0x3bf   :  { %5804 = vrcp.f32 %v3492_v17  ;;  %3985 = vperm.xlu1 %5528, %v3826_v22   ;;  %v3834_v20 = vmul.f32 %v5801_v23, %v7520_v26 }
 0x3c0   :  { %5806 = vrcp.f32 %v3500_v12 }
 0x3c1   :  { %5808 = vrcp.f32 %v3496_v63 }
 0x3c2   :  { %4000 = vperm.xlu0 %5529, %v3832_v28   ;;  %5810 = vrcp.f32 %v3508_v10 }
 0x3c3   :  { %3995 = vperm.xlu1 %5528, %v3830_v52   ;;  %5812 = vrcp.f32 %v3504_v25 }
 0x3c4   :  { %5814 = vrcp.f32 %v3516_v1 }
 0x3c5   :  { %5816 = vrcp.f32 %v3512_v41 }
 0x3c6   :  { %4010 = vperm.xlu0 %5529, %v3836_v4  }
 0x3c7   :  { %4005 = vperm.xlu1 %5528, %v3834_v20  }
 0x3c8   :  { %v5803_v16 = vpop.eup %5802 }
 0x3c9   :  { %v5805_v35 = vpop.eup %5804  ;;  %v3806_v2 = vmul.f32 %v5803_v16, %v7537_v18 }
 0x3ca   :  { %v5807_v7 = vpop.eup %5806  ;;  %v3808_v29 = vmul.f32 %v5805_v35, %v7531_v46 }
 0x3cb   :  { %v5809_v14 = vpop.eup %5808  ;;  %3935 = vperm.xlu0 %5529, %v3806_v2   ;;  %v3812_v54 = vmul.f32 %v5807_v7, %v7557_v27 }
 0x3cc   :  { %3940 = vperm.xlu1 %5528, %v3808_v29   ;;  %v3464_v6 = vpop.xlane.xlu1 %3463  ;;  %v5811_v17 = vpop.eup %5810  ;;  %v3810_v12 = vmul.f32 %v5809_v14, %v7548_v37 }
 0x3cd   :  { %v3588_v31 = vrot.slane %v3464_v6, %v7447_v40  ;;  %v3584_v26 = vrot.slane %v3464_v6, %v6425_v9  ;;  %v3596_v11 = vrot.slane %v3464_v6, %v7453_v61  ;;  %v3592_v18 = vrot.slane %v3464_v6, %v7450_v59  ;;  %v5813_v60 = vpop.eup %5812 }
 0x3ce   :  { %v3816_v46 = vmul.f32 %v5811_v17, %v7574_v15  ;;  %v3604_v27 = vrot.slane %v3464_v6, %v7459_v13  ;;  %v5815_v63 = vpop.eup %5814  ;;  %v3814_v55 = vmul.f32 %v5813_v60, %v7568_v8  ;;  %v3600_v22 = vrot.slane %v3464_v6, %v7456_v39 }
 0x3cf   :  { %3950 = vperm.xlu0 %5529, %v3812_v54   ;;  %5818 = vrcp.f32 %v3588_v31  ;;  %v5817_v42 = vpop.eup %5816  ;;  %v3820_v37 = vmul.f32 %v5815_v63, %v7598_v3  ;;  %v3612_v10 = vrot.slane %v3464_v6, %v7473_v45  ;;  %v3608_v15 = vrot.slane %v3464_v6, %v7466_v36 }
 0x3d0   :  { %3945 = vperm.xlu1 %5528, %v3810_v12   ;;  %5820 = vrcp.f32 %v3584_v26  ;;  %v3818_v28 = vmul.f32 %v5817_v42, %v7586_v56 }
 0x3d1   :  { %5822 = vrcp.f32 %v3596_v11 }
 0x3d2   :  { %5824 = vrcp.f32 %v3592_v18 }
 0x3d3   :  { %3960 = vperm.xlu0 %5529, %v3816_v46   ;;  %5826 = vrcp.f32 %v3604_v27 }
 0x3d4   :  { %3955 = vperm.xlu1 %5528, %v3814_v55   ;;  %5828 = vrcp.f32 %v3600_v22 }
 0x3d5   :  { %5830 = vrcp.f32 %v3612_v10 }
 0x3d6   :  { %5832 = vrcp.f32 %v3608_v15 }
 0x3d7   :  { %3970 = vperm.xlu0 %5529, %v3820_v37  }
 0x3d8   :  { %3965 = vperm.xlu1 %5528, %v3818_v28  }
 0x3d9   :  { %v5819_v25 = vpop.eup %5818 }
 0x3da   :  { %v5821_v8 = vpop.eup %5820  ;;  %v3856_v51 = vmul.f32 %v5819_v25, %v7579_v38 }
 0x3db   :  { %v5823_v52 = vpop.eup %5822  ;;  %v3854_v23 = vmul.f32 %v5821_v8, %v7610_v24 }
 0x3dc   :  { %v5825_v3 = vpop.eup %5824  ;;  %4060 = vperm.xlu0 %5529, %v3856_v51   ;;  %v3461_v1 = vpop.xlane.xlu0 %3460  ;;  %v3860_v20 = vmul.f32 %v5823_v52, %v7591_v43 }
 0x3dd   :  { %4055 = vperm.xlu1 %5528, %v3854_v23   ;;  %v3556_v56 = vrot.slane %v3461_v1, %v7447_v40  ;;  %v3552_v4 = vrot.slane %v3461_v1, %v6425_v9  ;;  %v3564_v41 = vrot.slane %v3461_v1, %v7453_v61  ;;  %v3560_v16 = vrot.slane %v3461_v1, %v7450_v59  ;;  %v5827_v35 = vpop.eup %5826 }
 0x3de   :  { %v3858_v38 = vmul.f32 %v5825_v3, %v7622_v32  ;;  %v5829_v2 = vpop.eup %5828  ;;  %v3572_v24 = vrot.slane %v3461_v1, %v7459_v13  ;;  %v3864_v7 = vmul.f32 %v5827_v35, %v7603_v44  ;;  %v3568_v29 = vrot.slane %v3461_v1, %v7456_v39 }
 0x3df   :  { %5834 = vrcp.f32 %v3556_v56  ;;  %v5831_v14 = vpop.eup %5830  ;;  %v3862_v43 = vmul.f32 %v5829_v2, %v7639_v21  ;;  %v3580_v32 = vrot.slane %v3461_v1, %v7473_v45  ;;  %v3576_v31 = vrot.slane %v3461_v1, %v7466_v36 }
 0x3e0   :  { %4070 = vperm.xlu0 %5529, %v3860_v20   ;;  %5836 = vrcp.f32 %v3552_v4  ;;  %v5833_v6 = vpop.eup %5832  ;;  %v3868_v54 = vmul.f32 %v5831_v14, %v7613_v0 }
 0x3e1   :  { %4065 = vperm.xlu1 %5528, %v3858_v38   ;;  %5838 = vrcp.f32 %v3564_v41  ;;  %v3866_v26 = vmul.f32 %v5833_v6, %v7651_v33  ;;  %v8987_v38 = vld [vmem:[#allocation29_spill] sm:$0xff]  ;;  %v8989_v6 = vld [vmem:[#allocation70_spill] sm:$0xff] }
 0x3e2   :  { %5840 = vrcp.f32 %v3560_v16 }
 0x3e3   :  { %5842 = vrcp.f32 %v3572_v24 }
 0x3e4   :  { %4080 = vperm.xlu0 %5529, %v3864_v7   ;;  %5844 = vrcp.f32 %v3568_v29 }
 0x3e5   :  { %4075 = vperm.xlu1 %5528, %v3862_v43   ;;  %5846 = vrcp.f32 %v3580_v32 }
 0x3e6   :  { %5848 = vrcp.f32 %v3576_v31  ;;  %v8990_v31 = vld [vmem:[#allocation69_spill] sm:$0xff] }
 0x3e8   :  { %4090 = vperm.xlu0 %5529, %v3868_v54  }
 0x3e9   :  { %v5835_v44 = vpop.eup %5834  ;;  %4085 = vperm.xlu1 %5528, %v3866_v26  }
 0x3ea   :  { %v5837_v11 = vpop.eup %5836  ;;  %v3840_v21 = vmul.f32 %v5835_v44, %v7628_v19 }
 0x3eb   :  { %v5839_v17 = vpop.eup %5838  ;;  %v3838_v12 = vmul.f32 %v5837_v11, %v7665_v49 }
 0x3ec   :  { %v5841_v18 = vpop.eup %5840  ;;  %v3470_v60 = vpop.xlane.xlu1 %3469  ;;  %4020 = vperm.xlu0 %5529, %v3840_v21   ;;  %v3844_v27 = vmul.f32 %v5839_v17, %v7641_v30  ;;  %v8991_v21 = vld [vmem:[#allocation72_spill] sm:$0xff] }
 0x3ed   :  { %4015 = vperm.xlu1 %5528, %v3838_v12   ;;  %v3652_v0 = vrot.slane %v3470_v60, %v7447_v40  ;;  %v3648_v46 = vrot.slane %v3470_v60, %v6425_v9  ;;  %v3660_v33 = vrot.slane %v3470_v60, %v7453_v61  ;;  %v3656_v63 = vrot.slane %v3470_v60, %v7450_v59  ;;  %v5843_v55 = vpop.eup %5842 }
 0x3ee   :  { %v3842_v19 = vmul.f32 %v5841_v18, %v7677_v57  ;;  %v5845_v22 = vpop.eup %5844  ;;  %v3668_v49 = vrot.slane %v3470_v60, %v7459_v13  ;;  %v3848_v42 = vmul.f32 %v5843_v55, %v7655_v5  ;;  %v3664_v37 = vrot.slane %v3470_v60, %v7456_v39  ;;  %v8992_v18 = vld [vmem:[#allocation75_spill] sm:$0xff]  ;;  %v8993_v55 = vld [vmem:[#allocation77_spill] sm:$0xff] }
 0x3ef   :  { %5850 = vrcp.f32 %v3652_v0  ;;  %v5847_v10 = vpop.eup %5846  ;;  %v3846_v30 = vmul.f32 %v5845_v22, %v7689_v53  ;;  %v3676_v57 = vrot.slane %v3470_v60, %v7473_v45  ;;  %v3672_v25 = vrot.slane %v3470_v60, %v7466_v36 }
 0x3f0   :  { %4030 = vperm.xlu0 %5529, %v3844_v27   ;;  %5852 = vrcp.f32 %v3648_v46  ;;  %v5849_v28 = vpop.eup %5848  ;;  %v3852_v15 = vmul.f32 %v5847_v10, %v7667_v48 }
 0x3f1   :  { %4025 = vperm.xlu1 %5528, %v3842_v19   ;;  %5854 = vrcp.f32 %v3660_v33  ;;  %v3850_v8 = vmul.f32 %v5849_v28, %v7701_v34  ;;  %v8995_v28 = vld [vmem:[#allocation71_spill] sm:$0xff] }
 0x3f2   :  { %5856 = vrcp.f32 %v3656_v63 }
 0x3f3   :  { %5858 = vrcp.f32 %v3668_v49 }
 0x3f4   :  { %4040 = vperm.xlu0 %5529, %v3848_v42   ;;  %5860 = vrcp.f32 %v3664_v37  ;;  %v8994_v42 = vld [vmem:[#allocation76_spill] sm:$0xff] }
 0x3f5   :  { %4035 = vperm.xlu1 %5528, %v3846_v30   ;;  %5862 = vrcp.f32 %v3676_v57 }
 0x3f6   :  { %5864 = vrcp.f32 %v3672_v25 }
 0x3f8   :  { %4050 = vperm.xlu0 %5529, %v3852_v15  }
 0x3f9   :  { %v5851_v5 = vpop.eup %5850  ;;  %4045 = vperm.xlu1 %5528, %v3850_v8   ;;  %v8996_v8 = vld [vmem:[#allocation74_spill] sm:$0xff] }
 0x3fa   :  { %v5853_v51 = vpop.eup %5852  ;;  %v3888_v53 = vmul.f32 %v5851_v5, %v7679_v50  ;;  %v8986_v50 = vld [vmem:[#allocation73_spill] sm:$0xff] }
 0x3fb   :  { %v5855_v52 = vpop.eup %5854  ;;  %v3886_v23 = vmul.f32 %v5853_v51, %v7711_v58 }
 0x3fc   :  { %v5857_v3 = vpop.eup %5856  ;;  %4140 = vperm.xlu0 %5529, %v3888_v53   ;;  %v3467_v1 = vpop.xlane.xlu0 %3466  ;;  %v3892_v4 = vmul.f32 %v5855_v52, %v7691_v62  ;;  %v8988_v62 = vld [vmem:[#allocation17_spill] sm:$0xff] }
 0x3fd   :  { %4135 = vperm.xlu1 %5528, %v3886_v23   ;;  %v3620_v48 = vrot.slane %v3467_v1, %v7447_v40  ;;  %v3616_v56 = vrot.slane %v3467_v1, %v6425_v9  ;;  %v3628_v34 = vrot.slane %v3467_v1, %v7453_v61  ;;  %v3624_v41 = vrot.slane %v3467_v1, %v7450_v59  ;;  %v5859_v20 = vpop.eup %5858  ;;  %v8997_v53 = vld [vmem:[#allocation81_spill] sm:$0xff] }
 0x3fe   :  { %v3890_v16 = vmul.f32 %v5857_v3, %v8986_v50  ;;  %v5861_v35 = vpop.eup %5860  ;;  %v3636_v58 = vrot.slane %v3467_v1, %v7459_v13  ;;  %v3896_v2 = vmul.f32 %v5859_v20, %v8987_v38  ;;  %v3632_v24 = vrot.slane %v3467_v1, %v7456_v39  ;;  %v8998_v3 = vld [vmem:[#allocation80_spill] sm:$0xff]  ;;  %v9000_v20 = vld [vmem:[#allocation83_spill] sm:$0xff] }
 0x3ff   :  { %5866 = vrcp.f32 %v3620_v48  ;;  %v5863_v7 = vpop.eup %5862  ;;  %v3894_v29 = vmul.f32 %v5861_v35, %v8988_v62  ;;  %v3644_v43 = vrot.slane %v3467_v1, %v7473_v45  ;;  %v3640_v54 = vrot.slane %v3467_v1, %v7466_v36 }
 0x400   :  { %4150 = vperm.xlu0 %5529, %v3892_v4   ;;  %5868 = vrcp.f32 %v3616_v56  ;;  %v5865_v14 = vpop.eup %5864  ;;  %v3900_v32 = vmul.f32 %v5863_v7, %v8989_v6 }
 0x401   :  { %4145 = vperm.xlu1 %5528, %v3890_v16   ;;  %5870 = vrcp.f32 %v3628_v34  ;;  %v3898_v26 = vmul.f32 %v5865_v14, %v8990_v31  ;;  %v8999_v34 = vld [vmem:[#allocation82_spill] sm:$0xff]  ;;  %v9002_v14 = vld [vmem:[#allocation88_spill] sm:$0xff] }
 0x402   :  { %5872 = vrcp.f32 %v3624_v41 }
 0x403   :  { %5874 = vrcp.f32 %v3636_v58 }
 0x404   :  { %4160 = vperm.xlu0 %5529, %v3896_v2   ;;  %5876 = vrcp.f32 %v3632_v24  ;;  %v9001_v24 = vld [vmem:[#allocation89_spill] sm:$0xff] }
 0x405   :  { %4155 = vperm.xlu1 %5528, %v3894_v29   ;;  %5878 = vrcp.f32 %v3644_v43 }
 0x406   :  { %5880 = vrcp.f32 %v3640_v54 }
 0x408   :  { %4170 = vperm.xlu0 %5529, %v3900_v32  }
 0x409   :  { %v5867_v44 = vpop.eup %5866  ;;  %4165 = vperm.xlu1 %5528, %v3898_v26  }
 0x40a   :  { %v5869_v11 = vpop.eup %5868  ;;  %v3872_v17 = vmul.f32 %v5867_v44, %v8991_v21 }
 0x40b   :  { %v5871_v12 = vpop.eup %5870  ;;  %v3870_v60 = vmul.f32 %v5869_v11, %v8992_v18  ;;  %v9005_v11 = vld [vmem:[#allocation84_spill] sm:$0xff] }
 0x40c   :  { %v5873_v0 = vpop.eup %5872  ;;  %v8075_v46 = vpop.xlane.xlu1 %3475  ;;  %4100 = vperm.xlu0 %5529, %v3872_v17   ;;  %v3876_v19 = vmul.f32 %v5871_v12, %v8993_v55  ;;  %v9006_v12 = vld [vmem:[#allocation87_spill] sm:$0xff] }
 0x40d   :  { %4095 = vperm.xlu1 %5528, %v3870_v60   ;;  %v3712_v33 = vrot.slane %v8075_v46, %v6425_v9  ;;  %v3716_v27 = vrot.slane %v8075_v46, %v7447_v40  ;;  %v3724_v63 = vrot.slane %v8075_v46, %v7453_v61  ;;  %v3720_v22 = vrot.slane %v8075_v46, %v7450_v59  ;;  %v5875_v49 = vpop.eup %5874 }
 0x40e   :  { %v3874_v37 = vmul.f32 %v5873_v0, %v8994_v42  ;;  %v5877_v10 = vpop.eup %5876  ;;  %v3732_v30 = vrot.slane %v8075_v46, %v7459_v13  ;;  %v3880_v57 = vmul.f32 %v5875_v49, %v8995_v28  ;;  %v3728_v15 = vrot.slane %v8075_v46, %v7456_v39  ;;  %v9007_v0 = vld [vmem:[#allocation90_spill] sm:$0xff]  ;;  %v9012_v28 = vld [vmem:[#allocation92_spill] sm:$0xff] }
 0x40f   :  { %5882 = vrcp.f32 %v3712_v33  ;;  %v5879_v25 = vpop.eup %5878  ;;  %v3878_v5 = vmul.f32 %v5877_v10, %v8996_v8  ;;  %v3736_v23 = vrot.slane %v8075_v46, %v7466_v36 }
 0x410   :  { %4110 = vperm.xlu0 %5529, %v3876_v19   ;;  %5884 = vrcp.f32 %v3716_v27  ;;  %v5881_v51 = vpop.eup %5880  ;;  %v3884_v52 = vmul.f32 %v5879_v25, %v8997_v53  ;;  %v9009_v19 = vld [vmem:[#allocation93_spill] sm:$0xff] }
 0x411   :  { %4105 = vperm.xlu1 %5528, %v3874_v37   ;;  %5886 = vrcp.f32 %v3724_v63  ;;  %v3882_v1 = vmul.f32 %v5881_v51, %v8998_v3  ;;  %v9008_v63 = vld [vmem:[#allocation91_spill] sm:$0xff]  ;;  %v9010_v37 = vld [vmem:[#allocation86_spill] sm:$0xff]  ;;  %v9014_v53 = vld [vmem:[#allocation33_spill] sm:$0xff] }
 0x412   :  { %5888 = vrcp.f32 %v3720_v22 }
 0x413   :  { %5890 = vrcp.f32 %v3732_v30  ;;  %v9011_v30 = vld [vmem:[#allocation94_spill] sm:$0xff] }
 0x414   :  { %4120 = vperm.xlu0 %5529, %v3880_v57   ;;  %5892 = vrcp.f32 %v3728_v15  ;;  %v9013_v15 = vld [vmem:[#allocation95_spill] sm:$0xff] }
 0x415   :  { %4115 = vperm.xlu1 %5528, %v3878_v5   ;;  %5894 = vrcp.f32 %v3736_v23  ;;  %v9015_v23 = vld [vmem:[#allocation85_spill] sm:$0xff] }
 0x418   :  { %4130 = vperm.xlu0 %5529, %v3884_v52  }
 0x419   :  { %v5883_v48 = vpop.eup %5882  ;;  %4125 = vperm.xlu1 %5528, %v3882_v1   ;;  %v9016_v1 = vld [vmem:[#allocation32_spill] sm:$0xff] }
 0x41a   :  { %v5885_v56 = vpop.eup %5884  ;;  %v3918_v4 = vmul.f32 %v5883_v48, %v8999_v34 }
 0x41b   :  { %v5887_v41 = vpop.eup %5886  ;;  %v3920_v50 = vmul.f32 %v5885_v56, %v9000_v20 }
 0x41c   :  { %v5889_v16 = vpop.eup %5888  ;;  %4215 = vperm.xlu0 %5529, %v3918_v4   ;;  %v3473_v35 = vpop.xlane.xlu0 %3472  ;;  %v3924_v7 = vmul.f32 %v5887_v41, %v9001_v24 }
 0x41d   :  { %4220 = vperm.xlu1 %5528, %v3920_v50   ;;  %v3684_v58 = vrot.slane %v3473_v35, %v7447_v40  ;;  %v3680_v38 = vrot.slane %v3473_v35, %v6425_v9  ;;  %v3692_v2 = vrot.slane %v3473_v35, %v7453_v61  ;;  %v3688_v62 = vrot.slane %v3473_v35, %v7450_v59  ;;  %v5891_v29 = vpop.eup %5890  ;;  %v9003_v40 = vld [vmem:[#allocation79_spill] sm:$0xff]  ;;  %v9004_v61 = vld [vmem:[#allocation78_spill] sm:$0xff] }
 0x41e   :  { %v3922_v43 = vmul.f32 %v5889_v16, %v9002_v14  ;;  %v5893_v6 = vpop.eup %5892  ;;  %v3700_v32 = vrot.slane %v3473_v35, %v7459_v13  ;;  %v3928_v54 = vmul.f32 %v5891_v29, %v9003_v40  ;;  %v3696_v9 = vrot.slane %v3473_v35, %v7456_v39 }
 0x41f   :  { %5896 = vrcp.f32 %v3684_v58  ;;  %v3926_v31 = vmul.f32 %v5893_v6, %v9004_v61  ;;  %v5895_v26 = vpop.eup %5894  ;;  %v3708_v59 = vrot.slane %v3473_v35, %v7473_v45  ;;  %v3704_v44 = vrot.slane %v3473_v35, %v7466_v36  ;;  %v9017_v58 = vld [vmem:[#allocation37_spill] sm:$0xff] }
 0x420   :  { %4230 = vperm.xlu0 %5529, %v3924_v7   ;;  %5898 = vrcp.f32 %v3680_v38  ;;  %v3930_v21 = vmul.f32 %v5895_v26, %v9005_v11  ;;  %v3740_v39 = vrot.slane %v8075_v46, %v7473_v45  ;;  %v9018_v7 = vld [vmem:[#allocation36_spill] sm:$0xff]  ;;  %v9019_v11 = vld [vmem:[#allocation39_spill] sm:$0xff] }
 0x421   :  { %4225 = vperm.xlu1 %5528, %v3922_v43   ;;  %5900 = vrcp.f32 %v3692_v2 }
 0x422   :  { %5902 = vrcp.f32 %v3688_v62 }
 0x423   :  { %5904 = vrcp.f32 %v3700_v32 }
 0x424   :  { %4240 = vperm.xlu0 %5529, %v3928_v54   ;;  %5906 = vrcp.f32 %v3696_v9 }
 0x425   :  { %4235 = vperm.xlu1 %5528, %v3926_v31   ;;  %5908 = vrcp.f32 %v3708_v59 }
 0x426   :  { %5910 = vrcp.f32 %v3704_v44 }
 0x427   :  { %5912 = vrcp.f32 %v3740_v39 }
 0x429   :  { %v5897_v17 = vpop.eup %5896  ;;  %4245 = vperm.xlu1 %5528, %v3930_v21  }
 0x42a   :  { %v5899_v13 = vpop.eup %5898  ;;  %v3904_v18 = vmul.f32 %v5897_v17, %v9006_v12  ;;  %v9020_v12 = vld [vmem:[#allocation38_spill] sm:$0xff] }
 0x42b   :  { %v5901_v60 = vpop.eup %5900  ;;  %v3902_v33 = vmul.f32 %v5899_v13, %v9007_v0 }
 0x42c   :  { %v5903_v27 = vpop.eup %5902  ;;  %v3908_v55 = vmul.f32 %v5901_v60, %v9008_v63 }
 0x42d   :  { %4180 = vperm.xlu1 %5528, %v3904_v18   ;;  %4175 = vperm.xlu0 %5529, %v3902_v33   ;;  %v5905_v36 = vpop.eup %5904  ;;  %v3906_v22 = vmul.f32 %v5903_v27, %v9009_v19 }
 0x42e   :  { %v5907_v49 = vpop.eup %5906  ;;  %v3912_v10 = vmul.f32 %v5905_v36, %v9010_v37 }
 0x42f   :  { %v5909_v42 = vpop.eup %5908  ;;  %v3910_v45 = vmul.f32 %v5907_v49, %v9011_v30 }
 0x430   :  { %v5911_v46 = vpop.eup %5910  ;;  %v3916_v57 = vmul.f32 %v5909_v42, %v9012_v28 }
 0x431   :  { %4190 = vperm.xlu1 %5528, %v3908_v55   ;;  %4185 = vperm.xlu0 %5529, %v3906_v22   ;;  %v3914_v25 = vmul.f32 %v5911_v46, %v9013_v15  ;;  %v5913_v8 = vpop.eup %5912 }
 0x432   :  { %v3932_v3 = vmul.f32 %v5913_v8, %v9015_v23 }
 0x435   :  { %4200 = vperm.xlu1 %5528, %v3912_v10   ;;  %4195 = vperm.xlu0 %5529, %v3910_v45  }
 0x439   :  { %4210 = vperm.xlu1 %5528, %v3916_v57   ;;  %4205 = vperm.xlu0 %5529, %v3914_v25   ;;  %v3981_v5 = vpop.permute.xlu0 %3980  ;;  %v9021_v57 = vld [vmem:[#allocation45_spill] sm:$0xff] }
 0x43a   :  { %v3976_v51 = vpop.permute.xlu1 %3975  ;;  %v4262_v52 = vmul.f32 %v3981_v5, %v9014_v53  ;;  %v4940_v4 = vrot.slane %v3981_v5, %v8985_v47 }
 0x43b   :  { %v4261_v48 = vmul.f32 %v3976_v51, %v9016_v1  ;;  %v4936_v56 = vrot.slane %v3976_v51, %v8985_v47 }
 0x43c   :  { %v4380_v34 = vsel %vm103_vm0, %v4262_v52, 0.0 }
 0x43d   :  { %4250 = vperm.xlu0 %5529, %v3932_v3   ;;  %v4373_v41 = vsel %vm103_vm0, %v4261_v48, 0.0  ;;  %v4381_v20 = vrot.slane %v4380_v34, 4  ;;  %v3991_v50 = vpop.permute.xlu0 %3990  ;;  %v5164_v43 = vsel %vm2261_vm2, %v4940_v4, %v4936_v56  ;;  %v9022_v3 = vld [vmem:[#allocation44_spill] sm:$0xff] }
 0x43e   :  { %v4374_v16 = vrot.slane %v4373_v41, 4  ;;  %v3986_v35 = vpop.permute.xlu1 %3985  ;;  %v4264_v38 = vmul.f32 %v3991_v50, %v9017_v58  ;;  %v4948_v2 = vrot.slane %v3991_v50, %v8985_v47 }
 0x43f   :  { %v4382_v24 = vadd.f32 %v4381_v20, %v4380_v34  ;;  %v4263_v62 = vmul.f32 %v3986_v35, %v9018_v7  ;;  %v4944_v29 = vrot.slane %v3986_v35, %v8985_v47 }
 0x440   :  { %v4375_v14 = vadd.f32 %v4374_v16, %v4373_v41  ;;  %v4394_v6 = vsel %vm103_vm0, %v4264_v38, 0.0 }
 0x441   :  { %v4383_v32 = vrot.slane %v4382_v24, 2  ;;  %v4387_v40 = vsel %vm103_vm0, %v4263_v62, 0.0  ;;  %v5165_v54 = vsel %vm2263_vm3, %v4944_v29, %v5164_v43  ;;  %v4395_v9 = vrot.slane %v4394_v6, 4  ;;  %v4001_v61 = vpop.permute.xlu0 %4000 }
 0x442   :  { %v4376_v31 = vrot.slane %v4375_v14, 2  ;;  %v4388_v26 = vrot.slane %v4387_v40, 4  ;;  %v5166_v59 = vsel %vm2265_vm4, %v4948_v2, %v5165_v54  ;;  %v3996_v44 = vpop.permute.xlu1 %3995  ;;  %v4266_v21 = vmul.f32 %v4001_v61, %v9019_v11 }
 0x443   :  { %v4384_v17 = vadd.f32 %v4383_v32, %v4382_v24  ;;  %v4396_v13 = vadd.f32 %v4395_v9, %v4394_v6  ;;  %v4265_v18 = vmul.f32 %v3996_v44, %v9020_v12  ;;  %v4952_v39 = vrot.slane %v3996_v44, %v8985_v47 }
 0x444   :  { %v4377_v60 = vadd.f32 %v4376_v31, %v4375_v14  ;;  %v4389_v0 = vadd.f32 %v4388_v26, %v4387_v40  ;;  %v4408_v33 = vsel %vm103_vm0, %v4266_v21, 0.0  ;;  %v4956_v27 = vrot.slane %v4001_v61, %v8985_v47  ;;  %v9023_v14 = vld [vmem:[#allocation40_spill] sm:$0xff] }
 0x445   :  { %v4385_v36 = vrot.slane %v4384_v17, 1  ;;  %v4397_v63 = vrot.slane %v4396_v13, 2  ;;  %v4401_v55 = vsel %vm103_vm0, %v4265_v18, 0.0  ;;  %v5167_v19 = vsel %vm2267_vm5, %v4952_v39, %v5166_v59  ;;  %v4011_v22 = vpop.permute.xlu0 %4010  ;;  %v9024_v39 = vld [vmem:[#allocation34_spill] sm:$0xff] }
 0x446   :  { %v4378_v49 = vrot.slane %v4377_v60, 1  ;;  %v4390_v42 = vrot.slane %v4389_v0, 2  ;;  %v4402_v37 = vrot.slane %v4401_v55, 4  ;;  %v4409_v10 = vrot.slane %v4408_v33, 4  ;;  %v4006_v30 = vpop.permute.xlu1 %4005 }
 0x447   :  { %v4386_v45 = vadd.f32 %v4385_v36, %v4384_v17  ;;  %v4398_v46 = vadd.f32 %v4397_v63, %v4396_v13  ;;  %v5168_v28 = vsel %vm2269_vm6, %v4956_v27, %v5167_v19  ;;  %v4267_v15 = vmul.f32 %v4006_v30, %v9021_v57 }
 0x448   :  { %v4379_v25 = vadd.f32 %v4378_v49, %v4377_v60  ;;  %v4391_v8 = vadd.f32 %v4390_v42, %v4389_v0  ;;  %v4403_v5 = vadd.f32 %v4402_v37, %v4401_v55  ;;  %v4410_v51 = vadd.f32 %v4409_v10, %v4408_v33  ;;  %v9025_v33 = vld [vmem:[#allocation35_spill] sm:$0xff] }
 0x449   :  { %v4399_v53 = vrot.slane %v4398_v46, 1  ;;  %v4415_v52 = vsel %vm103_vm0, %v4267_v15, 0.0  ;;  %v4960_v23 = vrot.slane %v4006_v30, %v8985_v47  ;;  %v4268_v1 = vmul.f32 %v4011_v22, %v9022_v3 }
 0x44a   :  { %v3936_v48 = vpop.permute.xlu0 %3935  ;;  %v4836_v56 = vsel %vm2261_vm2, %v4386_v45, %v4379_v25  ;;  %v4392_v34 = vrot.slane %v4391_v8, 1  ;;  %v4404_v4 = vrot.slane %v4403_v5, 2  ;;  %v4411_v41 = vrot.slane %v4410_v51, 2 }
 0x44b   :  { %v3941_v20 = vpop.permute.xlu1 %3940  ;;  %v4400_v50 = vadd.f32 %v4399_v53, %v4398_v46  ;;  %v4416_v16 = vrot.slane %v4415_v52, 4  ;;  %v5169_v35 = vsel %vm2271_vm7, %v4960_v23, %v5168_v28  ;;  %v4422_v58 = vsel %vm103_vm0, %v4268_v1, 0.0 }
 0x44c   :  { %v4393_v38 = vadd.f32 %v4392_v34, %v4391_v8  ;;  %v4405_v2 = vadd.f32 %v4404_v4, %v4403_v5  ;;  %v4412_v24 = vadd.f32 %v4411_v41, %v4410_v51  ;;  %v4423_v7 = vrot.slane %v4422_v58, 4  ;;  %v9026_v5 = vld [vmem:[#allocation41_spill] sm:$0xff]  ;;  %v9027_v41 = vld [vmem:[#allocation43_spill] sm:$0xff] }
 0x44d   :  { %v4417_v62 = vadd.f32 %v4416_v16, %v4415_v52  ;;  %v4964_v29 = vrot.slane %v4011_v22, %v8985_v47  ;;  %v4254_v43 = vmul.f32 %v3941_v20, %v9023_v14  ;;  %v4908_v6 = vrot.slane %v3941_v20, %v8985_v47 }
 0x44e   :  { %v3951_v32 = vpop.permute.xlu0 %3950  ;;  %v4837_v40 = vsel %vm2263_vm3, %v4393_v38, %v4836_v56  ;;  %v4406_v54 = vrot.slane %v4405_v2, 1  ;;  %v4413_v9 = vrot.slane %v4412_v24, 1  ;;  %v4424_v61 = vadd.f32 %v4423_v7, %v4422_v58 }
 0x44f   :  { %v3946_v31 = vpop.permute.xlu1 %3945  ;;  %v4838_v26 = vsel %vm2265_vm4, %v4400_v50, %v4837_v40  ;;  %v4418_v59 = vrot.slane %v4417_v62, 2  ;;  %v5170_v44 = vsel %vm2273_vm8, %v4964_v29, %v5169_v35  ;;  %v4324_v11 = vsel %vm103_vm0, %v4254_v43, 0.0 }
 0x450   :  { %v4407_v21 = vadd.f32 %v4406_v54, %v4405_v2  ;;  %v4414_v17 = vadd.f32 %v4413_v9, %v4412_v24  ;;  %v4425_v13 = vrot.slane %v4424_v61, 2  ;;  %5222 = vst.msk [vmem:[%s8653_s8 + $0x8] sm:$0xff] %vm2332_vm9, %v5170_v44  ;;  %v4325_v12 = vrot.slane %v4324_v11, 4  ;;  %v9028_v54 = vld [vmem:[#allocation42_spill] sm:$0xff] }
 0x451   :  { %v4419_v18 = vadd.f32 %v4418_v59, %v4417_v62  ;;  %v4253_v60 = vmul.f32 %v3936_v48, %v9024_v39  ;;  %v4904_v0 = vrot.slane %v3936_v48, %v8985_v47  ;;  %v4255_v27 = vmul.f32 %v3946_v31, %v9025_v33 }
 0x452   :  { %v3961_v36 = vpop.permute.xlu0 %3960  ;;  %v4839_v63 = vsel %vm2267_vm5, %v4407_v21, %v4838_v26  ;;  %v4426_v55 = vadd.f32 %v4425_v13, %v4424_v61  ;;  %v4326_v19 = vadd.f32 %v4325_v12, %v4324_v11  ;;  %v4912_v22 = vrot.slane %v3946_v31, %v8985_v47  ;;  %v9029_v11 = vld [vmem:[#allocation47_spill] sm:$0xff] }
 0x453   :  { %v3956_v49 = vpop.permute.xlu1 %3955  ;;  %v4840_v42 = vsel %vm2269_vm6, %v4414_v17, %v4839_v63  ;;  %v4420_v37 = vrot.slane %v4419_v18, 1  ;;  %v4317_v10 = vsel %vm103_vm0, %v4253_v60, 0.0  ;;  %v5157_v30 = vsel %vm2261_vm2, %v4908_v6, %v4904_v0 }
 0x454   :  { %v4427_v45 = vrot.slane %v4426_v55, 1  ;;  %v4327_v46 = vrot.slane %v4326_v19, 2  ;;  %v4318_v28 = vrot.slane %v4317_v10, 4  ;;  %v4331_v57 = vsel %vm103_vm0, %v4255_v27, 0.0 }
 0x455   :  { %v4421_v15 = vadd.f32 %v4420_v37, %v4419_v18  ;;  %v4332_v25 = vrot.slane %v4331_v57, 4  ;;  %v5158_v8 = vsel %vm2263_vm3, %v4912_v22, %v5157_v30  ;;  %v4256_v51 = vmul.f32 %v3951_v32, %v9026_v5 }
 0x456   :  { %v8175_v53 = vpop.permute.xlu0 %3970  ;;  %v4428_v52 = vadd.f32 %v4427_v45, %v4426_v55  ;;  %v4328_v23 = vadd.f32 %v4327_v46, %v4326_v19  ;;  %v4319_v3 = vadd.f32 %v4318_v28, %v4317_v10  ;;  %v4916_v1 = vrot.slane %v3951_v32, %v8985_v47  ;;  %v9030_v19 = vld [vmem:[#allocation46_spill] sm:$0xff] }
 0x457   :  { %v3966_v48 = vpop.permute.xlu1 %3965  ;;  %v4841_v56 = vsel %vm2271_vm7, %v4421_v15, %v4840_v42  ;;  %v4333_v34 = vadd.f32 %v4332_v25, %v4331_v57  ;;  %v4338_v4 = vsel %vm103_vm0, %v4256_v51, 0.0  ;;  %v4257_v20 = vmul.f32 %v3956_v49, %v9027_v41 }
 0x458   :  { %v4842_v50 = vsel %vm2273_vm8, %v4428_v52, %v4841_v56  ;;  %v4329_v16 = vrot.slane %v4328_v23, 1  ;;  %v4320_v35 = vrot.slane %v4319_v3, 2  ;;  %v4339_v58 = vrot.slane %v4338_v4, 4 }
 0x459   :  { %4894 = vst.msk [vmem:[%s8654_s7 + $0x8] sm:$0xff] %vm103_vm0, %v4842_v50  ;;  %v4334_v38 = vrot.slane %v4333_v34, 2  ;;  %v5159_v2 = vsel %vm2265_vm4, %v4916_v1, %v5158_v8  ;;  %v4345_v24 = vsel %vm103_vm0, %v4257_v20, 0.0  ;;  %v4920_v7 = vrot.slane %v3956_v49, %v8985_v47 }
 0x45a   :  { %v4330_v62 = vadd.f32 %v4329_v16, %v4328_v23  ;;  %v4321_v29 = vadd.f32 %v4320_v35, %v4319_v3  ;;  %v4340_v14 = vadd.f32 %v4339_v58, %v4338_v4  ;;  %v4346_v43 = vrot.slane %v4345_v24, 4  ;;  %v9031_v3 = vld [vmem:[#allocation49_spill] sm:$0xff]  ;;  %v9032_v16 = vld [vmem:[#allocation48_spill] sm:$0xff] }
 0x45b   :  { %v4061_v6 = vpop.permute.xlu0 %4060  ;;  %v4335_v32 = vadd.f32 %v4334_v38, %v4333_v34  ;;  %v5160_v40 = vsel %vm2267_vm5, %v4920_v7, %v5159_v2  ;;  %v4258_v9 = vmul.f32 %v3961_v36, %v9028_v54  ;;  %v4924_v61 = vrot.slane %v3961_v36, %v8985_v47 }
 0x45c   :  { %v4056_v31 = vpop.permute.xlu1 %4055  ;;  %v4322_v26 = vrot.slane %v4321_v29, 1  ;;  %v4341_v59 = vrot.slane %v4340_v14, 2  ;;  %v4347_v44 = vadd.f32 %v4346_v43, %v4345_v24  ;;  %v4259_v21 = vmul.f32 %v3966_v48, %v9029_v11  ;;  %v9034_v11 = vld [vmem:[#allocation52_spill] sm:$0xff] }
 0x45d   :  { %v4336_v17 = vrot.slane %v4335_v32, 1  ;;  %v4352_v13 = vsel %vm103_vm0, %v4258_v9, 0.0  ;;  %v5161_v12 = vsel %vm2269_vm6, %v4924_v61, %v5160_v40  ;;  %v4928_v18 = vrot.slane %v3966_v48, %v8985_v47 }
 0x45e   :  { %v4323_v39 = vadd.f32 %v4322_v26, %v4321_v29  ;;  %v4342_v60 = vadd.f32 %v4341_v59, %v4340_v14  ;;  %v4348_v0 = vrot.slane %v4347_v44, 2  ;;  %v4353_v33 = vrot.slane %v4352_v13, 4 }
 0x45f   :  { %v8196_v27 = vpop.permute.xlu0 %4070  ;;  %v4337_v36 = vadd.f32 %v4336_v17, %v4335_v32  ;;  %v4359_v63 = vsel %vm103_vm0, %v4259_v21, 0.0  ;;  %v5162_v55 = vsel %vm2271_vm7, %v4928_v18, %v5161_v12  ;;  %v4260_v22 = vmul.f32 %v8175_v53, %v9030_v19  ;;  %v9033_v32 = vld [vmem:[#allocation53_spill] sm:$0xff] }
 0x460   :  { %v4066_v49 = vpop.permute.xlu1 %4065  ;;  %v4829_v42 = vsel %vm2261_vm2, %v4330_v62, %v4323_v39  ;;  %v4343_v37 = vrot.slane %v4342_v60, 1  ;;  %v4349_v10 = vadd.f32 %v4348_v0, %v4347_v44  ;;  %v4354_v30 = vadd.f32 %v4353_v33, %v4352_v13 }
 0x461   :  { %v4830_v45 = vsel %vm2263_vm3, %v4337_v36, %v4829_v42  ;;  %v4360_v46 = vrot.slane %v4359_v63, 4  ;;  %v4366_v28 = vsel %vm103_vm0, %v4260_v22, 0.0  ;;  %v4932_v57 = vrot.slane %v8175_v53, %v8985_v47 }
 0x462   :  { %v4344_v15 = vadd.f32 %v4343_v37, %v4342_v60  ;;  %v4350_v25 = vrot.slane %v4349_v10, 1  ;;  %v4355_v8 = vrot.slane %v4354_v30, 2  ;;  %v4367_v5 = vrot.slane %v4366_v28, 4 }
 0x463   :  { %v8207_v51 = vpop.permute.xlu0 %4080  ;;  %v4361_v52 = vadd.f32 %v4360_v46, %v4359_v63  ;;  %v5163_v23 = vsel %vm2273_vm8, %v4932_v57, %v5162_v55  ;;  %v4277_v1 = vmul.f32 %v4056_v31, %v9031_v3  ;;  %v5000_v48 = vrot.slane %v4056_v31, %v8985_v47 }
 0x464   :  { %v8212_v56 = vpop.permute.xlu1 %4075  ;;  %v4831_v34 = vsel %vm2265_vm4, %v4344_v15, %v4830_v45  ;;  %v4351_v4 = vadd.f32 %v4350_v25, %v4349_v10  ;;  %v4356_v41 = vadd.f32 %v4355_v8, %v4354_v30  ;;  %v4368_v53 = vadd.f32 %v4367_v5, %v4366_v28  ;;  %5221 = vst.msk [vmem:[%s8653_s8] sm:$0xff] %vm2332_vm9, %v5163_v23  ;;  %v9035_v30 = vld [vmem:[#allocation55_spill] sm:$0xff] }
 0x465   :  { %v4362_v20 = vrot.slane %v4361_v52, 2  ;;  %v4485_v50 = vsel %vm103_vm0, %v4277_v1, 0.0  ;;  %v4278_v35 = vmul.f32 %v4061_v6, %v9032_v16  ;;  %v5004_v58 = vrot.slane %v4061_v6, %v8985_v47 }
 0x466   :  { %v4832_v38 = vsel %vm2267_vm5, %v4351_v4, %v4831_v34  ;;  %v4357_v2 = vrot.slane %v4356_v41, 1  ;;  %v4369_v24 = vrot.slane %v4368_v53, 2  ;;  %v4486_v7 = vrot.slane %v4485_v50, 4 }
 0x467   :  { %v8223_v62 = vpop.permute.xlu0 %4090  ;;  %v4363_v29 = vadd.f32 %v4362_v20, %v4361_v52  ;;  %v4492_v14 = vsel %vm103_vm0, %v4278_v35, 0.0  ;;  %v5178_v43 = vsel %vm2261_vm2, %v5004_v58, %v5000_v48  ;;  %v4279_v40 = vmul.f32 %v4066_v49, %v9033_v32  ;;  %v9037_v58 = vld [vmem:[#allocation60_spill] sm:$0xff] }
 0x468   :  { %v8228_v54 = vpop.permute.xlu1 %4085  ;;  %v4358_v9 = vadd.f32 %v4357_v2, %v4356_v41  ;;  %v4370_v61 = vadd.f32 %v4369_v24, %v4368_v53  ;;  %v4487_v31 = vadd.f32 %v4486_v7, %v4485_v50  ;;  %v4493_v6 = vrot.slane %v4492_v14, 4  ;;  %v9036_v41 = vld [vmem:[#allocation54_spill] sm:$0xff] }
 0x469   :  { %v4364_v26 = vrot.slane %v4363_v29, 1  ;;  %v4499_v59 = vsel %vm103_vm0, %v4279_v40, 0.0  ;;  %v5008_v44 = vrot.slane %v4066_v49, %v8985_v47  ;;  %v4280_v21 = vmul.f32 %v8196_v27, %v9034_v11 }
 0x46a   :  { %v4833_v17 = vsel %vm2269_vm6, %v4358_v9, %v4832_v38  ;;  %v4371_v13 = vrot.slane %v4370_v61, 1  ;;  %v4488_v12 = vrot.slane %v4487_v31, 2  ;;  %v4494_v18 = vadd.f32 %v4493_v6, %v4492_v14  ;;  %v9038_v6 = vld [vmem:[#allocation61_spill] sm:$0xff] }
 0x46b   :  { %v4365_v39 = vadd.f32 %v4364_v26, %v4363_v29  ;;  %v4500_v60 = vrot.slane %v4499_v59, 4  ;;  %v5179_v0 = vsel %vm2263_vm3, %v5008_v44, %v5178_v43  ;;  %v4506_v33 = vsel %vm103_vm0, %v4280_v21, 0.0  ;;  %v8239_v49 = vpop.permute.xlu0 %4020 }
 0x46c   :  { %v8237_v36 = vpop.permute.xlu1 %4015  ;;  %v4372_v63 = vadd.f32 %v4371_v13, %v4370_v61  ;;  %v4489_v55 = vadd.f32 %v4488_v12, %v4487_v31  ;;  %v4495_v19 = vrot.slane %v4494_v18, 2  ;;  %v4507_v22 = vrot.slane %v4506_v33, 4  ;;  %v9039_v12 = vld [vmem:[#allocation51_spill] sm:$0xff] }
 0x46d   :  { %v4834_v42 = vsel %vm2271_vm7, %v4365_v39, %v4833_v17  ;;  %v4501_v37 = vadd.f32 %v4500_v60, %v4499_v59  ;;  %v5012_v10 = vrot.slane %v8196_v27, %v8985_v47  ;;  %v4281_v45 = vmul.f32 %v8212_v56, %v9035_v30 }
 0x46e   :  { %v4835_v46 = vsel %vm2273_vm8, %v4372_v63, %v4834_v42  ;;  %v4490_v28 = vrot.slane %v4489_v55, 1  ;;  %v4496_v57 = vadd.f32 %v4495_v19, %v4494_v18  ;;  %v4508_v15 = vadd.f32 %v4507_v22, %v4506_v33 }
 0x46f   :  { %4893 = vst.msk [vmem:[%s8654_s7] sm:$0xff] %vm103_vm0, %v4835_v46  ;;  %v4502_v25 = vrot.slane %v4501_v37, 2  ;;  %v5180_v8 = vsel %vm2265_vm4, %v5012_v10, %v5179_v0  ;;  %v4513_v5 = vsel %vm103_vm0, %v4281_v45, 0.0  ;;  %v5016_v27 = vrot.slane %v8212_v56, %v8985_v47  ;;  %v8264_v38 = vpop.permute.xlu0 %4030 }
 0x470   :  { %v8255_v52 = vpop.permute.xlu1 %4025  ;;  %v4491_v23 = vadd.f32 %v4490_v28, %v4489_v55  ;;  %v4497_v3 = vrot.slane %v4496_v57, 1  ;;  %v4509_v1 = vrot.slane %v4508_v15, 2  ;;  %v4514_v48 = vrot.slane %v4513_v5, 4  ;;  %v9040_v28 = vld [vmem:[#allocation50_spill] sm:$0xff] }
 0x471   :  { %v4503_v34 = vadd.f32 %v4502_v25, %v4501_v37  ;;  %v5181_v4 = vsel %vm2267_vm5, %v5016_v27, %v5180_v8  ;;  %v4282_v53 = vmul.f32 %v8207_v51, %v9036_v41  ;;  %v5020_v20 = vrot.slane %v8207_v51, %v8985_v47  ;;  %v9041_v25 = vld [vmem:[#allocation57_spill] sm:$0xff] }
 0x472   :  { %v4498_v50 = vadd.f32 %v4497_v3, %v4496_v57  ;;  %v4510_v16 = vadd.f32 %v4509_v1, %v4508_v15  ;;  %v4515_v35 = vadd.f32 %v4514_v48, %v4513_v5  ;;  %v4283_v56 = vmul.f32 %v8228_v54, %v9037_v58 }
 0x473   :  { %v4504_v2 = vrot.slane %v4503_v34, 1  ;;  %v4520_v24 = vsel %vm103_vm0, %v4282_v53, 0.0  ;;  %v5182_v7 = vsel %vm2269_vm6, %v5020_v20, %v5181_v4  ;;  %v5024_v29 = vrot.slane %v8228_v54, %v8985_v47  ;;  %v8286_v55 = vpop.permute.xlu0 %4040 }
 0x474   :  { %v8270_v14 = vpop.permute.xlu1 %4035  ;;  %v4850_v51 = vsel %vm2261_vm2, %v4498_v50, %v4491_v23  ;;  %v4511_v43 = vrot.slane %v4510_v16, 1  ;;  %v4516_v32 = vrot.slane %v4515_v35, 2  ;;  %v4521_v40 = vrot.slane %v4520_v24, 4 }
 0x475   :  { %v4505_v9 = vadd.f32 %v4504_v2, %v4503_v34  ;;  %v4527_v61 = vsel %vm103_vm0, %v4283_v56, 0.0  ;;  %v5183_v31 = vsel %vm2271_vm7, %v5024_v29, %v5182_v7  ;;  %v4284_v26 = vmul.f32 %v8223_v62, %v9038_v6  ;;  %v9042_v56 = vld [vmem:[#allocation56_spill] sm:$0xff] }
 0x476   :  { %v4512_v59 = vadd.f32 %v4511_v43, %v4510_v16  ;;  %v4517_v44 = vadd.f32 %v4516_v32, %v4515_v35  ;;  %v4522_v11 = vadd.f32 %v4521_v40, %v4520_v24  ;;  %v4528_v21 = vrot.slane %v4527_v61, 4 }
 0x477   :  { %v4851_v54 = vsel %vm2263_vm3, %v4505_v9, %v4850_v51  ;;  %v4534_v17 = vsel %vm103_vm0, %v4284_v26, 0.0  ;;  %v5028_v13 = vrot.slane %v8223_v62, %v8985_v47  ;;  %v4269_v18 = vmul.f32 %v8237_v36, %v9039_v12  ;;  %v8308_v50 = vpop.permute.xlu0 %4050 }
 0x478   :  { %v8283_v39 = vpop.permute.xlu1 %4045  ;;  %v4852_v60 = vsel %vm2265_vm4, %v4512_v59, %v4851_v54  ;;  %v4518_v0 = vrot.slane %v4517_v44, 1  ;;  %v4523_v33 = vrot.slane %v4522_v11, 2  ;;  %v4529_v63 = vadd.f32 %v4528_v21, %v4527_v61 }
 0x479   :  { %v4535_v19 = vrot.slane %v4534_v17, 4  ;;  %v5184_v22 = vsel %vm2273_vm8, %v5028_v13, %v5183_v31  ;;  %v4429_v42 = vsel %vm103_vm0, %v4269_v18, 0.0  ;;  %v4968_v62 = vrot.slane %v8237_v36, %v8985_v47 }
 0x47a   :  { %v4519_v37 = vadd.f32 %v4518_v0, %v4517_v44  ;;  %v4524_v10 = vadd.f32 %v4523_v33, %v4522_v11  ;;  %v4530_v30 = vrot.slane %v4529_v63, 2  ;;  %5224 = vst.msk [vmem:[%s8653_s8 + $0x18] sm:$0xff] %vm2332_vm9, %v5184_v22  ;;  %v4430_v45 = vrot.slane %v4429_v42, 4  ;;  %v9043_v11 = vld [vmem:[#allocation59_spill] sm:$0xff] }
 0x47b   :  { %v4536_v46 = vadd.f32 %v4535_v19, %v4534_v17  ;;  %v4270_v57 = vmul.f32 %v8239_v49, %v9040_v28  ;;  %v4972_v15 = vrot.slane %v8239_v49, %v8985_v47  ;;  %v4271_v8 = vmul.f32 %v8255_v52, %v9041_v25 }
 0x47c   :  { %v4853_v36 = vsel %vm2267_vm5, %v4519_v37, %v4852_v60  ;;  %v4525_v5 = vrot.slane %v4524_v10, 1  ;;  %v4531_v27 = vadd.f32 %v4530_v30, %v4529_v63  ;;  %v4431_v23 = vadd.f32 %v4430_v45, %v4429_v42  ;;  %v8306_v4 = vpop.permute.xlu1 %4135  ;;  %v8326_v60 = vpop.permute.xlu0 %4140  ;;  %v9044_v37 = vld [vmem:[#allocation58_spill] sm:$0xff]  ;;  %v9045_v45 = vld [vmem:[#allocation65_spill] sm:$0xff] }
 0x47d   :  { %v4537_v3 = vrot.slane %v4536_v46, 2  ;;  %v4436_v1 = vsel %vm103_vm0, %v4270_v57, 0.0  ;;  %v5171_v48 = vsel %vm2261_vm2, %v4972_v15, %v4968_v62  ;;  %v4443_v34 = vsel %vm103_vm0, %v4271_v8, 0.0 }
 0x47e   :  { %v4526_v41 = vadd.f32 %v4525_v5, %v4524_v10  ;;  %v4532_v53 = vrot.slane %v4531_v27, 1  ;;  %v4432_v49 = vrot.slane %v4431_v23, 2  ;;  %v4437_v20 = vrot.slane %v4436_v1, 4 }
 0x47f   :  { %v4538_v16 = vadd.f32 %v4537_v3, %v4536_v46  ;;  %v4444_v35 = vrot.slane %v4443_v34, 4  ;;  %v4976_v58 = vrot.slane %v8255_v52, %v8985_v47  ;;  %v4272_v2 = vmul.f32 %v8264_v38, %v9042_v56 }
 0x480   :  { %v4854_v24 = vsel %vm2269_vm6, %v4526_v41, %v4853_v36  ;;  %v4533_v7 = vadd.f32 %v4532_v53, %v4531_v27  ;;  %v4433_v29 = vadd.f32 %v4432_v49, %v4431_v23  ;;  %v4438_v51 = vadd.f32 %v4437_v20, %v4436_v1  ;;  %v8322_v54 = vpop.permute.xlu1 %4145  ;;  %v9046_v49 = vld [vmem:[#allocation64_spill] sm:$0xff] }
 0x481   :  { %v4539_v43 = vrot.slane %v4538_v16, 1  ;;  %v4445_v32 = vadd.f32 %v4444_v35, %v4443_v34  ;;  %v5172_v40 = vsel %vm2263_vm3, %v4976_v58, %v5171_v48  ;;  %v4450_v9 = vsel %vm103_vm0, %v4272_v2, 0.0  ;;  %v8350_v34 = vpop.permute.xlu0 %4150 }
 0x482   :  { %v4855_v61 = vsel %vm2271_vm7, %v4533_v7, %v4854_v24  ;;  %v4434_v31 = vrot.slane %v4433_v29, 1  ;;  %v4439_v6 = vrot.slane %v4438_v51, 2  ;;  %v4451_v26 = vrot.slane %v4450_v9, 4  ;;  %v9047_v7 = vld [vmem:[#allocation63_spill] sm:$0xff] }
 0x483   :  { %v4540_v52 = vadd.f32 %v4539_v43, %v4538_v16  ;;  %v4446_v59 = vrot.slane %v4445_v32, 2  ;;  %v4980_v44 = vrot.slane %v8264_v38, %v8985_v47  ;;  %v4273_v21 = vmul.f32 %v8270_v14, %v9043_v11 }
 0x484   :  { %v4435_v17 = vadd.f32 %v4434_v31, %v4433_v29  ;;  %v4440_v13 = vadd.f32 %v4439_v6, %v4438_v51  ;;  %v4452_v12 = vadd.f32 %v4451_v26, %v4450_v9  ;;  %v4984_v18 = vrot.slane %v8270_v14, %v8985_v47  ;;  %v8347_v23 = vpop.permute.xlu1 %4155 }
 0x485   :  { %v4856_v0 = vsel %vm2273_vm8, %v4540_v52, %v4855_v61  ;;  %v4447_v33 = vadd.f32 %v4446_v59, %v4445_v32  ;;  %v5173_v63 = vsel %vm2265_vm4, %v4980_v44, %v5172_v40  ;;  %v4457_v38 = vsel %vm103_vm0, %v4273_v21, 0.0  ;;  %v8374_v21 = vpop.permute.xlu0 %4160 }
 0x486   :  { %4896 = vst.msk [vmem:[%s8654_s7 + $0x18] sm:$0xff] %vm103_vm0, %v4856_v0  ;;  %v4441_v19 = vrot.slane %v4440_v13, 1  ;;  %v4453_v22 = vrot.slane %v4452_v12, 2  ;;  %v4458_v42 = vrot.slane %v4457_v38, 4  ;;  %v5174_v62 = vsel %vm2267_vm5, %v4984_v18, %v5173_v63  ;;  %v9049_v18 = vld [vmem:[#allocation6_spill] sm:$0xff] }
 0x487   :  { %v4448_v14 = vrot.slane %v4447_v33, 1  ;;  %v4274_v10 = vmul.f32 %v8286_v55, %v9044_v37  ;;  %v4988_v30 = vrot.slane %v8286_v55, %v8985_v47  ;;  %v4275_v46 = vmul.f32 %v8283_v39, %v9045_v45 }
 0x488   :  { %v4442_v28 = vadd.f32 %v4441_v19, %v4440_v13  ;;  %v4454_v57 = vadd.f32 %v4453_v22, %v4452_v12  ;;  %v4459_v15 = vadd.f32 %v4458_v42, %v4457_v38  ;;  %v4992_v25 = vrot.slane %v8283_v39, %v8985_v47  ;;  %v8368_v52 = vpop.permute.xlu1 %4165 }
 0x489   :  { %v4449_v8 = vadd.f32 %v4448_v14, %v4447_v33  ;;  %v4464_v36 = vsel %vm103_vm0, %v4274_v10, 0.0  ;;  %v5175_v5 = vsel %vm2269_vm6, %v4988_v30, %v5174_v62  ;;  %v4471_v27 = vsel %vm103_vm0, %v4275_v46, 0.0 }
 0x48a   :  { %v4843_v55 = vsel %vm2261_vm2, %v4442_v28, %v4435_v17  ;;  %v4455_v3 = vrot.slane %v4454_v57, 1  ;;  %v4460_v1 = vrot.slane %v4459_v15, 2  ;;  %v4465_v48 = vrot.slane %v4464_v36, 4 }
 0x48b   :  { %v4844_v41 = vsel %vm2263_vm3, %v4449_v8, %v4843_v55  ;;  %v4472_v53 = vrot.slane %v4471_v27, 4  ;;  %v5176_v39 = vsel %vm2271_vm7, %v4992_v25, %v5175_v5  ;;  %v4276_v20 = vmul.f32 %v8308_v50, %v9046_v49  ;;  %v4171_v55 = vpop.permute.xlu0 %4170 }
 0x48c   :  { %v4456_v16 = vadd.f32 %v4455_v3, %v4454_v57  ;;  %v4461_v35 = vadd.f32 %v4460_v1, %v4459_v15  ;;  %v4466_v58 = vadd.f32 %v4465_v48, %v4464_v36  ;;  %v4996_v56 = vrot.slane %v8308_v50, %v8985_v47  ;;  %v9048_v50 = vld [vmem:[#allocation62_spill] sm:$0xff]  ;;  %v9050_v57 = vld [vmem:[#allocation68_spill] sm:$0xff]  ;;  %v8388_v25 = vpop.permute.xlu1 %4095 }
 0x48d   :  { %v4473_v2 = vadd.f32 %v4472_v53, %v4471_v27  ;;  %v4478_v24 = vsel %vm103_vm0, %v4276_v20, 0.0  ;;  %v4293_v29 = vmul.f32 %v8306_v4, %v9047_v7  ;;  %v5064_v51 = vrot.slane %v8306_v4, %v8985_v47 }
 0x48e   :  { %v4845_v43 = vsel %vm2265_vm4, %v4456_v16, %v4844_v41  ;;  %v4462_v32 = vrot.slane %v4461_v35, 1  ;;  %v4467_v40 = vrot.slane %v4466_v58, 2  ;;  %v4479_v9 = vrot.slane %v4478_v24, 4 }
 0x48f   :  { %v4474_v61 = vrot.slane %v4473_v2, 2  ;;  %v5177_v31 = vsel %vm2273_vm8, %v4996_v56, %v5176_v39  ;;  %v4597_v6 = vsel %vm103_vm0, %v4293_v29, 0.0  ;;  %v4294_v26 = vmul.f32 %v8326_v60, %v9048_v50  ;;  %v4101_v50 = vpop.permute.xlu0 %4100 }
 0x490   :  { %v4463_v59 = vadd.f32 %v4462_v32, %v4461_v35  ;;  %v4468_v44 = vadd.f32 %v4467_v40, %v4466_v58  ;;  %v4480_v11 = vadd.f32 %v4479_v9, %v4478_v24  ;;  %5223 = vst.msk [vmem:[%s8653_s8 + $0x10] sm:$0xff] %vm2332_vm9, %v5177_v31  ;;  %v4598_v4 = vrot.slane %v4597_v6, 4  ;;  %v9051_v35 = vld [vmem:[#allocation8_spill] sm:$0xff]  ;;  %v9052_v32 = vld [vmem:[#allocation7_spill] sm:$0xff]  ;;  %v8409_v9 = vpop.permute.xlu1 %4105 }
 0x491   :  { %v4475_v17 = vadd.f32 %v4474_v61, %v4473_v2  ;;  %v4604_v13 = vsel %vm103_vm0, %v4294_v26, 0.0  ;;  %v5068_v12 = vrot.slane %v8326_v60, %v8985_v47  ;;  %v4295_v0 = vmul.f32 %v8322_v54, %v9049_v18 }
 0x492   :  { %v4846_v33 = vsel %vm2267_vm5, %v4463_v59, %v4845_v43  ;;  %v4469_v63 = vrot.slane %v4468_v44, 1  ;;  %v4481_v38 = vrot.slane %v4480_v11, 2  ;;  %v4599_v19 = vadd.f32 %v4598_v4, %v4597_v6 }
 0x493   :  { %v4476_v22 = vrot.slane %v4475_v17, 1  ;;  %v4605_v42 = vrot.slane %v4604_v13, 4  ;;  %v5192_v62 = vsel %vm2261_vm2, %v5068_v12, %v5064_v51  ;;  %v4611_v14 = vsel %vm103_vm0, %v4295_v0, 0.0 }
 0x494   :  { %v4470_v37 = vadd.f32 %v4469_v63, %v4468_v44  ;;  %v4482_v10 = vadd.f32 %v4481_v38, %v4480_v11  ;;  %v4600_v30 = vrot.slane %v4599_v19, 2  ;;  %v4612_v45 = vrot.slane %v4611_v14, 4  ;;  %v9053_v11 = vld [vmem:[#allocation2_spill] sm:$0xff] }
 0x495   :  { %v4477_v46 = vadd.f32 %v4476_v22, %v4475_v17  ;;  %v4606_v60 = vadd.f32 %v4605_v42, %v4604_v13  ;;  %v5072_v28 = vrot.slane %v8322_v54, %v8985_v47  ;;  %v4296_v15 = vmul.f32 %v8350_v34, %v9050_v57  ;;  %v9055_v57 = vld [vmem:[#allocation66_spill] sm:$0xff] }
 0x496   :  { %v4847_v8 = vsel %vm2269_vm6, %v4470_v37, %v4846_v33  ;;  %v4483_v36 = vrot.slane %v4482_v10, 1  ;;  %v4601_v5 = vadd.f32 %v4600_v30, %v4599_v19  ;;  %v4613_v27 = vadd.f32 %v4612_v45, %v4611_v14  ;;  %v9054_v37 = vld [vmem:[#allocation10_spill] sm:$0xff]  ;;  %v8426_v45 = vpop.permute.xlu1 %4115 }
 0x497   :  { %v4848_v3 = vsel %vm2271_vm7, %v4477_v46, %v4847_v8  ;;  %v4607_v1 = vrot.slane %v4606_v60, 2  ;;  %v5193_v48 = vsel %vm2263_vm3, %v5072_v28, %v5192_v62  ;;  %v4618_v41 = vsel %vm103_vm0, %v4296_v15, 0.0  ;;  %v4111_v15 = vpop.permute.xlu0 %4110 }
 0x498   :  { %v4484_v53 = vadd.f32 %v4483_v36, %v4482_v10  ;;  %v4602_v54 = vrot.slane %v4601_v5, 1  ;;  %v4614_v39 = vrot.slane %v4613_v27, 2  ;;  %v4619_v49 = vrot.slane %v4618_v41, 4 }
 0x499   :  { %v4608_v20 = vadd.f32 %v4607_v1, %v4606_v60  ;;  %v5076_v16 = vrot.slane %v8350_v34, %v8985_v47  ;;  %v4297_v58 = vmul.f32 %v8347_v23, %v9051_v35  ;;  %v5080_v56 = vrot.slane %v8347_v23, %v8985_v47 }
 0x49a   :  { %v4849_v2 = vsel %vm2273_vm8, %v4484_v53, %v4848_v3  ;;  %v4603_v24 = vadd.f32 %v4602_v54, %v4601_v5  ;;  %v4615_v7 = vadd.f32 %v4614_v39, %v4613_v27  ;;  %v4620_v29 = vadd.f32 %v4619_v49, %v4618_v41  ;;  %v9056_v54 = vld [vmem:[#allocation67_spill] sm:$0xff] }
 0x49b   :  { %4895 = vst.msk [vmem:[%s8654_s7 + $0x10] sm:$0xff] %vm103_vm0, %v4849_v2  ;;  %v4609_v51 = vrot.slane %v4608_v20, 1  ;;  %v5194_v43 = vsel %vm2265_vm4, %v5076_v16, %v5193_v48  ;;  %v4625_v34 = vsel %vm103_vm0, %v4297_v58, 0.0  ;;  %v4298_v40 = vmul.f32 %v8374_v21, %v9052_v32 }
 0x49c   :  { %v4616_v23 = vrot.slane %v4615_v7, 1  ;;  %v4621_v61 = vrot.slane %v4620_v29, 2  ;;  %v4626_v31 = vrot.slane %v4625_v34, 4  ;;  %v5195_v6 = vsel %vm2267_vm5, %v5080_v56, %v5194_v43 }
 0x49d   :  { %v4610_v26 = vadd.f32 %v4609_v51, %v4608_v20  ;;  %v4632_v59 = vsel %vm103_vm0, %v4298_v40, 0.0  ;;  %v5084_v44 = vrot.slane %v8374_v21, %v8985_v47  ;;  %v4299_v4 = vmul.f32 %v8368_v52, %v9053_v11  ;;  %v4121_v40 = vpop.permute.xlu0 %4120 }
 0x49e   :  { %v4617_v17 = vadd.f32 %v4616_v23, %v4615_v7  ;;  %v4622_v13 = vadd.f32 %v4621_v61, %v4620_v29  ;;  %v4627_v12 = vadd.f32 %v4626_v31, %v4625_v34  ;;  %v4633_v18 = vrot.slane %v4632_v59, 4  ;;  %v8446_v29 = vpop.permute.xlu1 %4125 }
 0x49f   :  { %v4864_v0 = vsel %vm2261_vm2, %v4610_v26, %v4603_v24  ;;  %v5196_v33 = vsel %vm2269_vm6, %v5084_v44, %v5195_v6  ;;  %v4639_v63 = vsel %vm103_vm0, %v4299_v4, 0.0  ;;  %v5088_v38 = vrot.slane %v8368_v52, %v8985_v47  ;;  %v9057_v24 = vld [vmem:[#allocation30_spill] sm:$0xff] }
 0x4a0   :  { %v4865_v19 = vsel %vm2263_vm3, %v4617_v17, %v4864_v0  ;;  %v4623_v22 = vrot.slane %v4622_v13, 1  ;;  %v4628_v21 = vrot.slane %v4627_v12, 2  ;;  %v4634_v42 = vadd.f32 %v4633_v18, %v4632_v59 }
 0x4a1   :  { %v4640_v62 = vrot.slane %v4639_v63, 4  ;;  %v5197_v14 = vsel %vm2271_vm7, %v5088_v38, %v5196_v33  ;;  %v4300_v10 = vmul.f32 %v4171_v55, %v9054_v37  ;;  %v5092_v30 = vrot.slane %v4171_v55, %v8985_v47 }
 0x4a2   :  { %v4624_v46 = vadd.f32 %v4623_v22, %v4622_v13  ;;  %v4629_v60 = vadd.f32 %v4628_v21, %v4627_v12  ;;  %v4635_v28 = vrot.slane %v4634_v42, 2  ;;  %v4285_v52 = vmul.f32 %v8388_v25, %v9055_v57  ;;  %v9058_v13 = vld [vmem:[#allocation28_spill] sm:$0xff]  ;;  %v9059_v22 = vld [vmem:[#allocation27_spill] sm:$0xff] }
 0x4a3   :  { %v4641_v8 = vadd.f32 %v4640_v62, %v4639_v63  ;;  %v4646_v36 = vsel %vm103_vm0, %v4300_v10, 0.0  ;;  %v5198_v5 = vsel %vm2273_vm8, %v5092_v30, %v5197_v14  ;;  %v5032_v27 = vrot.slane %v8388_v25, %v8985_v47  ;;  %v4131_v10 = vpop.permute.xlu0 %4130 }
 0x4a4   :  { %v4866_v3 = vsel %vm2265_vm4, %v4624_v46, %v4865_v19  ;;  %v4630_v55 = vrot.slane %v4629_v60, 1  ;;  %v4636_v1 = vadd.f32 %v4635_v28, %v4634_v42  ;;  %v4647_v48 = vrot.slane %v4646_v36, 4  ;;  %5226 = vst.msk [vmem:[%s8653_s8 + $0x28] sm:$0xff] %vm2332_vm9, %v5198_v5  ;;  %v8460_v42 = vpop.permute.xlu1 %4220 }
 0x4a5   :  { %v4642_v41 = vrot.slane %v4641_v8, 2  ;;  %v4541_v53 = vsel %vm103_vm0, %v4285_v52, 0.0  ;;  %v4286_v39 = vmul.f32 %v4101_v50, %v9056_v54  ;;  %v5036_v49 = vrot.slane %v4101_v50, %v8985_v47 }
 0x4a6   :  { %v4631_v20 = vadd.f32 %v4630_v55, %v4629_v60  ;;  %v4637_v16 = vrot.slane %v4636_v1, 1  ;;  %v4648_v25 = vadd.f32 %v4647_v48, %v4646_v36  ;;  %v4542_v35 = vrot.slane %v4541_v53, 4 }
 0x4a7   :  { %v4643_v58 = vadd.f32 %v4642_v41, %v4641_v8  ;;  %v4548_v56 = vsel %vm103_vm0, %v4286_v39, 0.0  ;;  %v5185_v2 = vsel %vm2261_vm2, %v5036_v49, %v5032_v27  ;;  %v4287_v7 = vmul.f32 %v8409_v9, %v9057_v24  ;;  %v9061_v41 = vld [vmem:[#allocation19_spill] sm:$0xff] }
 0x4a8   :  { %v4867_v51 = vsel %vm2267_vm5, %v4631_v20, %v4866_v3  ;;  %v4638_v43 = vadd.f32 %v4637_v16, %v4636_v1  ;;  %v4649_v34 = vrot.slane %v4648_v25, 2  ;;  %v4543_v32 = vadd.f32 %v4542_v35, %v4541_v53  ;;  %v9060_v3 = vld [vmem:[#allocation3_spill] sm:$0xff]  ;;  %v8479_v20 = vpop.permute.xlu1 %4225 }
 0x4a9   :  { %v4644_v23 = vrot.slane %v4643_v58, 1  ;;  %v4549_v61 = vrot.slane %v4548_v56, 4  ;;  %v4555_v31 = vsel %vm103_vm0, %v4287_v7, 0.0  ;;  %v5040_v6 = vrot.slane %v8409_v9, %v8985_v47 }
 0x4aa   :  { %v4868_v50 = vsel %vm2269_vm6, %v4638_v43, %v4867_v51  ;;  %v4650_v26 = vadd.f32 %v4649_v34, %v4648_v25  ;;  %v4544_v59 = vrot.slane %v4543_v32, 2  ;;  %v4556_v44 = vrot.slane %v4555_v31, 4 }
 0x4ab   :  { %v4645_v11 = vadd.f32 %v4644_v23, %v4643_v58  ;;  %v4550_v4 = vadd.f32 %v4549_v61, %v4548_v56  ;;  %v5186_v17 = vsel %vm2263_vm3, %v5040_v6, %v5185_v2  ;;  %v4288_v12 = vmul.f32 %v4111_v15, %v9058_v13  ;;  %v8481_v56 = vpop.permute.xlu0 %4215  ;;  %v9062_v23 = vld [vmem:[#allocation20_spill] sm:$0xff]  ;;  %v9063_v6 = vld [vmem:[#allocation9_spill] sm:$0xff] }
 0x4ac   :  { %v4651_v18 = vrot.slane %v4650_v26, 1  ;;  %v4545_v0 = vadd.f32 %v4544_v59, %v4543_v32  ;;  %v4557_v33 = vadd.f32 %v4556_v44, %v4555_v31  ;;  %v5044_v63 = vrot.slane %v4111_v15, %v8985_v47 }
 0x4ad   :  { %v4869_v38 = vsel %vm2271_vm7, %v4645_v11, %v4868_v50  ;;  %v4551_v19 = vrot.slane %v4550_v4, 2  ;;  %v4562_v9 = vsel %vm103_vm0, %v4288_v12, 0.0  ;;  %v4289_v21 = vmul.f32 %v8426_v45, %v9059_v22 }
 0x4ae   :  { %v4652_v62 = vadd.f32 %v4651_v18, %v4650_v26  ;;  %v4558_v14 = vrot.slane %v4557_v33, 2  ;;  %v4563_v37 = vrot.slane %v4562_v9, 4  ;;  %v4546_v30 = vrot.slane %v4545_v0, 1  ;;  %v8494_v18 = vpop.permute.xlu1 %4235 }
 0x4af   :  { %v4552_v46 = vadd.f32 %v4551_v19, %v4550_v4  ;;  %v4569_v60 = vsel %vm103_vm0, %v4289_v21, 0.0  ;;  %v5048_v28 = vrot.slane %v8426_v45, %v8985_v47  ;;  %v5187_v8 = vsel %vm2265_vm4, %v5044_v63, %v5186_v17  ;;  %v4231_v19 = vpop.permute.xlu0 %4230  ;;  %v9064_v21 = vld [vmem:[#allocation31_spill] sm:$0xff] }
 0x4b0   :  { %v4870_v57 = vsel %vm2273_vm8, %v4652_v62, %v4869_v38  ;;  %v4559_v52 = vadd.f32 %v4558_v14, %v4557_v33  ;;  %v4564_v15 = vadd.f32 %v4563_v37, %v4562_v9  ;;  %v4570_v5 = vrot.slane %v4569_v60, 4 }
 0x4b1   :  { %4898 = vst.msk [vmem:[%s8654_s7 + $0x28] sm:$0xff] %vm103_vm0, %v4870_v57  ;;  %v4553_v36 = vrot.slane %v4552_v46, 1  ;;  %v5188_v27 = vsel %vm2267_vm5, %v5048_v28, %v5187_v8  ;;  %v4290_v55 = vmul.f32 %v4121_v40, %v9060_v3  ;;  %v5052_v45 = vrot.slane %v4121_v40, %v8985_v47  ;;  %v9066_v3 = vld [vmem:[#allocation12_spill] sm:$0xff] }
 0x4b2   :  { %v4560_v1 = vrot.slane %v4559_v52, 1  ;;  %v4565_v48 = vrot.slane %v4564_v15, 2  ;;  %v4291_v53 = vmul.f32 %v8446_v29, %v9061_v41  ;;  %v4571_v54 = vadd.f32 %v4570_v5, %v4569_v60 }
 0x4b3   :  { %v4576_v39 = vsel %vm103_vm0, %v4290_v55, 0.0  ;;  %v5056_v49 = vrot.slane %v8446_v29, %v8985_v47  ;;  %v4547_v16 = vadd.f32 %v4546_v30, %v4545_v0  ;;  %v4554_v25 = vadd.f32 %v4553_v36, %v4552_v46  ;;  %v9065_v30 = vld [vmem:[#allocation11_spill] sm:$0xff] }
 0x4b4   :  { %v4566_v35 = vadd.f32 %v4565_v48, %v4564_v15  ;;  %v4577_v58 = vrot.slane %v4576_v39, 4  ;;  %v4561_v2 = vadd.f32 %v4560_v1, %v4559_v52  ;;  %v4572_v24 = vrot.slane %v4571_v54, 2  ;;  %v8510_v1 = vpop.permute.xlu1 %4245 }
 0x4b5   :  { %v5189_v7 = vsel %vm2269_vm6, %v5052_v45, %v5188_v27  ;;  %v4583_v51 = vsel %vm103_vm0, %v4291_v53, 0.0  ;;  %v4292_v61 = vmul.f32 %v4131_v10, %v9062_v23  ;;  %v5060_v31 = vrot.slane %v4131_v10, %v8985_v47 }
 0x4b6   :  { %v4567_v43 = vrot.slane %v4566_v35, 1  ;;  %v4578_v34 = vadd.f32 %v4577_v58, %v4576_v39  ;;  %v4584_v32 = vrot.slane %v4583_v51, 4  ;;  %v5190_v40 = vsel %vm2271_vm7, %v5056_v49, %v5189_v7 }
 0x4b7   :  { %v4573_v29 = vadd.f32 %v4572_v24, %v4571_v54  ;;  %v4310_v50 = vmul.f32 %v8460_v42, %v9063_v6  ;;  %v4857_v26 = vsel %vm2261_vm2, %v4554_v25, %v4547_v16  ;;  %v4590_v17 = vsel %vm103_vm0, %v4292_v61, 0.0  ;;  %v4241_v54 = vpop.permute.xlu0 %4240 }
 0x4b8   :  { %v4568_v59 = vadd.f32 %v4567_v43, %v4566_v35  ;;  %v4579_v44 = vrot.slane %v4578_v34, 2  ;;  %v4585_v11 = vadd.f32 %v4584_v32, %v4583_v51  ;;  %v5191_v13 = vsel %vm2273_vm8, %v5060_v31, %v5190_v40 }
 0x4b9   :  { %v4574_v4 = vrot.slane %v4573_v29, 1  ;;  %v4716_v12 = vsel %vm103_vm0, %v4310_v50, 0.0  ;;  %v4858_v0 = vsel %vm2263_vm3, %v4561_v2, %v4857_v26  ;;  %v4591_v38 = vrot.slane %v4590_v17, 4  ;;  %5225 = vst.msk [vmem:[%s8653_s8 + $0x20] sm:$0xff] %vm2332_vm9, %v5191_v13  ;;  %v8527_v50 = vpop.permute.xlu1 %4180  ;;  %v9068_v13 = vld [vmem:[#allocation22_spill] sm:$0xff] }
 0x4ba   :  { %v4580_v33 = vadd.f32 %v4579_v44, %v4578_v34  ;;  %v4586_v63 = vrot.slane %v4585_v11, 2  ;;  %v4717_v22 = vrot.slane %v4716_v12, 4  ;;  %v4309_v62 = vmul.f32 %v8481_v56, %v9064_v21  ;;  %v9067_v34 = vld [vmem:[#allocation21_spill] sm:$0xff]  ;;  %v9069_v21 = vld [vmem:[#allocation16_spill] sm:$0xff] }
 0x4bb   :  { %v4575_v9 = vadd.f32 %v4574_v4, %v4573_v29  ;;  %v4592_v10 = vadd.f32 %v4591_v38, %v4590_v17  ;;  %v4311_v46 = vmul.f32 %v8479_v20, %v9065_v30  ;;  %v4859_v60 = vsel %vm2265_vm4, %v4568_v59, %v4858_v0  ;;  %v8523_v23 = vpop.permute.xlu0 %4175 }
 0x4bc   :  { %v4581_v14 = vrot.slane %v4580_v33, 1  ;;  %v4587_v37 = vadd.f32 %v4586_v63, %v4585_v11  ;;  %v4718_v28 = vadd.f32 %v4717_v22, %v4716_v12  ;;  %v4709_v57 = vsel %vm103_vm0, %v4309_v62, 0.0 }
 0x4bd   :  { %v4593_v8 = vrot.slane %v4592_v10, 2  ;;  %v4710_v36 = vrot.slane %v4709_v57, 4  ;;  %v4860_v5 = vsel %vm2267_vm5, %v4575_v9, %v4859_v60  ;;  %v4723_v27 = vsel %vm103_vm0, %v4311_v46, 0.0  ;;  %v8547_v46 = vpop.permute.xlu1 %4190 }
 0x4be   :  { %v4582_v52 = vadd.f32 %v4581_v14, %v4580_v33  ;;  %v4588_v15 = vrot.slane %v4587_v37, 1  ;;  %v4312_v55 = vmul.f32 %v4231_v19, %v9066_v3  ;;  %v4719_v41 = vrot.slane %v4718_v28, 2 }
 0x4bf   :  { %v4594_v45 = vadd.f32 %v4593_v8, %v4592_v10  ;;  %v4711_v53 = vadd.f32 %v4710_v36, %v4709_v57  ;;  %v5132_v39 = vrot.slane %v8460_v42, %v8985_v47  ;;  %v5128_v49 = vrot.slane %v8481_v56, %v8985_v47  ;;  %v4186_v14 = vpop.permute.xlu0 %4185  ;;  %v9071_v36 = vld [vmem:[#allocation5_spill] sm:$0xff] }
 0x4c0   :  { %v4589_v48 = vadd.f32 %v4588_v15, %v4587_v37  ;;  %v4724_v16 = vrot.slane %v4723_v27, 4  ;;  %v4730_v25 = vsel %vm103_vm0, %v4312_v55, 0.0  ;;  %v4861_v35 = vsel %vm2269_vm6, %v4582_v52, %v4860_v5 }
 0x4c1   :  { %v4595_v58 = vrot.slane %v4594_v45, 1  ;;  %v4712_v2 = vrot.slane %v4711_v53, 2  ;;  %v4731_v24 = vrot.slane %v4730_v25, 4  ;;  %v5136_v43 = vrot.slane %v8479_v20, %v8985_v47 }
 0x4c2   :  { %v4862_v7 = vsel %vm2271_vm7, %v4589_v48, %v4861_v35  ;;  %v4725_v51 = vadd.f32 %v4724_v16, %v4723_v27  ;;  %v4313_v42 = vmul.f32 %v8494_v18, %v9067_v34  ;;  %v4720_v40 = vadd.f32 %v4719_v41, %v4718_v28 }
 0x4c3   :  { %v4596_v32 = vadd.f32 %v4595_v58, %v4594_v45  ;;  %v4713_v56 = vadd.f32 %v4712_v2, %v4711_v53  ;;  %v4732_v29 = vadd.f32 %v4731_v24, %v4730_v25  ;;  %v5206_v61 = vsel %vm2261_vm2, %v5132_v39, %v5128_v49  ;;  %v9072_v53 = vld [vmem:[#allocation24_spill] sm:$0xff]  ;;  %v4196_v25 = vpop.permute.xlu0 %4195 }
 0x4c4   :  { %v4726_v31 = vrot.slane %v4725_v51, 2  ;;  %v4737_v6 = vsel %vm103_vm0, %v4313_v42, 0.0  ;;  %v5140_v20 = vrot.slane %v4231_v19, %v8985_v47  ;;  %v5207_v4 = vsel %vm2263_vm3, %v5136_v43, %v5206_v61 }
 0x4c5   :  { %v4863_v26 = vsel %vm2273_vm8, %v4596_v32, %v4862_v7  ;;  %v4733_v59 = vrot.slane %v4732_v29, 2  ;;  %v4738_v44 = vrot.slane %v4737_v6, 4  ;;  %v5144_v17 = vrot.slane %v8494_v18, %v8985_v47  ;;  %v9070_v18 = vld [vmem:[#allocation4_spill] sm:$0xff]  ;;  %v8566_v7 = vpop.permute.xlu1 %4200 }
 0x4c6   :  { %4897 = vst.msk [vmem:[%s8654_s7 + $0x20] sm:$0xff] %vm103_vm0, %v4863_v26  ;;  %v4727_v11 = vadd.f32 %v4726_v31, %v4725_v51  ;;  %v4314_v12 = vmul.f32 %v4241_v54, %v9068_v13  ;;  %v4721_v0 = vrot.slane %v4720_v40, 1  ;;  %v4714_v33 = vrot.slane %v4713_v56, 1 }
 0x4c7   :  { %v4734_v63 = vadd.f32 %v4733_v59, %v4732_v29  ;;  %v5208_v19 = vsel %vm2265_vm4, %v5140_v20, %v5207_v4  ;;  %v4739_v9 = vadd.f32 %v4738_v44, %v4737_v6  ;;  %v5148_v22 = vrot.slane %v4241_v54, %v8985_v47  ;;  %v9073_v29 = vld [vmem:[#allocation23_spill] sm:$0xff]  ;;  %v9074_v59 = vld [vmem:[#allocation13_spill] sm:$0xff] }
 0x4c8   :  { %v4744_v38 = vsel %vm103_vm0, %v4314_v12, 0.0  ;;  %v4315_v62 = vmul.f32 %v8510_v1, %v9069_v21  ;;  %v4728_v37 = vrot.slane %v4727_v11, 1  ;;  %v5209_v10 = vsel %vm2267_vm5, %v5144_v17, %v5208_v19 }
 0x4c9   :  { %v4302_v30 = vmul.f32 %v8527_v50, %v9070_v18  ;;  %v4722_v60 = vadd.f32 %v4721_v0, %v4720_v40  ;;  %v4715_v28 = vadd.f32 %v4714_v33, %v4713_v56  ;;  %v4745_v57 = vrot.slane %v4744_v38, 4  ;;  %v4206_v0 = vpop.permute.xlu0 %4205 }
 0x4ca   :  { %v5152_v52 = vrot.slane %v8510_v1, %v8985_v47  ;;  %v4735_v15 = vrot.slane %v4734_v63, 1  ;;  %v4301_v5 = vmul.f32 %v8523_v23, %v9071_v36  ;;  %v4740_v27 = vrot.slane %v4739_v9, 2 }
 0x4cb   :  { %v4660_v8 = vsel %vm103_vm0, %v4302_v30, 0.0  ;;  %v5210_v3 = vsel %vm2269_vm6, %v5148_v22, %v5209_v10  ;;  %v4751_v55 = vsel %vm103_vm0, %v4315_v62, 0.0  ;;  %v4729_v48 = vadd.f32 %v4728_v37, %v4727_v11  ;;  %v9075_v30 = vld [vmem:[#allocation14_spill] sm:$0xff] }
 0x4cc   :  { %v4661_v45 = vrot.slane %v4660_v8, 4  ;;  %v4653_v41 = vsel %vm103_vm0, %v4301_v5, 0.0  ;;  %v4304_v54 = vmul.f32 %v8547_v46, %v9072_v53  ;;  %v4878_v1 = vsel %vm2261_vm2, %v4722_v60, %v4715_v28  ;;  %v9076_v5 = vld [vmem:[#allocation25_spill] sm:$0xff] }
 0x4cd   :  { %v4746_v39 = vadd.f32 %v4745_v57, %v4744_v38  ;;  %v8561_v49 = vsel %vm2271_vm7, %v5152_v52, %v5210_v3  ;;  %v4654_v16 = vrot.slane %v4653_v41, 4  ;;  %v8563_v35 = vadd.f32 %v4735_v15, %v4734_v63 }
 0x4ce   :  { %v4752_v58 = vrot.slane %v4751_v55, 4  ;;  %v4662_v2 = vadd.f32 %v4661_v45, %v4660_v8  ;;  %v4674_v24 = vsel %vm103_vm0, %v4304_v54, 0.0  ;;  %v8568_v51 = vadd.f32 %v4740_v27, %v4739_v9 }
 0x4cf   :  { %v5100_v43 = vrot.slane %v8527_v50, %v8985_v47  ;;  %v4655_v34 = vadd.f32 %v4654_v16, %v4653_v41  ;;  %v5096_v42 = vrot.slane %v8523_v23, %v8985_v47  ;;  %v8575_v32 = vsel %vm2263_vm3, %v4729_v48, %v4878_v1  ;;  %v4251_v41 = vpop.permute.xlu0 %4250 }
 0x4d0   :  { %v4663_v40 = vrot.slane %v4662_v2, 2  ;;  %v4675_v56 = vrot.slane %v4674_v24, 4  ;;  %v4303_v61 = vmul.f32 %v4186_v14, %v9073_v29  ;;  %v4747_v31 = vrot.slane %v4746_v39, 2 }
 0x4d1   :  { %v4656_v6 = vrot.slane %v4655_v34, 2  ;;  %v5104_v26 = vrot.slane %v4186_v14, %v8985_v47  ;;  %v4306_v20 = vmul.f32 %v8566_v7, %v9074_v59  ;;  %v4753_v44 = vadd.f32 %v4752_v58, %v4751_v55  ;;  %v4211_v14 = vpop.permute.xlu1 %4210 }
 0x4d2   :  { %v4664_v50 = vadd.f32 %v4663_v40, %v4662_v2  ;;  %v4676_v11 = vadd.f32 %v4675_v56, %v4674_v24  ;;  %v4667_v4 = vsel %vm103_vm0, %v4303_v61, 0.0  ;;  %v4742_v23 = vrot.slane %v8568_v51, 1 }
 0x4d3   :  { %v4657_v17 = vadd.f32 %v4656_v6, %v4655_v34  ;;  %v5199_v13 = vsel %vm2261_vm2, %v5100_v43, %v5096_v42  ;;  %v4668_v12 = vrot.slane %v4667_v4, 4  ;;  %v5108_v38 = vrot.slane %v8547_v46, %v8985_v47  ;;  %v9078_v42 = vld [vmem:[#allocation15_spill] sm:$0xff] }
 0x4d4   :  { %v4665_v33 = vrot.slane %v4664_v50, 1  ;;  %v4677_v63 = vrot.slane %v4676_v11, 2  ;;  %v4688_v19 = vsel %vm103_vm0, %v4306_v20, 0.0  ;;  %v5200_v21 = vsel %vm2263_vm3, %v5104_v26, %v5199_v13 }
 0x4d5   :  { %v4658_v9 = vrot.slane %v4657_v17, 1  ;;  %v4669_v22 = vadd.f32 %v4668_v12, %v4667_v4  ;;  %v4689_v62 = vrot.slane %v4688_v19, 4  ;;  %v8588_v37 = vadd.f32 %v4747_v31, %v4746_v39  ;;  %v9077_v39 = vld [vmem:[#allocation26_spill] sm:$0xff] }
 0x4d6   :  { %v4754_v10 = vrot.slane %v4753_v44, 2  ;;  %v4678_v18 = vadd.f32 %v4677_v63, %v4676_v11  ;;  %v4305_v60 = vmul.f32 %v4196_v25, %v9075_v30  ;;  %v5116_v52 = vrot.slane %v8566_v7, %v8985_v47 }
 0x4d7   :  { %v4670_v28 = vrot.slane %v4669_v22, 2  ;;  %v4690_v57 = vadd.f32 %v4689_v62, %v4688_v19  ;;  %v5112_v46 = vrot.slane %v4196_v25, %v8985_v47  ;;  %v4666_v15 = vadd.f32 %v4665_v33, %v4664_v50 }
 0x4d8   :  { %v5201_v8 = vsel %vm2265_vm4, %v5108_v38, %v5200_v21  ;;  %v4681_v36 = vsel %vm103_vm0, %v4305_v60, 0.0  ;;  %v4308_v27 = vmul.f32 %v4211_v14, %v9076_v5  ;;  %v4659_v3 = vadd.f32 %v4658_v9, %v4657_v17 }
 0x4d9   :  { %v4671_v55 = vadd.f32 %v4670_v28, %v4669_v22  ;;  %v4691_v48 = vrot.slane %v4690_v57, 2  ;;  %v4682_v45 = vrot.slane %v4681_v36, 4  ;;  %v4679_v53 = vrot.slane %v4678_v18, 1 }
 0x4da   :  { %v5202_v54 = vsel %vm2267_vm5, %v5112_v46, %v5201_v8  ;;  %v4702_v1 = vsel %vm103_vm0, %v4308_v27, 0.0  ;;  %v4307_v16 = vmul.f32 %v4206_v0, %v9077_v39  ;;  %v5124_v24 = vrot.slane %v4211_v14, %v8985_v47 }
 0x4db   :  { %v4672_v25 = vrot.slane %v4671_v55, 1  ;;  %v4683_v58 = vadd.f32 %v4682_v45, %v4681_v36  ;;  %v4703_v2 = vrot.slane %v4702_v1, 4  ;;  %v4692_v7 = vadd.f32 %v4691_v48, %v4690_v57 }
 0x4dc   :  { %v4695_v43 = vsel %vm103_vm0, %v4307_v16, 0.0  ;;  %v5120_v34 = vrot.slane %v4206_v0, %v8985_v47  ;;  %v4316_v40 = vmul.f32 %v4251_v41, %v9078_v42  ;;  %v5203_v31 = vsel %vm2269_vm6, %v5116_v52, %v5202_v54 }
 0x4dd   :  { %v4673_v56 = vadd.f32 %v4672_v25, %v4671_v55  ;;  %v4684_v29 = vrot.slane %v4683_v58, 2  ;;  %v4704_v61 = vadd.f32 %v4703_v2, %v4702_v1  ;;  %v4696_v6 = vrot.slane %v4695_v43, 4 }
 0x4de   :  { %v5204_v26 = vsel %vm2271_vm7, %v5120_v34, %v5203_v31  ;;  %v4758_v59 = vsel %vm103_vm0, %v4316_v40, 0.0  ;;  %v5156_v20 = vrot.slane %v4251_v41, %v8985_v47  ;;  %v4755_v50 = vadd.f32 %v4754_v10, %v4753_v44 }
 0x4df   :  { %v4871_v11 = vsel %vm2261_vm2, %v4666_v15, %v4659_v3  ;;  %v4685_v4 = vadd.f32 %v4684_v29, %v4683_v58  ;;  %v4705_v17 = vrot.slane %v4704_v61, 2  ;;  %v4680_v13 = vadd.f32 %v4679_v53, %v4678_v18 }
 0x4e0   :  { %v4697_v12 = vadd.f32 %v4696_v6, %v4695_v43  ;;  %v5205_v0 = vsel %vm2273_vm8, %v5124_v24, %v5204_v26  ;;  %v4759_v33 = vrot.slane %v4758_v59, 4  ;;  %v4693_v63 = vrot.slane %v4692_v7, 1 }
 0x4e1   :  { %v4686_v38 = vrot.slane %v4685_v4, 1  ;;  %v4706_v19 = vadd.f32 %v4705_v17, %v4704_v61  ;;  %5227 = vst.msk [vmem:[%s8653_s8 + $0x30] sm:$0xff] %vm2332_vm9, %v5205_v0  ;;  %v5212_v47 = vsel %vm2273_vm8, %v5156_v20, %v8561_v49  ;;  %v4749_v44 = vrot.slane %v8588_v37, 1 }
 0x4e2   :  { %v4872_v9 = vsel %vm2263_vm3, %v4673_v56, %v4871_v11  ;;  %v4698_v22 = vrot.slane %v4697_v12, 2  ;;  %v4760_v21 = vadd.f32 %v4759_v33, %v4758_v59  ;;  %5228 = vst.msk [vmem:[%s8653_s8 + $0x38] sm:$0xff] %vm2332_vm9, %v5212_v47  ;;  %v4743_v62 = vadd.f32 %v4742_v23, %v8568_v51 }
 0x4e3   :  { %v4756_v14 = vrot.slane %v4755_v50, 1  ;;  %v4687_v10 = vadd.f32 %v4686_v38, %v4685_v4  ;;  %v4707_v18 = vrot.slane %v4706_v19, 1  ;;  %v4880_v60 = vsel %vm2265_vm4, %v8563_v35, %v8575_v32 }
 0x4e4   :  { %v4699_v30 = vadd.f32 %v4698_v22, %v4697_v12  ;;  %v4761_v49 = vrot.slane %v4760_v21, 2  ;;  %v4694_v28 = vadd.f32 %v4693_v63, %v4692_v7  ;;  %v4873_v57 = vsel %vm2265_vm4, %v4680_v13, %v4872_v9 }
 0x4e5   :  { %v4750_v52 = vadd.f32 %v4749_v44, %v8588_v37  ;;  %v4874_v46 = vsel %vm2267_vm5, %v4687_v10, %v4873_v57  ;;  %v4881_v51 = vsel %vm2267_vm5, %v4743_v62, %v4880_v60  ;;  %v4757_v23 = vadd.f32 %v4756_v14, %v4755_v50 }
 0x4e6   :  { %v4700_v15 = vrot.slane %v4699_v30, 1  ;;  %v4762_v8 = vadd.f32 %v4761_v49, %v4760_v21  ;;  %v4708_v36 = vadd.f32 %v4707_v18, %v4706_v19  ;;  %v4875_v3 = vsel %vm2269_vm6, %v4694_v28, %v4874_v46 }
 0x4e7   :  { %v4882_v55 = vsel %vm2269_vm6, %v4750_v52, %v4881_v51 }
 0x4e8   :  { %v4701_v5 = vadd.f32 %v4700_v15, %v4699_v30  ;;  %v4763_v27 = vrot.slane %v4762_v8, 1  ;;  %v4883_v48 = vsel %vm2271_vm7, %v4757_v23, %v4882_v55 }
 0x4ea   :  { %v4876_v35 = vsel %vm2271_vm7, %v4701_v5, %v4875_v3  ;;  %v4764_v32 = vadd.f32 %v4763_v27, %v4762_v8 }
 0x4eb   :  { %v4877_v37 = vsel %vm2273_vm8, %v4708_v36, %v4876_v35 }
 0x4ec   :  { %4899 = vst.msk [vmem:[%s8654_s7 + $0x30] sm:$0xff] %vm103_vm0, %v4877_v37  ;;  %v4884_v45 = vsel %vm2273_vm8, %v4764_v32, %v4883_v48 }
 0x4ed   :  { %4900 = vst.msk [vmem:[%s8654_s7 + $0x38] sm:$0xff] %vm103_vm0, %v4884_v45 }

</bundles_post_ra>
